<compile_context>
chip_gen: v7x
topology: tpu7x:2x2x1
jax: 0.10.0
libtpu: 0.0.40
codegen_flags: <defaults>
</compile_context>

<pallas_src>
import functools
import math

import jax
import jax.numpy as jnp
from jax.experimental import pallas as pl
from jax.experimental.pallas import tpu as pltpu


# ----------------------------------------------------------------------------
# Fused kernel
# ----------------------------------------------------------------------------
def idsa_fused_kernel(*refs, target, scale, hidden, num_layers):
    """refs layout:
         inputs : x(B,C,T), src(C,T), tgt(C,T), wqk_t(T,2T), bqk(1,2T),
                  [w_ih_t, w_hh_t, bias] * num_layers,
                  w1_t(H,H), b1(1,H), w2_t(H,NC), b2(1,NC)
         outputs: logits(B,NC), st(B,H), adj(C,C)
         scratch: h_slab (T*B, H)
    """
    f32 = jnp.float32
    H = hidden
    x_ref, src_ref, tgt_ref, wqk_ref, bqk_ref = refs[0:5]
    lstm_refs = refs[5:5 + 3 * num_layers]
    w1_ref, b1_ref, w2_ref, b2_ref = refs[5 + 3 * num_layers:9 + 3 * num_layers]
    logits_ref, st_ref, adj_ref = refs[9 + 3 * num_layers:12 + 3 * num_layers]
    slab_ref = refs[-1]

    B, C, T = x_ref.shape

    # ---- 1. inter-domain graph: adj = row-normalised relu(S @ T^T) ----------
    src = src_ref[...].astype(f32)
    tgt = tgt_ref[...].astype(f32)
    a = jax.lax.dot_general(src, tgt, (((1,), (1,)), ((), ())),
                            preferred_element_type=f32)               # (C, C)
    a = jnp.maximum(a, 0.0)
    row_sum = jnp.maximum(jnp.sum(a, axis=1, keepdims=True), 1e-12)    # NaN guard
    adj = a / row_sum
    adj_ref[...] = adj.astype(adj_ref.dtype)

    # ---- 2. embedding add (+ adj bmm for target branch) ---------------------
    emb = tgt if target else src
    x = x_ref[...].astype(f32) + emb[None, :, :]                       # (B, C, T)
    if target:
        xf = jnp.concatenate(
            [jnp.dot(adj, x[b], preferred_element_type=f32) for b in range(B)],
            axis=0)                                                    # (B*C, T)
    else:
        xf = x.reshape(B * C, T)                                       # (B*C, T)

    # ---- 3. Spatial_MHA: fused q|k projection, one MXU pass for the batch ---
    qk = jnp.dot(xf, wqk_ref[...].astype(f32),
                 preferred_element_type=f32) + bqk_ref[...].astype(f32)  # (B*C, 2T)
    w_ih0_t = lstm_refs[0][...].astype(f32)                            # (C, 4H)
    proj0 = []
    for b in range(B):
        xb = xf[b * C:(b + 1) * C, :]                                  # (C, T)
        qb = qk[b * C:(b + 1) * C, :T]
        kb = qk[b * C:(b + 1) * C, T:]
        s = jax.lax.dot_general(qb, kb, (((1,), (1,)), ((), ())),
                                preferred_element_type=f32) * scale    # (C, C)
        s = s - jnp.max(s, axis=-1, keepdims=True)
        e = jnp.exp(s)
        attn = e / jnp.sum(e, axis=-1, keepdims=True)
        yb = jnp.tanh(jnp.dot(attn, xb, preferred_element_type=f32)) + xb  # (C,T)
        # LSTM layer-0 input projection hoisted out of the time loop:
        # y_b^T @ W_ih0^T as a TN contraction (no in-kernel transpose of y_b).
        proj0.append(jax.lax.dot_general(yb, w_ih0_t, (((0,), (0,)), ((), ())),
                                         preferred_element_type=f32))  # (T, 4H)
    proj = jnp.stack(proj0, axis=0)                                    # (B, T, 4H)

    # ---- 4. multi-layer LSTM (h0 = c0 = 0); gates pre-ordered (i, f, o, g) --
    h = None
    for layer in range(num_layers):
        w_hh_t = lstm_refs[3 * layer + 1][...].astype(f32)             # (H, 4H)
        bias = lstm_refs[3 * layer + 2][...].astype(f32)               # (1, 4H)
        if layer > 0:
            # one matmul for all T input projections of this layer
            w_ih_t = lstm_refs[3 * layer][...].astype(f32)             # (H, 4H)
            proj_flat = jnp.dot(slab_ref[...], w_ih_t,
                                preferred_element_type=f32)            # (T*B, 4H)
        last = layer == num_layers - 1
        h = jnp.zeros((B, H), f32)
        c = jnp.zeros((B, H), f32)
        for t in range(T):
            xc = proj[:, t, :] if layer == 0 else proj_flat[t * B:(t + 1) * B, :]
            gates = xc + jnp.dot(h, w_hh_t, preferred_element_type=f32) + bias
            sig = 1.0 / (1.0 + jnp.exp(-gates[:, :3 * H]))             # i, f, o
            i_g = sig[:, 0 * H:1 * H]
            f_g = sig[:, 1 * H:2 * H]
            o_g = sig[:, 2 * H:3 * H]
            g_g = jnp.tanh(gates[:, 3 * H:4 * H])
            c = f_g * c + i_g * g_g
            h = o_g * jnp.tanh(c)
            if not last:
                slab_ref[t * B:(t + 1) * B, :] = h    # feeds next layer's projection
        # TODO(synk): nn.LSTM inter-layer dropout(0.5) is identity in eval mode.

    st = h                                                              # (B, H)

    # ---- 5. classifier: relu(Linear) -> Linear ------------------------------
    hid = jnp.maximum(jnp.dot(st, w1_ref[...], preferred_element_type=f32)
                      + b1_ref[...], 0.0)
    # TODO(synk): Classifier Dropout(0.5) is identity at inference.
    logits = jnp.dot(hid, w2_ref[...], preferred_element_type=f32) + b2_ref[...]
    logits_ref[...] = logits.astype(logits_ref.dtype)
    st_ref[...] = st.astype(st_ref.dtype)


# ----------------------------------------------------------------------------
# One-time parameter preparation (all layout plumbing hoisted out of forward)
# ----------------------------------------------------------------------------
def prepare_params(params):
    f32 = jnp.float32
    H = params["lstm"][0][1].shape[1]

    def reorder(m):  # PyTorch gate order (i, f, g, o) -> kernel order (i, f, o, g)
        return jnp.concatenate([m[:2 * H], m[3 * H:4 * H], m[2 * H:3 * H]], axis=0)

    return {
        "src": params["source_embed"].astype(f32),
        "tgt": params["target_embed"].astype(f32),
        "wqk_t": jnp.concatenate([params["wq"].T, params["wk"].T], axis=1).astype(f32),
        "bqk": jnp.concatenate([params["bq"], params["bk"]]).reshape(1, -1).astype(f32),
        "w1_t": params["w1"].T.astype(f32),
        "b1": params["b1"].reshape(1, -1).astype(f32),
        "w2_t": params["w2"].T.astype(f32),
        "b2": params["b2"].reshape(1, -1).astype(f32),
        "lstm": [(reorder(w_ih).T.astype(f32),
                  reorder(w_hh).T.astype(f32),
                  reorder(b_ih + b_hh).reshape(1, -1).astype(f32))
                 for (w_ih, w_hh, b_ih, b_hh) in params["lstm"]],
    }


# ----------------------------------------------------------------------------
# Wrapper (IDSA.forward) -- one pallas_call, single full-array VMEM blocks
# ----------------------------------------------------------------------------
def idsa_forward(prep, x, target=False):
    B, C, T = x.shape
    H = prep["w1_t"].shape[0]
    NC = prep["w2_t"].shape[1]
    num_layers = len(prep["lstm"])
    f32 = jnp.float32

    lstm_flat = [a for layer in prep["lstm"] for a in layer]
    n_in = 5 + len(lstm_flat) + 4

    kernel = functools.partial(idsa_fused_kernel, target=bool(target),
                               scale=1.0 / math.sqrt(T), hidden=H,
                               num_layers=num_layers)
    logits, st, adj = pl.pallas_call(
        kernel,
        out_shape=(jax.ShapeDtypeStruct((B, NC), f32),
                   jax.ShapeDtypeStruct((B, H), f32),
                   jax.ShapeDtypeStruct((C, C), f32)),
        in_specs=[pl.BlockSpec(memory_space=pltpu.VMEM)] * n_in,
        out_specs=(pl.BlockSpec(memory_space=pltpu.VMEM),
                   pl.BlockSpec(memory_space=pltpu.VMEM),
                   pl.BlockSpec(memory_space=pltpu.VMEM)),
        scratch_shapes=[pltpu.VMEM((T * B, H), jnp.float32)],
    )(x.astype(f32), prep["src"], prep["tgt"], prep["wqk_t"], prep["bqk"],
      *lstm_flat, prep["w1_t"], prep["b1"], prep["w2_t"], prep["b2"])

    return logits, st, adj, prep["src"], prep["tgt"]


# ----------------------------------------------------------------------------
# Pure-JAX reference (mirrors the PyTorch forward, eval mode)
# ----------------------------------------------------------------------------
def idsa_forward_ref(params, x, target=False):
    s_w, t_w = params["source_embed"], params["target_embed"]
    B, C, T = x.shape
    a = jnp.maximum(s_w @ t_w.T, 0.0)
    adj = a / jnp.sum(a, axis=1, keepdims=True)
    if target:
        xx = x + t_w[None]
        xx = jnp.einsum("ij,bjt->bit", adj, xx)
    else:
        xx = x + s_w[None]
    q = jnp.einsum("bct,dt->bcd", xx, params["wq"]) + params["bq"]
    k = jnp.einsum("bct,dt->bcd", xx, params["wk"]) + params["bk"]
    scores = jnp.einsum("bcd,bed->bce", q, k) / math.sqrt(T)
    attn = jax.nn.softmax(scores, axis=-1)
    y = jnp.tanh(jnp.einsum("bce,bet->bct", attn, xx)) + xx
    seq = jnp.transpose(y, (0, 2, 1))                    # (B, T, C)

    H = params["lstm"][0][1].shape[1]
    xs, h = seq, None
    for (w_ih, w_hh, b_ih, b_hh) in params["lstm"]:
        hh = jnp.zeros((B, H), jnp.float32)
        cc = jnp.zeros((B, H), jnp.float32)
        outs = []
        for t in range(T):
            g = xs[:, t, :] @ w_ih.T + b_ih + hh @ w_hh.T + b_hh
            i = jax.nn.sigmoid(g[:, :H]); f = jax.nn.sigmoid(g[:, H:2 * H])
            gg = jnp.tanh(g[:, 2 * H:3 * H]); o = jax.nn.sigmoid(g[:, 3 * H:])
            cc = f * cc + i * gg
            hh = o * jnp.tanh(cc)
            outs.append(hh)
        xs = jnp.stack(outs, axis=1)
        h = hh
    st = h
    hid = jnp.maximum(st @ params["w1"].T + params["b1"], 0.0)
    logits = hid @ params["w2"].T + params["b2"]
    return logits, st, adj, s_w, t_w


# ----------------------------------------------------------------------------
if __name__ == "__main__":
    B, C, T = 2, 4, 16            # batch, channel_num, input_feat_dim
    H, NL, NC = 32, 2, 8          # hidden_size, num_layers, num_classes

    key = jax.random.PRNGKey(0)
    ks = jax.random.split(key, 20)
    # Embedding weights kept strictly positive so relu(S @ T^T) has no all-zero
    # rows (keeps the row-normalisation well-posed, as in a trained model).
    params = {
        "source_embed": jnp.abs(jax.random.normal(ks[0], (C, T), jnp.float32)) * 0.5 + 0.1,
        "target_embed": jnp.abs(jax.random.normal(ks[1], (C, T), jnp.float32)) * 0.5 + 0.1,
        "wq": jax.random.normal(ks[2], (T, T), jnp.float32) / math.sqrt(T),
        "bq": jax.random.normal(ks[3], (T,), jnp.float32) * 0.1,
        "wk": jax.random.normal(ks[4], (T, T), jnp.float32) / math.sqrt(T),
        "bk": jax.random.normal(ks[5], (T,), jnp.float32) * 0.1,
        "w1": jax.random.normal(ks[6], (H, H), jnp.float32) / math.sqrt(H),
        "b1": jax.random.normal(ks[7], (H,), jnp.float32) * 0.1,
        "w2": jax.random.normal(ks[8], (NC, H), jnp.float32) / math.sqrt(H),
        "b2": jax.random.normal(ks[9], (NC,), jnp.float32) * 0.1,
    }
    lstm, kidx, in_dim = [], 10, C
    for _ in range(NL):
        lstm.append((
            jax.random.normal(ks[kidx + 0], (4 * H, in_dim), jnp.float32) / math.sqrt(in_dim),
            jax.random.normal(ks[kidx + 1], (4 * H, H), jnp.float32) / math.sqrt(H),
            jax.random.normal(ks[kidx + 2], (4 * H,), jnp.float32) * 0.1,
            jax.random.normal(ks[kidx + 3], (4 * H,), jnp.float32) * 0.1,
        ))
        kidx += 4
        in_dim = H
    params["lstm"] = lstm

    x = jax.random.normal(ks[18], (B, C, T), jnp.float32)

    prep = prepare_params(params)                       # one-time layout plumbing
    fwd = jax.jit(idsa_forward, static_argnames=("target",))

    for tgt_flag in (False, True):
        outs = jax.block_until_ready(fwd(prep, x, target=tgt_flag))
        refs = idsa_forward_ref(params, x, target=tgt_flag)
        for name, o, r in zip(("logits", "st_out", "adj"), outs[:3], refs[:3]):
            assert bool(jnp.all(jnp.isfinite(o))), f"non-finite {name}"
            assert jnp.allclose(o, r, rtol=1e-3, atol=1e-3), (name, o, r)

    print("KERNEL_OK")
</pallas_src>

<mosaic_0001>
module attributes {stable_mosaic.version = 11 : i64} {
  func.func @idsa_fused_kernel(%arg0: memref<2x4x16xf32, #tpu.memory_space<vmem>>, %arg1: memref<4x16xf32, #tpu.memory_space<vmem>>, %arg2: memref<4x16xf32, #tpu.memory_space<vmem>>, %arg3: memref<16x32xf32, #tpu.memory_space<vmem>>, %arg4: memref<1x32xf32, #tpu.memory_space<vmem>>, %arg5: memref<4x128xf32, #tpu.memory_space<vmem>>, %arg6: memref<32x128xf32, #tpu.memory_space<vmem>>, %arg7: memref<1x128xf32, #tpu.memory_space<vmem>>, %arg8: memref<32x128xf32, #tpu.memory_space<vmem>>, %arg9: memref<32x128xf32, #tpu.memory_space<vmem>>, %arg10: memref<1x128xf32, #tpu.memory_space<vmem>>, %arg11: memref<32x32xf32, #tpu.memory_space<vmem>>, %arg12: memref<1x32xf32, #tpu.memory_space<vmem>>, %arg13: memref<32x8xf32, #tpu.memory_space<vmem>>, %arg14: memref<1x8xf32, #tpu.memory_space<vmem>>, %arg15: memref<2x8xf32, #tpu.memory_space<vmem>>, %arg16: memref<2x32xf32, #tpu.memory_space<vmem>>, %arg17: memref<4x4xf32, #tpu.memory_space<vmem>>, %arg18: memref<32x32xf32, #tpu.memory_space<vmem>>) attributes {dimension_semantics = [], scalar_prefetch = 0 : i64, scratch_operands = 1 : i64, tpu.core_type = #tpu.core_type<tc>} {
    %c0 = arith.constant 0 : index
    %c0_0 = arith.constant 0 : index
    %0 = vector.load %arg1[%c0, %c0_0] : memref<4x16xf32, #tpu.memory_space<vmem>>, vector<4x16xf32>
    %c0_1 = arith.constant 0 : index
    %c0_2 = arith.constant 0 : index
    %1 = vector.load %arg2[%c0_1, %c0_2] : memref<4x16xf32, #tpu.memory_space<vmem>>, vector<4x16xf32>
    %cst = arith.constant dense<0.000000e+00> : vector<4x4xf32>
    %2 = tpu.matmul %0, %1, %cst {dimension_numbers = #tpu.dot_dimension_numbers<[1], [1], [0], [0], [0, 0, 1, 0], [], []>} : vector<4x16xf32>, vector<4x16xf32>, vector<4x4xf32> -> vector<4x4xf32>
    %cst_3 = arith.constant 0.000000e+00 : f32
    %3 = vector.broadcast %cst_3 : f32 to vector<4x4xf32>
    %4 = arith.maximumf %2, %3 : vector<4x4xf32>
    %cst_4 = arith.constant dense<0.000000e+00> : vector<4xf32>
    %5 = vector.multi_reduction <add>, %4, %cst_4 [1] : vector<4x4xf32> to vector<4xf32>
    %6 = vector.shape_cast %5 : vector<4xf32> to vector<4x1xf32>
    %cst_5 = arith.constant 9.99999996E-13 : f32
    %7 = vector.broadcast %cst_5 : f32 to vector<4x1xf32>
    %8 = arith.maximumf %6, %7 : vector<4x1xf32>
    %9 = vector.broadcast %8 : vector<4x1xf32> to vector<4x4xf32>
    %10 = arith.divf %4, %9 : vector<4x4xf32>
    %c0_6 = arith.constant 0 : index
    %c0_7 = arith.constant 0 : index
    %11 = vector.load %arg17[%c0_6, %c0_7] : memref<4x4xf32, #tpu.memory_space<vmem>>, vector<4x4xf32>
    tpu.vector_store %arg17[%c0_6, %c0_7], %10 {strides = array<i32>} : memref<4x4xf32, #tpu.memory_space<vmem>>, vector<4x4xf32>,
    %c0_8 = arith.constant 0 : index
    %c0_9 = arith.constant 0 : index
    %c0_10 = arith.constant 0 : index
    %12 = vector.load %arg0[%c0_8, %c0_9, %c0_10] : memref<2x4x16xf32, #tpu.memory_space<vmem>>, vector<2x4x16xf32>
    %13 = vector.shape_cast %0 : vector<4x16xf32> to vector<1x4x16xf32>
    %14 = vector.broadcast %13 : vector<1x4x16xf32> to vector<2x4x16xf32>
    %15 = arith.addf %12, %14 : vector<2x4x16xf32>
    %16 = vector.shape_cast %15 : vector<2x4x16xf32> to vector<8x16xf32>
    %c0_11 = arith.constant 0 : index
    %c0_12 = arith.constant 0 : index
    %17 = vector.load %arg3[%c0_11, %c0_12] : memref<16x32xf32, #tpu.memory_space<vmem>>, vector<16x32xf32>
    %cst_13 = arith.constant dense<0.000000e+00> : vector<8x32xf32>
    %18 = tpu.matmul %16, %17, %cst_13 {dimension_numbers = #tpu.dot_dimension_numbers<[1], [0], [0], [1], [0, 0, 1, 1], [], []>} : vector<8x16xf32>, vector<16x32xf32>, vector<8x32xf32> -> vector<8x32xf32>
    %c0_14 = arith.constant 0 : index
    %c0_15 = arith.constant 0 : index
    %19 = vector.load %arg4[%c0_14, %c0_15] : memref<1x32xf32, #tpu.memory_space<vmem>>, vector<1x32xf32>
    %20 = vector.broadcast %19 : vector<1x32xf32> to vector<8x32xf32>
    %21 = arith.addf %18, %20 : vector<8x32xf32>
    %c0_16 = arith.constant 0 : index
    %c0_17 = arith.constant 0 : index
    %22 = vector.load %arg5[%c0_16, %c0_17] : memref<4x128xf32, #tpu.memory_space<vmem>>, vector<4x128xf32>
    %23 = vector.extract_strided_slice %16 {offsets = [0, 0], sizes = [4, 16], strides = [1, 1]} : vector<8x16xf32> to vector<4x16xf32>
    %24 = vector.extract_strided_slice %21 {offsets = [0, 0], sizes = [4, 16], strides = [1, 1]} : vector<8x32xf32> to vector<4x16xf32>
    %25 = vector.extract_strided_slice %21 {offsets = [0, 16], sizes = [4, 16], strides = [1, 1]} : vector<8x32xf32> to vector<4x16xf32>
    %cst_18 = arith.constant dense<0.000000e+00> : vector<4x4xf32>
    %26 = tpu.matmul %24, %25, %cst_18 {dimension_numbers = #tpu.dot_dimension_numbers<[1], [1], [0], [0], [0, 0, 1, 0], [], []>} : vector<4x16xf32>, vector<4x16xf32>, vector<4x4xf32> -> vector<4x4xf32>
    %cst_19 = arith.constant 2.500000e-01 : f32
    %27 = vector.broadcast %cst_19 : f32 to vector<4x4xf32>
    %28 = arith.mulf %26, %27 : vector<4x4xf32>
    %cst_20 = arith.constant dense<0xFF800000> : vector<4xf32>
    %29 = vector.multi_reduction <maximumf>, %28, %cst_20 [1] : vector<4x4xf32> to vector<4xf32>
    %30 = vector.shape_cast %29 : vector<4xf32> to vector<4x1xf32>
    %31 = vector.broadcast %30 : vector<4x1xf32> to vector<4x4xf32>
    %32 = arith.subf %28, %31 : vector<4x4xf32>
    %33 = math.exp %32 : vector<4x4xf32>
    %cst_21 = arith.constant dense<0.000000e+00> : vector<4xf32>
    %34 = vector.multi_reduction <add>, %33, %cst_21 [1] : vector<4x4xf32> to vector<4xf32>
    %35 = vector.shape_cast %34 : vector<4xf32> to vector<4x1xf32>
    %36 = vector.broadcast %35 : vector<4x1xf32> to vector<4x4xf32>
    %37 = arith.divf %33, %36 : vector<4x4xf32>
    %cst_22 = arith.constant dense<0.000000e+00> : vector<4x16xf32>
    %38 = tpu.matmul %37, %23, %cst_22 {dimension_numbers = #tpu.dot_dimension_numbers<[1], [0], [0], [1], [0, 0, 1, 1], [], []>} : vector<4x4xf32>, vector<4x16xf32>, vector<4x16xf32> -> vector<4x16xf32>
    %39 = math.tanh %38 : vector<4x16xf32>
    %40 = arith.addf %39, %23 : vector<4x16xf32>
    %cst_23 = arith.constant dense<0.000000e+00> : vector<16x128xf32>
    %41 = tpu.matmul %40, %22, %cst_23 {dimension_numbers = #tpu.dot_dimension_numbers<[0], [0], [1], [1], [0, 1, 1, 1], [], []>} : vector<4x16xf32>, vector<4x128xf32>, vector<16x128xf32> -> vector<16x128xf32>
    %42 = vector.extract_strided_slice %16 {offsets = [4, 0], sizes = [4, 16], strides = [1, 1]} : vector<8x16xf32> to vector<4x16xf32>
    %43 = vector.extract_strided_slice %21 {offsets = [4, 0], sizes = [4, 16], strides = [1, 1]} : vector<8x32xf32> to vector<4x16xf32>
    %44 = vector.extract_strided_slice %21 {offsets = [4, 16], sizes = [4, 16], strides = [1, 1]} : vector<8x32xf32> to vector<4x16xf32>
    %cst_24 = arith.constant dense<0.000000e+00> : vector<4x4xf32>
    %45 = tpu.matmul %43, %44, %cst_24 {dimension_numbers = #tpu.dot_dimension_numbers<[1], [1], [0], [0], [0, 0, 1, 0], [], []>} : vector<4x16xf32>, vector<4x16xf32>, vector<4x4xf32> -> vector<4x4xf32>
    %cst_25 = arith.constant 2.500000e-01 : f32
    %46 = vector.broadcast %cst_25 : f32 to vector<4x4xf32>
    %47 = arith.mulf %45, %46 : vector<4x4xf32>
    %cst_26 = arith.constant dense<0xFF800000> : vector<4xf32>
    %48 = vector.multi_reduction <maximumf>, %47, %cst_26 [1] : vector<4x4xf32> to vector<4xf32>
    %49 = vector.shape_cast %48 : vector<4xf32> to vector<4x1xf32>
    %50 = vector.broadcast %49 : vector<4x1xf32> to vector<4x4xf32>
    %51 = arith.subf %47, %50 : vector<4x4xf32>
    %52 = math.exp %51 : vector<4x4xf32>
    %cst_27 = arith.constant dense<0.000000e+00> : vector<4xf32>
    %53 = vector.multi_reduction <add>, %52, %cst_27 [1] : vector<4x4xf32> to vector<4xf32>
    %54 = vector.shape_cast %53 : vector<4xf32> to vector<4x1xf32>
    %55 = vector.broadcast %54 : vector<4x1xf32> to vector<4x4xf32>
    %56 = arith.divf %52, %55 : vector<4x4xf32>
    %cst_28 = arith.constant dense<0.000000e+00> : vector<4x16xf32>
    %57 = tpu.matmul %56, %42, %cst_28 {dimension_numbers = #tpu.dot_dimension_numbers<[1], [0], [0], [1], [0, 0, 1, 1], [], []>} : vector<4x4xf32>, vector<4x16xf32>, vector<4x16xf32> -> vector<4x16xf32>
    %58 = math.tanh %57 : vector<4x16xf32>
    %59 = arith.addf %58, %42 : vector<4x16xf32>
    %cst_29 = arith.constant dense<0.000000e+00> : vector<16x128xf32>
    %60 = tpu.matmul %59, %22, %cst_29 {dimension_numbers = #tpu.dot_dimension_numbers<[0], [0], [1], [1], [0, 1, 1, 1], [], []>} : vector<4x16xf32>, vector<4x128xf32>, vector<16x128xf32> -> vector<16x128xf32>
    %61 = vector.shape_cast %41 : vector<16x128xf32> to vector<1x16x128xf32>
    %62 = vector.shape_cast %60 : vector<16x128xf32> to vector<1x16x128xf32>
    %63 = tpu.concatenate %61, %62 in 0 : vector<1x16x128xf32>, vector<1x16x128xf32> -> vector<2x16x128xf32>
    %c0_30 = arith.constant 0 : index
    %c0_31 = arith.constant 0 : index
    %64 = vector.load %arg6[%c0_30, %c0_31] : memref<32x128xf32, #tpu.memory_space<vmem>>, vector<32x128xf32>
    %c0_32 = arith.constant 0 : index
    %c0_33 = arith.constant 0 : index
    %65 = vector.load %arg7[%c0_32, %c0_33] : memref<1x128xf32, #tpu.memory_space<vmem>>, vector<1x128xf32>
    %cst_34 = arith.constant 0.000000e+00 : f32
    %66 = vector.broadcast %cst_34 : f32 to vector<2x32xf32>
    %cst_35 = arith.constant 0.000000e+00 : f32
    %67 = vector.broadcast %cst_35 : f32 to vector<2x32xf32>
    %68 = vector.extract_strided_slice %63 {offsets = [0, 0, 0], sizes = [2, 1, 128], strides = [1, 1, 1]} : vector<2x16x128xf32> to vector<2x1x128xf32>
    %69 = vector.shape_cast %68 : vector<2x1x128xf32> to vector<2x128xf32>
    %cst_36 = arith.constant dense<0.000000e+00> : vector<2x128xf32>
    %70 = tpu.matmul %66, %64, %cst_36 {dimension_numbers = #tpu.dot_dimension_numbers<[1], [0], [0], [1], [0, 0, 1, 1], [], []>} : vector<2x32xf32>, vector<32x128xf32>, vector<2x128xf32> -> vector<2x128xf32>
    %71 = arith.addf %69, %70 : vector<2x128xf32>
    %72 = vector.broadcast %65 : vector<1x128xf32> to vector<2x128xf32>
    %73 = arith.addf %71, %72 : vector<2x128xf32>
    %74 = vector.extract_strided_slice %73 {offsets = [0, 0], sizes = [2, 96], strides = [1, 1]} : vector<2x128xf32> to vector<2x96xf32>
    %cst_37 = arith.constant 0.000000e+00 : f32
    %75 = vector.broadcast %cst_37 : f32 to vector<2x96xf32>
    %76 = arith.subf %75, %74 : vector<2x96xf32>
    %77 = math.exp %76 : vector<2x96xf32>
    %cst_38 = arith.constant 1.000000e+00 : f32
    %78 = vector.broadcast %cst_38 : f32 to vector<2x96xf32>
    %79 = arith.addf %78, %77 : vector<2x96xf32>
    %cst_39 = arith.constant 1.000000e+00 : f32
    %80 = vector.broadcast %cst_39 : f32 to vector<2x96xf32>
    %81 = arith.divf %80, %79 : vector<2x96xf32>
    %82 = vector.extract_strided_slice %81 {offsets = [0, 0], sizes = [2, 32], strides = [1, 1]} : vector<2x96xf32> to vector<2x32xf32>
    %83 = vector.extract_strided_slice %81 {offsets = [0, 32], sizes = [2, 32], strides = [1, 1]} : vector<2x96xf32> to vector<2x32xf32>
    %84 = vector.extract_strided_slice %81 {offsets = [0, 64], sizes = [2, 32], strides = [1, 1]} : vector<2x96xf32> to vector<2x32xf32>
    %85 = vector.extract_strided_slice %73 {offsets = [0, 96], sizes = [2, 32], strides = [1, 1]} : vector<2x128xf32> to vector<2x32xf32>
    %86 = math.tanh %85 : vector<2x32xf32>
    %87 = arith.mulf %83, %67 : vector<2x32xf32>
    %88 = arith.mulf %82, %86 : vector<2x32xf32>
    %89 = arith.addf %87, %88 : vector<2x32xf32>
    %90 = math.tanh %89 : vector<2x32xf32>
    %91 = arith.mulf %84, %90 : vector<2x32xf32>
    %c0_40 = arith.constant 0 : index
    %c0_41 = arith.constant 0 : index
    %92 = vector.load %arg18[%c0_40, %c0_41] : memref<32x32xf32, #tpu.memory_space<vmem>>, vector<2x32xf32>
    tpu.vector_store %arg18[%c0_40, %c0_41], %91 {strides = array<i32>} : memref<32x32xf32, #tpu.memory_space<vmem>>, vector<2x32xf32>,
    %93 = vector.extract_strided_slice %63 {offsets = [0, 1, 0], sizes = [2, 1, 128], strides = [1, 1, 1]} : vector<2x16x128xf32> to vector<2x1x128xf32>
    %94 = vector.shape_cast %93 : vector<2x1x128xf32> to vector<2x128xf32>
    %cst_42 = arith.constant dense<0.000000e+00> : vector<2x128xf32>
    %95 = tpu.matmul %91, %64, %cst_42 {dimension_numbers = #tpu.dot_dimension_numbers<[1], [0], [0], [1], [0, 0, 1, 1], [], []>} : vector<2x32xf32>, vector<32x128xf32>, vector<2x128xf32> -> vector<2x128xf32>
    %96 = arith.addf %94, %95 : vector<2x128xf32>
    %97 = vector.broadcast %65 : vector<1x128xf32> to vector<2x128xf32>
    %98 = arith.addf %96, %97 : vector<2x128xf32>
    %99 = vector.extract_strided_slice %98 {offsets = [0, 0], sizes = [2, 96], strides = [1, 1]} : vector<2x128xf32> to vector<2x96xf32>
    %cst_43 = arith.constant 0.000000e+00 : f32
    %100 = vector.broadcast %cst_43 : f32 to vector<2x96xf32>
    %101 = arith.subf %100, %99 : vector<2x96xf32>
    %102 = math.exp %101 : vector<2x96xf32>
    %cst_44 = arith.constant 1.000000e+00 : f32
    %103 = vector.broadcast %cst_44 : f32 to vector<2x96xf32>
    %104 = arith.addf %103, %102 : vector<2x96xf32>
    %cst_45 = arith.constant 1.000000e+00 : f32
    %105 = vector.broadcast %cst_45 : f32 to vector<2x96xf32>
    %106 = arith.divf %105, %104 : vector<2x96xf32>
    %107 = vector.extract_strided_slice %106 {offsets = [0, 0], sizes = [2, 32], strides = [1, 1]} : vector<2x96xf32> to vector<2x32xf32>
    %108 = vector.extract_strided_slice %106 {offsets = [0, 32], sizes = [2, 32], strides = [1, 1]} : vector<2x96xf32> to vector<2x32xf32>
    %109 = vector.extract_strided_slice %106 {offsets = [0, 64], sizes = [2, 32], strides = [1, 1]} : vector<2x96xf32> to vector<2x32xf32>
    %110 = vector.extract_strided_slice %98 {offsets = [0, 96], sizes = [2, 32], strides = [1, 1]} : vector<2x128xf32> to vector<2x32xf32>
    %111 = math.tanh %110 : vector<2x32xf32>
    %112 = arith.mulf %108, %89 : vector<2x32xf32>
    %113 = arith.mulf %107, %111 : vector<2x32xf32>
    %114 = arith.addf %112, %113 : vector<2x32xf32>
    %115 = math.tanh %114 : vector<2x32xf32>
    %116 = arith.mulf %109, %115 : vector<2x32xf32>
    %c2 = arith.constant 2 : index
    %c0_46 = arith.constant 0 : index
    %117 = vector.load %arg18[%c2, %c0_46] : memref<32x32xf32, #tpu.memory_space<vmem>>, vector<2x32xf32>
    tpu.vector_store %arg18[%c2, %c0_46], %116 {strides = array<i32>} : memref<32x32xf32, #tpu.memory_space<vmem>>, vector<2x32xf32>,
    %118 = vector.extract_strided_slice %63 {offsets = [0, 2, 0], sizes = [2, 1, 128], strides = [1, 1, 1]} : vector<2x16x128xf32> to vector<2x1x128xf32>
    %119 = vector.shape_cast %118 : vector<2x1x128xf32> to vector<2x128xf32>
    %cst_47 = arith.constant dense<0.000000e+00> : vector<2x128xf32>
    %120 = tpu.matmul %116, %64, %cst_47 {dimension_numbers = #tpu.dot_dimension_numbers<[1], [0], [0], [1], [0, 0, 1, 1], [], []>} : vector<2x32xf32>, vector<32x128xf32>, vector<2x128xf32> -> vector<2x128xf32>
    %121 = arith.addf %119, %120 : vector<2x128xf32>
    %122 = vector.broadcast %65 : vector<1x128xf32> to vector<2x128xf32>
    %123 = arith.addf %121, %122 : vector<2x128xf32>
    %124 = vector.extract_strided_slice %123 {offsets = [0, 0], sizes = [2, 96], strides = [1, 1]} : vector<2x128xf32> to vector<2x96xf32>
    %cst_48 = arith.constant 0.000000e+00 : f32
    %125 = vector.broadcast %cst_48 : f32 to vector<2x96xf32>
    %126 = arith.subf %125, %124 : vector<2x96xf32>
    %127 = math.exp %126 : vector<2x96xf32>
    %cst_49 = arith.constant 1.000000e+00 : f32
    %128 = vector.broadcast %cst_49 : f32 to vector<2x96xf32>
    %129 = arith.addf %128, %127 : vector<2x96xf32>
    %cst_50 = arith.constant 1.000000e+00 : f32
    %130 = vector.broadcast %cst_50 : f32 to vector<2x96xf32>
    %131 = arith.divf %130, %129 : vector<2x96xf32>
    %132 = vector.extract_strided_slice %131 {offsets = [0, 0], sizes = [2, 32], strides = [1, 1]} : vector<2x96xf32> to vector<2x32xf32>
    %133 = vector.extract_strided_slice %131 {offsets = [0, 32], sizes = [2, 32], strides = [1, 1]} : vector<2x96xf32> to vector<2x32xf32>
    %134 = vector.extract_strided_slice %131 {offsets = [0, 64], sizes = [2, 32], strides = [1, 1]} : vector<2x96xf32> to vector<2x32xf32>
    %135 = vector.extract_strided_slice %123 {offsets = [0, 96], sizes = [2, 32], strides = [1, 1]} : vector<2x128xf32> to vector<2x32xf32>
    %136 = math.tanh %135 : vector<2x32xf32>
    %137 = arith.mulf %133, %114 : vector<2x32xf32>
    %138 = arith.mulf %132, %136 : vector<2x32xf32>
    %139 = arith.addf %137, %138 : vector<2x32xf32>
    %140 = math.tanh %139 : vector<2x32xf32>
    %141 = arith.mulf %134, %140 : vector<2x32xf32>
    %c4 = arith.constant 4 : index
    %c0_51 = arith.constant 0 : index
    %142 = vector.load %arg18[%c4, %c0_51] : memref<32x32xf32, #tpu.memory_space<vmem>>, vector<2x32xf32>
    tpu.vector_store %arg18[%c4, %c0_51], %141 {strides = array<i32>} : memref<32x32xf32, #tpu.memory_space<vmem>>, vector<2x32xf32>,
    %143 = vector.extract_strided_slice %63 {offsets = [0, 3, 0], sizes = [2, 1, 128], strides = [1, 1, 1]} : vector<2x16x128xf32> to vector<2x1x128xf32>
    %144 = vector.shape_cast %143 : vector<2x1x128xf32> to vector<2x128xf32>
    %cst_52 = arith.constant dense<0.000000e+00> : vector<2x128xf32>
    %145 = tpu.matmul %141, %64, %cst_52 {dimension_numbers = #tpu.dot_dimension_numbers<[1], [0], [0], [1], [0, 0, 1, 1], [], []>} : vector<2x32xf32>, vector<32x128xf32>, vector<2x128xf32> -> vector<2x128xf32>
    %146 = arith.addf %144, %145 : vector<2x128xf32>
    %147 = vector.broadcast %65 : vector<1x128xf32> to vector<2x128xf32>
    %148 = arith.addf %146, %147 : vector<2x128xf32>
    %149 = vector.extract_strided_slice %148 {offsets = [0, 0], sizes = [2, 96], strides = [1, 1]} : vector<2x128xf32> to vector<2x96xf32>
    %cst_53 = arith.constant 0.000000e+00 : f32
    %150 = vector.broadcast %cst_53 : f32 to vector<2x96xf32>
    %151 = arith.subf %150, %149 : vector<2x96xf32>
    %152 = math.exp %151 : vector<2x96xf32>
    %cst_54 = arith.constant 1.000000e+00 : f32
    %153 = vector.broadcast %cst_54 : f32 to vector<2x96xf32>
    %154 = arith.addf %153, %152 : vector<2x96xf32>
    %cst_55 = arith.constant 1.000000e+00 : f32
    %155 = vector.broadcast %cst_55 : f32 to vector<2x96xf32>
    %156 = arith.divf %155, %154 : vector<2x96xf32>
    %157 = vector.extract_strided_slice %156 {offsets = [0, 0], sizes = [2, 32], strides = [1, 1]} : vector<2x96xf32> to vector<2x32xf32>
    %158 = vector.extract_strided_slice %156 {offsets = [0, 32], sizes = [2, 32], strides = [1, 1]} : vector<2x96xf32> to vector<2x32xf32>
    %159 = vector.extract_strided_slice %156 {offsets = [0, 64], sizes = [2, 32], strides = [1, 1]} : vector<2x96xf32> to vector<2x32xf32>
    %160 = vector.extract_strided_slice %148 {offsets = [0, 96], sizes = [2, 32], strides = [1, 1]} : vector<2x128xf32> to vector<2x32xf32>
    %161 = math.tanh %160 : vector<2x32xf32>
    %162 = arith.mulf %158, %139 : vector<2x32xf32>
    %163 = arith.mulf %157, %161 : vector<2x32xf32>
    %164 = arith.addf %162, %163 : vector<2x32xf32>
    %165 = math.tanh %164 : vector<2x32xf32>
    %166 = arith.mulf %159, %165 : vector<2x32xf32>
    %c6 = arith.constant 6 : index
    %c0_56 = arith.constant 0 : index
    %167 = vector.load %arg18[%c6, %c0_56] : memref<32x32xf32, #tpu.memory_space<vmem>>, vector<2x32xf32>
    tpu.vector_store %arg18[%c6, %c0_56], %166 {strides = array<i32>} : memref<32x32xf32, #tpu.memory_space<vmem>>, vector<2x32xf32>,
    %168 = vector.extract_strided_slice %63 {offsets = [0, 4, 0], sizes = [2, 1, 128], strides = [1, 1, 1]} : vector<2x16x128xf32> to vector<2x1x128xf32>
    %169 = vector.shape_cast %168 : vector<2x1x128xf32> to vector<2x128xf32>
    %cst_57 = arith.constant dense<0.000000e+00> : vector<2x128xf32>
    %170 = tpu.matmul %166, %64, %cst_57 {dimension_numbers = #tpu.dot_dimension_numbers<[1], [0], [0], [1], [0, 0, 1, 1], [], []>} : vector<2x32xf32>, vector<32x128xf32>, vector<2x128xf32> -> vector<2x128xf32>
    %171 = arith.addf %169, %170 : vector<2x128xf32>
    %172 = vector.broadcast %65 : vector<1x128xf32> to vector<2x128xf32>
    %173 = arith.addf %171, %172 : vector<2x128xf32>
    %174 = vector.extract_strided_slice %173 {offsets = [0, 0], sizes = [2, 96], strides = [1, 1]} : vector<2x128xf32> to vector<2x96xf32>
    %cst_58 = arith.constant 0.000000e+00 : f32
    %175 = vector.broadcast %cst_58 : f32 to vector<2x96xf32>
    %176 = arith.subf %175, %174 : vector<2x96xf32>
    %177 = math.exp %176 : vector<2x96xf32>
    %cst_59 = arith.constant 1.000000e+00 : f32
    %178 = vector.broadcast %cst_59 : f32 to vector<2x96xf32>
    %179 = arith.addf %178, %177 : vector<2x96xf32>
    %cst_60 = arith.constant 1.000000e+00 : f32
    %180 = vector.broadcast %cst_60 : f32 to vector<2x96xf32>
    %181 = arith.divf %180, %179 : vector<2x96xf32>
    %182 = vector.extract_strided_slice %181 {offsets = [0, 0], sizes = [2, 32], strides = [1, 1]} : vector<2x96xf32> to vector<2x32xf32>
    %183 = vector.extract_strided_slice %181 {offsets = [0, 32], sizes = [2, 32], strides = [1, 1]} : vector<2x96xf32> to vector<2x32xf32>
    %184 = vector.extract_strided_slice %181 {offsets = [0, 64], sizes = [2, 32], strides = [1, 1]} : vector<2x96xf32> to vector<2x32xf32>
    %185 = vector.extract_strided_slice %173 {offsets = [0, 96], sizes = [2, 32], strides = [1, 1]} : vector<2x128xf32> to vector<2x32xf32>
    %186 = math.tanh %185 : vector<2x32xf32>
    %187 = arith.mulf %183, %164 : vector<2x32xf32>
    %188 = arith.mulf %182, %186 : vector<2x32xf32>
    %189 = arith.addf %187, %188 : vector<2x32xf32>
    %190 = math.tanh %189 : vector<2x32xf32>
    %191 = arith.mulf %184, %190 : vector<2x32xf32>
    %c8 = arith.constant 8 : index
    %c0_61 = arith.constant 0 : index
    %192 = vector.load %arg18[%c8, %c0_61] : memref<32x32xf32, #tpu.memory_space<vmem>>, vector<2x32xf32>
    tpu.vector_store %arg18[%c8, %c0_61], %191 {strides = array<i32>} : memref<32x32xf32, #tpu.memory_space<vmem>>, vector<2x32xf32>,
    %193 = vector.extract_strided_slice %63 {offsets = [0, 5, 0], sizes = [2, 1, 128], strides = [1, 1, 1]} : vector<2x16x128xf32> to vector<2x1x128xf32>
    %194 = vector.shape_cast %193 : vector<2x1x128xf32> to vector<2x128xf32>
    %cst_62 = arith.constant dense<0.000000e+00> : vector<2x128xf32>
    %195 = tpu.matmul %191, %64, %cst_62 {dimension_numbers = #tpu.dot_dimension_numbers<[1], [0], [0], [1], [0, 0, 1, 1], [], []>} : vector<2x32xf32>, vector<32x128xf32>, vector<2x128xf32> -> vector<2x128xf32>
    %196 = arith.addf %194, %195 : vector<2x128xf32>
    %197 = vector.broadcast %65 : vector<1x128xf32> to vector<2x128xf32>
    %198 = arith.addf %196, %197 : vector<2x128xf32>
    %199 = vector.extract_strided_slice %198 {offsets = [0, 0], sizes = [2, 96], strides = [1, 1]} : vector<2x128xf32> to vector<2x96xf32>
    %cst_63 = arith.constant 0.000000e+00 : f32
    %200 = vector.broadcast %cst_63 : f32 to vector<2x96xf32>
    %201 = arith.subf %200, %199 : vector<2x96xf32>
    %202 = math.exp %201 : vector<2x96xf32>
    %cst_64 = arith.constant 1.000000e+00 : f32
    %203 = vector.broadcast %cst_64 : f32 to vector<2x96xf32>
    %204 = arith.addf %203, %202 : vector<2x96xf32>
    %cst_65 = arith.constant 1.000000e+00 : f32
    %205 = vector.broadcast %cst_65 : f32 to vector<2x96xf32>
    %206 = arith.divf %205, %204 : vector<2x96xf32>
    %207 = vector.extract_strided_slice %206 {offsets = [0, 0], sizes = [2, 32], strides = [1, 1]} : vector<2x96xf32> to vector<2x32xf32>
    %208 = vector.extract_strided_slice %206 {offsets = [0, 32], sizes = [2, 32], strides = [1, 1]} : vector<2x96xf32> to vector<2x32xf32>
    %209 = vector.extract_strided_slice %206 {offsets = [0, 64], sizes = [2, 32], strides = [1, 1]} : vector<2x96xf32> to vector<2x32xf32>
    %210 = vector.extract_strided_slice %198 {offsets = [0, 96], sizes = [2, 32], strides = [1, 1]} : vector<2x128xf32> to vector<2x32xf32>
    %211 = math.tanh %210 : vector<2x32xf32>
    %212 = arith.mulf %208, %189 : vector<2x32xf32>
    %213 = arith.mulf %207, %211 : vector<2x32xf32>
    %214 = arith.addf %212, %213 : vector<2x32xf32>
    %215 = math.tanh %214 : vector<2x32xf32>
    %216 = arith.mulf %209, %215 : vector<2x32xf32>
    %c10 = arith.constant 10 : index
    %c0_66 = arith.constant 0 : index
    %217 = vector.load %arg18[%c10, %c0_66] : memref<32x32xf32, #tpu.memory_space<vmem>>, vector<2x32xf32>
    tpu.vector_store %arg18[%c10, %c0_66], %216 {strides = array<i32>} : memref<32x32xf32, #tpu.memory_space<vmem>>, vector<2x32xf32>,
    %218 = vector.extract_strided_slice %63 {offsets = [0, 6, 0], sizes = [2, 1, 128], strides = [1, 1, 1]} : vector<2x16x128xf32> to vector<2x1x128xf32>
    %219 = vector.shape_cast %218 : vector<2x1x128xf32> to vector<2x128xf32>
    %cst_67 = arith.constant dense<0.000000e+00> : vector<2x128xf32>
    %220 = tpu.matmul %216, %64, %cst_67 {dimension_numbers = #tpu.dot_dimension_numbers<[1], [0], [0], [1], [0, 0, 1, 1], [], []>} : vector<2x32xf32>, vector<32x128xf32>, vector<2x128xf32> -> vector<2x128xf32>
    %221 = arith.addf %219, %220 : vector<2x128xf32>
    %222 = vector.broadcast %65 : vector<1x128xf32> to vector<2x128xf32>
    %223 = arith.addf %221, %222 : vector<2x128xf32>
    %224 = vector.extract_strided_slice %223 {offsets = [0, 0], sizes = [2, 96], strides = [1, 1]} : vector<2x128xf32> to vector<2x96xf32>
    %cst_68 = arith.constant 0.000000e+00 : f32
    %225 = vector.broadcast %cst_68 : f32 to vector<2x96xf32>
    %226 = arith.subf %225, %224 : vector<2x96xf32>
    %227 = math.exp %226 : vector<2x96xf32>
    %cst_69 = arith.constant 1.000000e+00 : f32
    %228 = vector.broadcast %cst_69 : f32 to vector<2x96xf32>
    %229 = arith.addf %228, %227 : vector<2x96xf32>
    %cst_70 = arith.constant 1.000000e+00 : f32
    %230 = vector.broadcast %cst_70 : f32 to vector<2x96xf32>
    %231 = arith.divf %230, %229 : vector<2x96xf32>
    %232 = vector.extract_strided_slice %231 {offsets = [0, 0], sizes = [2, 32], strides = [1, 1]} : vector<2x96xf32> to vector<2x32xf32>
    %233 = vector.extract_strided_slice %231 {offsets = [0, 32], sizes = [2, 32], strides = [1, 1]} : vector<2x96xf32> to vector<2x32xf32>
    %234 = vector.extract_strided_slice %231 {offsets = [0, 64], sizes = [2, 32], strides = [1, 1]} : vector<2x96xf32> to vector<2x32xf32>
    %235 = vector.extract_strided_slice %223 {offsets = [0, 96], sizes = [2, 32], strides = [1, 1]} : vector<2x128xf32> to vector<2x32xf32>
    %236 = math.tanh %235 : vector<2x32xf32>
    %237 = arith.mulf %233, %214 : vector<2x32xf32>
    %238 = arith.mulf %232, %236 : vector<2x32xf32>
    %239 = arith.addf %237, %238 : vector<2x32xf32>
    %240 = math.tanh %239 : vector<2x32xf32>
    %241 = arith.mulf %234, %240 : vector<2x32xf32>
    %c12 = arith.constant 12 : index
    %c0_71 = arith.constant 0 : index
    %242 = vector.load %arg18[%c12, %c0_71] : memref<32x32xf32, #tpu.memory_space<vmem>>, vector<2x32xf32>
    tpu.vector_store %arg18[%c12, %c0_71], %241 {strides = array<i32>} : memref<32x32xf32, #tpu.memory_space<vmem>>, vector<2x32xf32>,
    %243 = vector.extract_strided_slice %63 {offsets = [0, 7, 0], sizes = [2, 1, 128], strides = [1, 1, 1]} : vector<2x16x128xf32> to vector<2x1x128xf32>
    %244 = vector.shape_cast %243 : vector<2x1x128xf32> to vector<2x128xf32>
    %cst_72 = arith.constant dense<0.000000e+00> : vector<2x128xf32>
    %245 = tpu.matmul %241, %64, %cst_72 {dimension_numbers = #tpu.dot_dimension_numbers<[1], [0], [0], [1], [0, 0, 1, 1], [], []>} : vector<2x32xf32>, vector<32x128xf32>, vector<2x128xf32> -> vector<2x128xf32>
    %246 = arith.addf %244, %245 : vector<2x128xf32>
    %247 = vector.broadcast %65 : vector<1x128xf32> to vector<2x128xf32>
    %248 = arith.addf %246, %247 : vector<2x128xf32>
    %249 = vector.extract_strided_slice %248 {offsets = [0, 0], sizes = [2, 96], strides = [1, 1]} : vector<2x128xf32> to vector<2x96xf32>
    %cst_73 = arith.constant 0.000000e+00 : f32
    %250 = vector.broadcast %cst_73 : f32 to vector<2x96xf32>
    %251 = arith.subf %250, %249 : vector<2x96xf32>
    %252 = math.exp %251 : vector<2x96xf32>
    %cst_74 = arith.constant 1.000000e+00 : f32
    %253 = vector.broadcast %cst_74 : f32 to vector<2x96xf32>
    %254 = arith.addf %253, %252 : vector<2x96xf32>
    %cst_75 = arith.constant 1.000000e+00 : f32
    %255 = vector.broadcast %cst_75 : f32 to vector<2x96xf32>
    %256 = arith.divf %255, %254 : vector<2x96xf32>
    %257 = vector.extract_strided_slice %256 {offsets = [0, 0], sizes = [2, 32], strides = [1, 1]} : vector<2x96xf32> to vector<2x32xf32>
    %258 = vector.extract_strided_slice %256 {offsets = [0, 32], sizes = [2, 32], strides = [1, 1]} : vector<2x96xf32> to vector<2x32xf32>
    %259 = vector.extract_strided_slice %256 {offsets = [0, 64], sizes = [2, 32], strides = [1, 1]} : vector<2x96xf32> to vector<2x32xf32>
    %260 = vector.extract_strided_slice %248 {offsets = [0, 96], sizes = [2, 32], strides = [1, 1]} : vector<2x128xf32> to vector<2x32xf32>
    %261 = math.tanh %260 : vector<2x32xf32>
    %262 = arith.mulf %258, %239 : vector<2x32xf32>
    %263 = arith.mulf %257, %261 : vector<2x32xf32>
    %264 = arith.addf %262, %263 : vector<2x32xf32>
    %265 = math.tanh %264 : vector<2x32xf32>
    %266 = arith.mulf %259, %265 : vector<2x32xf32>
    %c14 = arith.constant 14 : index
    %c0_76 = arith.constant 0 : index
    %267 = vector.load %arg18[%c14, %c0_76] : memref<32x32xf32, #tpu.memory_space<vmem>>, vector<2x32xf32>
    tpu.vector_store %arg18[%c14, %c0_76], %266 {strides = array<i32>} : memref<32x32xf32, #tpu.memory_space<vmem>>, vector<2x32xf32>,
    %268 = vector.extract_strided_slice %63 {offsets = [0, 8, 0], sizes = [2, 1, 128], strides = [1, 1, 1]} : vector<2x16x128xf32> to vector<2x1x128xf32>
    %269 = vector.shape_cast %268 : vector<2x1x128xf32> to vector<2x128xf32>
    %cst_77 = arith.constant dense<0.000000e+00> : vector<2x128xf32>
    %270 = tpu.matmul %266, %64, %cst_77 {dimension_numbers = #tpu.dot_dimension_numbers<[1], [0], [0], [1], [0, 0, 1, 1], [], []>} : vector<2x32xf32>, vector<32x128xf32>, vector<2x128xf32> -> vector<2x128xf32>
    %271 = arith.addf %269, %270 : vector<2x128xf32>
    %272 = vector.broadcast %65 : vector<1x128xf32> to vector<2x128xf32>
    %273 = arith.addf %271, %272 : vector<2x128xf32>
    %274 = vector.extract_strided_slice %273 {offsets = [0, 0], sizes = [2, 96], strides = [1, 1]} : vector<2x128xf32> to vector<2x96xf32>
    %cst_78 = arith.constant 0.000000e+00 : f32
    %275 = vector.broadcast %cst_78 : f32 to vector<2x96xf32>
    %276 = arith.subf %275, %274 : vector<2x96xf32>
    %277 = math.exp %276 : vector<2x96xf32>
    %cst_79 = arith.constant 1.000000e+00 : f32
    %278 = vector.broadcast %cst_79 : f32 to vector<2x96xf32>
    %279 = arith.addf %278, %277 : vector<2x96xf32>
    %cst_80 = arith.constant 1.000000e+00 : f32
    %280 = vector.broadcast %cst_80 : f32 to vector<2x96xf32>
    %281 = arith.divf %280, %279 : vector<2x96xf32>
    %282 = vector.extract_strided_slice %281 {offsets = [0, 0], sizes = [2, 32], strides = [1, 1]} : vector<2x96xf32> to vector<2x32xf32>
    %283 = vector.extract_strided_slice %281 {offsets = [0, 32], sizes = [2, 32], strides = [1, 1]} : vector<2x96xf32> to vector<2x32xf32>
    %284 = vector.extract_strided_slice %281 {offsets = [0, 64], sizes = [2, 32], strides = [1, 1]} : vector<2x96xf32> to vector<2x32xf32>
    %285 = vector.extract_strided_slice %273 {offsets = [0, 96], sizes = [2, 32], strides = [1, 1]} : vector<2x128xf32> to vector<2x32xf32>
    %286 = math.tanh %285 : vector<2x32xf32>
    %287 = arith.mulf %283, %264 : vector<2x32xf32>
    %288 = arith.mulf %282, %286 : vector<2x32xf32>
    %289 = arith.addf %287, %288 : vector<2x32xf32>
    %290 = math.tanh %289 : vector<2x32xf32>
    %291 = arith.mulf %284, %290 : vector<2x32xf32>
    %c16 = arith.constant 16 : index
    %c0_81 = arith.constant 0 : index
    %292 = vector.load %arg18[%c16, %c0_81] : memref<32x32xf32, #tpu.memory_space<vmem>>, vector<2x32xf32>
    tpu.vector_store %arg18[%c16, %c0_81], %291 {strides = array<i32>} : memref<32x32xf32, #tpu.memory_space<vmem>>, vector<2x32xf32>,
    %293 = vector.extract_strided_slice %63 {offsets = [0, 9, 0], sizes = [2, 1, 128], strides = [1, 1, 1]} : vector<2x16x128xf32> to vector<2x1x128xf32>
    %294 = vector.shape_cast %293 : vector<2x1x128xf32> to vector<2x128xf32>
    %cst_82 = arith.constant dense<0.000000e+00> : vector<2x128xf32>
    %295 = tpu.matmul %291, %64, %cst_82 {dimension_numbers = #tpu.dot_dimension_numbers<[1], [0], [0], [1], [0, 0, 1, 1], [], []>} : vector<2x32xf32>, vector<32x128xf32>, vector<2x128xf32> -> vector<2x128xf32>
    %296 = arith.addf %294, %295 : vector<2x128xf32>
    %297 = vector.broadcast %65 : vector<1x128xf32> to vector<2x128xf32>
    %298 = arith.addf %296, %297 : vector<2x128xf32>
    %299 = vector.extract_strided_slice %298 {offsets = [0, 0], sizes = [2, 96], strides = [1, 1]} : vector<2x128xf32> to vector<2x96xf32>
    %cst_83 = arith.constant 0.000000e+00 : f32
    %300 = vector.broadcast %cst_83 : f32 to vector<2x96xf32>
    %301 = arith.subf %300, %299 : vector<2x96xf32>
    %302 = math.exp %301 : vector<2x96xf32>
    %cst_84 = arith.constant 1.000000e+00 : f32
    %303 = vector.broadcast %cst_84 : f32 to vector<2x96xf32>
    %304 = arith.addf %303, %302 : vector<2x96xf32>
    %cst_85 = arith.constant 1.000000e+00 : f32
    %305 = vector.broadcast %cst_85 : f32 to vector<2x96xf32>
    %306 = arith.divf %305, %304 : vector<2x96xf32>
    %307 = vector.extract_strided_slice %306 {offsets = [0, 0], sizes = [2, 32], strides = [1, 1]} : vector<2x96xf32> to vector<2x32xf32>
    %308 = vector.extract_strided_slice %306 {offsets = [0, 32], sizes = [2, 32], strides = [1, 1]} : vector<2x96xf32> to vector<2x32xf32>
    %309 = vector.extract_strided_slice %306 {offsets = [0, 64], sizes = [2, 32], strides = [1, 1]} : vector<2x96xf32> to vector<2x32xf32>
    %310 = vector.extract_strided_slice %298 {offsets = [0, 96], sizes = [2, 32], strides = [1, 1]} : vector<2x128xf32> to vector<2x32xf32>
    %311 = math.tanh %310 : vector<2x32xf32>
    %312 = arith.mulf %308, %289 : vector<2x32xf32>
    %313 = arith.mulf %307, %311 : vector<2x32xf32>
    %314 = arith.addf %312, %313 : vector<2x32xf32>
    %315 = math.tanh %314 : vector<2x32xf32>
    %316 = arith.mulf %309, %315 : vector<2x32xf32>
    %c18 = arith.constant 18 : index
    %c0_86 = arith.constant 0 : index
    %317 = vector.load %arg18[%c18, %c0_86] : memref<32x32xf32, #tpu.memory_space<vmem>>, vector<2x32xf32>
    tpu.vector_store %arg18[%c18, %c0_86], %316 {strides = array<i32>} : memref<32x32xf32, #tpu.memory_space<vmem>>, vector<2x32xf32>,
    %318 = vector.extract_strided_slice %63 {offsets = [0, 10, 0], sizes = [2, 1, 128], strides = [1, 1, 1]} : vector<2x16x128xf32> to vector<2x1x128xf32>
    %319 = vector.shape_cast %318 : vector<2x1x128xf32> to vector<2x128xf32>
    %cst_87 = arith.constant dense<0.000000e+00> : vector<2x128xf32>
    %320 = tpu.matmul %316, %64, %cst_87 {dimension_numbers = #tpu.dot_dimension_numbers<[1], [0], [0], [1], [0, 0, 1, 1], [], []>} : vector<2x32xf32>, vector<32x128xf32>, vector<2x128xf32> -> vector<2x128xf32>
    %321 = arith.addf %319, %320 : vector<2x128xf32>
    %322 = vector.broadcast %65 : vector<1x128xf32> to vector<2x128xf32>
    %323 = arith.addf %321, %322 : vector<2x128xf32>
    %324 = vector.extract_strided_slice %323 {offsets = [0, 0], sizes = [2, 96], strides = [1, 1]} : vector<2x128xf32> to vector<2x96xf32>
    %cst_88 = arith.constant 0.000000e+00 : f32
    %325 = vector.broadcast %cst_88 : f32 to vector<2x96xf32>
    %326 = arith.subf %325, %324 : vector<2x96xf32>
    %327 = math.exp %326 : vector<2x96xf32>
    %cst_89 = arith.constant 1.000000e+00 : f32
    %328 = vector.broadcast %cst_89 : f32 to vector<2x96xf32>
    %329 = arith.addf %328, %327 : vector<2x96xf32>
    %cst_90 = arith.constant 1.000000e+00 : f32
    %330 = vector.broadcast %cst_90 : f32 to vector<2x96xf32>
    %331 = arith.divf %330, %329 : vector<2x96xf32>
    %332 = vector.extract_strided_slice %331 {offsets = [0, 0], sizes = [2, 32], strides = [1, 1]} : vector<2x96xf32> to vector<2x32xf32>
    %333 = vector.extract_strided_slice %331 {offsets = [0, 32], sizes = [2, 32], strides = [1, 1]} : vector<2x96xf32> to vector<2x32xf32>
    %334 = vector.extract_strided_slice %331 {offsets = [0, 64], sizes = [2, 32], strides = [1, 1]} : vector<2x96xf32> to vector<2x32xf32>
    %335 = vector.extract_strided_slice %323 {offsets = [0, 96], sizes = [2, 32], strides = [1, 1]} : vector<2x128xf32> to vector<2x32xf32>
    %336 = math.tanh %335 : vector<2x32xf32>
    %337 = arith.mulf %333, %314 : vector<2x32xf32>
    %338 = arith.mulf %332, %336 : vector<2x32xf32>
    %339 = arith.addf %337, %338 : vector<2x32xf32>
    %340 = math.tanh %339 : vector<2x32xf32>
    %341 = arith.mulf %334, %340 : vector<2x32xf32>
    %c20 = arith.constant 20 : index
    %c0_91 = arith.constant 0 : index
    %342 = vector.load %arg18[%c20, %c0_91] : memref<32x32xf32, #tpu.memory_space<vmem>>, vector<2x32xf32>
    tpu.vector_store %arg18[%c20, %c0_91], %341 {strides = array<i32>} : memref<32x32xf32, #tpu.memory_space<vmem>>, vector<2x32xf32>,
    %343 = vector.extract_strided_slice %63 {offsets = [0, 11, 0], sizes = [2, 1, 128], strides = [1, 1, 1]} : vector<2x16x128xf32> to vector<2x1x128xf32>
    %344 = vector.shape_cast %343 : vector<2x1x128xf32> to vector<2x128xf32>
    %cst_92 = arith.constant dense<0.000000e+00> : vector<2x128xf32>
    %345 = tpu.matmul %341, %64, %cst_92 {dimension_numbers = #tpu.dot_dimension_numbers<[1], [0], [0], [1], [0, 0, 1, 1], [], []>} : vector<2x32xf32>, vector<32x128xf32>, vector<2x128xf32> -> vector<2x128xf32>
    %346 = arith.addf %344, %345 : vector<2x128xf32>
    %347 = vector.broadcast %65 : vector<1x128xf32> to vector<2x128xf32>
    %348 = arith.addf %346, %347 : vector<2x128xf32>
    %349 = vector.extract_strided_slice %348 {offsets = [0, 0], sizes = [2, 96], strides = [1, 1]} : vector<2x128xf32> to vector<2x96xf32>
    %cst_93 = arith.constant 0.000000e+00 : f32
    %350 = vector.broadcast %cst_93 : f32 to vector<2x96xf32>
    %351 = arith.subf %350, %349 : vector<2x96xf32>
    %352 = math.exp %351 : vector<2x96xf32>
    %cst_94 = arith.constant 1.000000e+00 : f32
    %353 = vector.broadcast %cst_94 : f32 to vector<2x96xf32>
    %354 = arith.addf %353, %352 : vector<2x96xf32>
    %cst_95 = arith.constant 1.000000e+00 : f32
    %355 = vector.broadcast %cst_95 : f32 to vector<2x96xf32>
    %356 = arith.divf %355, %354 : vector<2x96xf32>
    %357 = vector.extract_strided_slice %356 {offsets = [0, 0], sizes = [2, 32], strides = [1, 1]} : vector<2x96xf32> to vector<2x32xf32>
    %358 = vector.extract_strided_slice %356 {offsets = [0, 32], sizes = [2, 32], strides = [1, 1]} : vector<2x96xf32> to vector<2x32xf32>
    %359 = vector.extract_strided_slice %356 {offsets = [0, 64], sizes = [2, 32], strides = [1, 1]} : vector<2x96xf32> to vector<2x32xf32>
    %360 = vector.extract_strided_slice %348 {offsets = [0, 96], sizes = [2, 32], strides = [1, 1]} : vector<2x128xf32> to vector<2x32xf32>
    %361 = math.tanh %360 : vector<2x32xf32>
    %362 = arith.mulf %358, %339 : vector<2x32xf32>
    %363 = arith.mulf %357, %361 : vector<2x32xf32>
    %364 = arith.addf %362, %363 : vector<2x32xf32>
    %365 = math.tanh %364 : vector<2x32xf32>
    %366 = arith.mulf %359, %365 : vector<2x32xf32>
    %c22 = arith.constant 22 : index
    %c0_96 = arith.constant 0 : index
    %367 = vector.load %arg18[%c22, %c0_96] : memref<32x32xf32, #tpu.memory_space<vmem>>, vector<2x32xf32>
    tpu.vector_store %arg18[%c22, %c0_96], %366 {strides = array<i32>} : memref<32x32xf32, #tpu.memory_space<vmem>>, vector<2x32xf32>,
    %368 = vector.extract_strided_slice %63 {offsets = [0, 12, 0], sizes = [2, 1, 128], strides = [1, 1, 1]} : vector<2x16x128xf32> to vector<2x1x128xf32>
    %369 = vector.shape_cast %368 : vector<2x1x128xf32> to vector<2x128xf32>
    %cst_97 = arith.constant dense<0.000000e+00> : vector<2x128xf32>
    %370 = tpu.matmul %366, %64, %cst_97 {dimension_numbers = #tpu.dot_dimension_numbers<[1], [0], [0], [1], [0, 0, 1, 1], [], []>} : vector<2x32xf32>, vector<32x128xf32>, vector<2x128xf32> -> vector<2x128xf32>
    %371 = arith.addf %369, %370 : vector<2x128xf32>
    %372 = vector.broadcast %65 : vector<1x128xf32> to vector<2x128xf32>
    %373 = arith.addf %371, %372 : vector<2x128xf32>
    %374 = vector.extract_strided_slice %373 {offsets = [0, 0], sizes = [2, 96], strides = [1, 1]} : vector<2x128xf32> to vector<2x96xf32>
    %cst_98 = arith.constant 0.000000e+00 : f32
    %375 = vector.broadcast %cst_98 : f32 to vector<2x96xf32>
    %376 = arith.subf %375, %374 : vector<2x96xf32>
    %377 = math.exp %376 : vector<2x96xf32>
    %cst_99 = arith.constant 1.000000e+00 : f32
    %378 = vector.broadcast %cst_99 : f32 to vector<2x96xf32>
    %379 = arith.addf %378, %377 : vector<2x96xf32>
    %cst_100 = arith.constant 1.000000e+00 : f32
    %380 = vector.broadcast %cst_100 : f32 to vector<2x96xf32>
    %381 = arith.divf %380, %379 : vector<2x96xf32>
    %382 = vector.extract_strided_slice %381 {offsets = [0, 0], sizes = [2, 32], strides = [1, 1]} : vector<2x96xf32> to vector<2x32xf32>
    %383 = vector.extract_strided_slice %381 {offsets = [0, 32], sizes = [2, 32], strides = [1, 1]} : vector<2x96xf32> to vector<2x32xf32>
    %384 = vector.extract_strided_slice %381 {offsets = [0, 64], sizes = [2, 32], strides = [1, 1]} : vector<2x96xf32> to vector<2x32xf32>
    %385 = vector.extract_strided_slice %373 {offsets = [0, 96], sizes = [2, 32], strides = [1, 1]} : vector<2x128xf32> to vector<2x32xf32>
    %386 = math.tanh %385 : vector<2x32xf32>
    %387 = arith.mulf %383, %364 : vector<2x32xf32>
    %388 = arith.mulf %382, %386 : vector<2x32xf32>
    %389 = arith.addf %387, %388 : vector<2x32xf32>
    %390 = math.tanh %389 : vector<2x32xf32>
    %391 = arith.mulf %384, %390 : vector<2x32xf32>
    %c24 = arith.constant 24 : index
    %c0_101 = arith.constant 0 : index
    %392 = vector.load %arg18[%c24, %c0_101] : memref<32x32xf32, #tpu.memory_space<vmem>>, vector<2x32xf32>
    tpu.vector_store %arg18[%c24, %c0_101], %391 {strides = array<i32>} : memref<32x32xf32, #tpu.memory_space<vmem>>, vector<2x32xf32>,
    %393 = vector.extract_strided_slice %63 {offsets = [0, 13, 0], sizes = [2, 1, 128], strides = [1, 1, 1]} : vector<2x16x128xf32> to vector<2x1x128xf32>
    %394 = vector.shape_cast %393 : vector<2x1x128xf32> to vector<2x128xf32>
    %cst_102 = arith.constant dense<0.000000e+00> : vector<2x128xf32>
    %395 = tpu.matmul %391, %64, %cst_102 {dimension_numbers = #tpu.dot_dimension_numbers<[1], [0], [0], [1], [0, 0, 1, 1], [], []>} : vector<2x32xf32>, vector<32x128xf32>, vector<2x128xf32> -> vector<2x128xf32>
    %396 = arith.addf %394, %395 : vector<2x128xf32>
    %397 = vector.broadcast %65 : vector<1x128xf32> to vector<2x128xf32>
    %398 = arith.addf %396, %397 : vector<2x128xf32>
    %399 = vector.extract_strided_slice %398 {offsets = [0, 0], sizes = [2, 96], strides = [1, 1]} : vector<2x128xf32> to vector<2x96xf32>
    %cst_103 = arith.constant 0.000000e+00 : f32
    %400 = vector.broadcast %cst_103 : f32 to vector<2x96xf32>
    %401 = arith.subf %400, %399 : vector<2x96xf32>
    %402 = math.exp %401 : vector<2x96xf32>
    %cst_104 = arith.constant 1.000000e+00 : f32
    %403 = vector.broadcast %cst_104 : f32 to vector<2x96xf32>
    %404 = arith.addf %403, %402 : vector<2x96xf32>
    %cst_105 = arith.constant 1.000000e+00 : f32
    %405 = vector.broadcast %cst_105 : f32 to vector<2x96xf32>
    %406 = arith.divf %405, %404 : vector<2x96xf32>
    %407 = vector.extract_strided_slice %406 {offsets = [0, 0], sizes = [2, 32], strides = [1, 1]} : vector<2x96xf32> to vector<2x32xf32>
    %408 = vector.extract_strided_slice %406 {offsets = [0, 32], sizes = [2, 32], strides = [1, 1]} : vector<2x96xf32> to vector<2x32xf32>
    %409 = vector.extract_strided_slice %406 {offsets = [0, 64], sizes = [2, 32], strides = [1, 1]} : vector<2x96xf32> to vector<2x32xf32>
    %410 = vector.extract_strided_slice %398 {offsets = [0, 96], sizes = [2, 32], strides = [1, 1]} : vector<2x128xf32> to vector<2x32xf32>
    %411 = math.tanh %410 : vector<2x32xf32>
    %412 = arith.mulf %408, %389 : vector<2x32xf32>
    %413 = arith.mulf %407, %411 : vector<2x32xf32>
    %414 = arith.addf %412, %413 : vector<2x32xf32>
    %415 = math.tanh %414 : vector<2x32xf32>
    %416 = arith.mulf %409, %415 : vector<2x32xf32>
    %c26 = arith.constant 26 : index
    %c0_106 = arith.constant 0 : index
    %417 = vector.load %arg18[%c26, %c0_106] : memref<32x32xf32, #tpu.memory_space<vmem>>, vector<2x32xf32>
    tpu.vector_store %arg18[%c26, %c0_106], %416 {strides = array<i32>} : memref<32x32xf32, #tpu.memory_space<vmem>>, vector<2x32xf32>,
    %418 = vector.extract_strided_slice %63 {offsets = [0, 14, 0], sizes = [2, 1, 128], strides = [1, 1, 1]} : vector<2x16x128xf32> to vector<2x1x128xf32>
    %419 = vector.shape_cast %418 : vector<2x1x128xf32> to vector<2x128xf32>
    %cst_107 = arith.constant dense<0.000000e+00> : vector<2x128xf32>
    %420 = tpu.matmul %416, %64, %cst_107 {dimension_numbers = #tpu.dot_dimension_numbers<[1], [0], [0], [1], [0, 0, 1, 1], [], []>} : vector<2x32xf32>, vector<32x128xf32>, vector<2x128xf32> -> vector<2x128xf32>
    %421 = arith.addf %419, %420 : vector<2x128xf32>
    %422 = vector.broadcast %65 : vector<1x128xf32> to vector<2x128xf32>
    %423 = arith.addf %421, %422 : vector<2x128xf32>
    %424 = vector.extract_strided_slice %423 {offsets = [0, 0], sizes = [2, 96], strides = [1, 1]} : vector<2x128xf32> to vector<2x96xf32>
    %cst_108 = arith.constant 0.000000e+00 : f32
    %425 = vector.broadcast %cst_108 : f32 to vector<2x96xf32>
    %426 = arith.subf %425, %424 : vector<2x96xf32>
    %427 = math.exp %426 : vector<2x96xf32>
    %cst_109 = arith.constant 1.000000e+00 : f32
    %428 = vector.broadcast %cst_109 : f32 to vector<2x96xf32>
    %429 = arith.addf %428, %427 : vector<2x96xf32>
    %cst_110 = arith.constant 1.000000e+00 : f32
    %430 = vector.broadcast %cst_110 : f32 to vector<2x96xf32>
    %431 = arith.divf %430, %429 : vector<2x96xf32>
    %432 = vector.extract_strided_slice %431 {offsets = [0, 0], sizes = [2, 32], strides = [1, 1]} : vector<2x96xf32> to vector<2x32xf32>
    %433 = vector.extract_strided_slice %431 {offsets = [0, 32], sizes = [2, 32], strides = [1, 1]} : vector<2x96xf32> to vector<2x32xf32>
    %434 = vector.extract_strided_slice %431 {offsets = [0, 64], sizes = [2, 32], strides = [1, 1]} : vector<2x96xf32> to vector<2x32xf32>
    %435 = vector.extract_strided_slice %423 {offsets = [0, 96], sizes = [2, 32], strides = [1, 1]} : vector<2x128xf32> to vector<2x32xf32>
    %436 = math.tanh %435 : vector<2x32xf32>
    %437 = arith.mulf %433, %414 : vector<2x32xf32>
    %438 = arith.mulf %432, %436 : vector<2x32xf32>
    %439 = arith.addf %437, %438 : vector<2x32xf32>
    %440 = math.tanh %439 : vector<2x32xf32>
    %441 = arith.mulf %434, %440 : vector<2x32xf32>
    %c28 = arith.constant 28 : index
    %c0_111 = arith.constant 0 : index
    %442 = vector.load %arg18[%c28, %c0_111] : memref<32x32xf32, #tpu.memory_space<vmem>>, vector<2x32xf32>
    tpu.vector_store %arg18[%c28, %c0_111], %441 {strides = array<i32>} : memref<32x32xf32, #tpu.memory_space<vmem>>, vector<2x32xf32>,
    %443 = vector.extract_strided_slice %63 {offsets = [0, 15, 0], sizes = [2, 1, 128], strides = [1, 1, 1]} : vector<2x16x128xf32> to vector<2x1x128xf32>
    %444 = vector.shape_cast %443 : vector<2x1x128xf32> to vector<2x128xf32>
    %cst_112 = arith.constant dense<0.000000e+00> : vector<2x128xf32>
    %445 = tpu.matmul %441, %64, %cst_112 {dimension_numbers = #tpu.dot_dimension_numbers<[1], [0], [0], [1], [0, 0, 1, 1], [], []>} : vector<2x32xf32>, vector<32x128xf32>, vector<2x128xf32> -> vector<2x128xf32>
    %446 = arith.addf %444, %445 : vector<2x128xf32>
    %447 = vector.broadcast %65 : vector<1x128xf32> to vector<2x128xf32>
    %448 = arith.addf %446, %447 : vector<2x128xf32>
    %449 = vector.extract_strided_slice %448 {offsets = [0, 0], sizes = [2, 96], strides = [1, 1]} : vector<2x128xf32> to vector<2x96xf32>
    %cst_113 = arith.constant 0.000000e+00 : f32
    %450 = vector.broadcast %cst_113 : f32 to vector<2x96xf32>
    %451 = arith.subf %450, %449 : vector<2x96xf32>
    %452 = math.exp %451 : vector<2x96xf32>
    %cst_114 = arith.constant 1.000000e+00 : f32
    %453 = vector.broadcast %cst_114 : f32 to vector<2x96xf32>
    %454 = arith.addf %453, %452 : vector<2x96xf32>
    %cst_115 = arith.constant 1.000000e+00 : f32
    %455 = vector.broadcast %cst_115 : f32 to vector<2x96xf32>
    %456 = arith.divf %455, %454 : vector<2x96xf32>
    %457 = vector.extract_strided_slice %456 {offsets = [0, 0], sizes = [2, 32], strides = [1, 1]} : vector<2x96xf32> to vector<2x32xf32>
    %458 = vector.extract_strided_slice %456 {offsets = [0, 32], sizes = [2, 32], strides = [1, 1]} : vector<2x96xf32> to vector<2x32xf32>
    %459 = vector.extract_strided_slice %456 {offsets = [0, 64], sizes = [2, 32], strides = [1, 1]} : vector<2x96xf32> to vector<2x32xf32>
    %460 = vector.extract_strided_slice %448 {offsets = [0, 96], sizes = [2, 32], strides = [1, 1]} : vector<2x128xf32> to vector<2x32xf32>
    %461 = math.tanh %460 : vector<2x32xf32>
    %462 = arith.mulf %458, %439 : vector<2x32xf32>
    %463 = arith.mulf %457, %461 : vector<2x32xf32>
    %464 = arith.addf %462, %463 : vector<2x32xf32>
    %465 = math.tanh %464 : vector<2x32xf32>
    %466 = arith.mulf %459, %465 : vector<2x32xf32>
    %c30 = arith.constant 30 : index
    %c0_116 = arith.constant 0 : index
    %467 = vector.load %arg18[%c30, %c0_116] : memref<32x32xf32, #tpu.memory_space<vmem>>, vector<2x32xf32>
    tpu.vector_store %arg18[%c30, %c0_116], %466 {strides = array<i32>} : memref<32x32xf32, #tpu.memory_space<vmem>>, vector<2x32xf32>,
    %c0_117 = arith.constant 0 : index
    %c0_118 = arith.constant 0 : index
    %468 = vector.load %arg9[%c0_117, %c0_118] : memref<32x128xf32, #tpu.memory_space<vmem>>, vector<32x128xf32>
    %c0_119 = arith.constant 0 : index
    %c0_120 = arith.constant 0 : index
    %469 = vector.load %arg10[%c0_119, %c0_120] : memref<1x128xf32, #tpu.memory_space<vmem>>, vector<1x128xf32>
    %c0_121 = arith.constant 0 : index
    %c0_122 = arith.constant 0 : index
    %470 = vector.load %arg8[%c0_121, %c0_122] : memref<32x128xf32, #tpu.memory_space<vmem>>, vector<32x128xf32>
    %c0_123 = arith.constant 0 : index
    %c0_124 = arith.constant 0 : index
    %471 = vector.load %arg18[%c0_123, %c0_124] : memref<32x32xf32, #tpu.memory_space<vmem>>, vector<32x32xf32>
    %cst_125 = arith.constant dense<0.000000e+00> : vector<32x128xf32>
    %472 = tpu.matmul %471, %470, %cst_125 {dimension_numbers = #tpu.dot_dimension_numbers<[1], [0], [0], [1], [0, 0, 1, 1], [], []>} : vector<32x32xf32>, vector<32x128xf32>, vector<32x128xf32> -> vector<32x128xf32>
    %cst_126 = arith.constant 0.000000e+00 : f32
    %473 = vector.broadcast %cst_126 : f32 to vector<2x32xf32>
    %cst_127 = arith.constant 0.000000e+00 : f32
    %474 = vector.broadcast %cst_127 : f32 to vector<2x32xf32>
    %475 = vector.extract_strided_slice %472 {offsets = [0, 0], sizes = [2, 128], strides = [1, 1]} : vector<32x128xf32> to vector<2x128xf32>
    %cst_128 = arith.constant dense<0.000000e+00> : vector<2x128xf32>
    %476 = tpu.matmul %473, %468, %cst_128 {dimension_numbers = #tpu.dot_dimension_numbers<[1], [0], [0], [1], [0, 0, 1, 1], [], []>} : vector<2x32xf32>, vector<32x128xf32>, vector<2x128xf32> -> vector<2x128xf32>
    %477 = arith.addf %475, %476 : vector<2x128xf32>
    %478 = vector.broadcast %469 : vector<1x128xf32> to vector<2x128xf32>
    %479 = arith.addf %477, %478 : vector<2x128xf32>
    %480 = vector.extract_strided_slice %479 {offsets = [0, 0], sizes = [2, 96], strides = [1, 1]} : vector<2x128xf32> to vector<2x96xf32>
    %cst_129 = arith.constant 0.000000e+00 : f32
    %481 = vector.broadcast %cst_129 : f32 to vector<2x96xf32>
    %482 = arith.subf %481, %480 : vector<2x96xf32>
    %483 = math.exp %482 : vector<2x96xf32>
    %cst_130 = arith.constant 1.000000e+00 : f32
    %484 = vector.broadcast %cst_130 : f32 to vector<2x96xf32>
    %485 = arith.addf %484, %483 : vector<2x96xf32>
    %cst_131 = arith.constant 1.000000e+00 : f32
    %486 = vector.broadcast %cst_131 : f32 to vector<2x96xf32>
    %487 = arith.divf %486, %485 : vector<2x96xf32>
    %488 = vector.extract_strided_slice %487 {offsets = [0, 0], sizes = [2, 32], strides = [1, 1]} : vector<2x96xf32> to vector<2x32xf32>
    %489 = vector.extract_strided_slice %487 {offsets = [0, 32], sizes = [2, 32], strides = [1, 1]} : vector<2x96xf32> to vector<2x32xf32>
    %490 = vector.extract_strided_slice %487 {offsets = [0, 64], sizes = [2, 32], strides = [1, 1]} : vector<2x96xf32> to vector<2x32xf32>
    %491 = vector.extract_strided_slice %479 {offsets = [0, 96], sizes = [2, 32], strides = [1, 1]} : vector<2x128xf32> to vector<2x32xf32>
    %492 = math.tanh %491 : vector<2x32xf32>
    %493 = arith.mulf %489, %474 : vector<2x32xf32>
    %494 = arith.mulf %488, %492 : vector<2x32xf32>
    %495 = arith.addf %493, %494 : vector<2x32xf32>
    %496 = math.tanh %495 : vector<2x32xf32>
    %497 = arith.mulf %490, %496 : vector<2x32xf32>
    %498 = vector.extract_strided_slice %472 {offsets = [2, 0], sizes = [2, 128], strides = [1, 1]} : vector<32x128xf32> to vector<2x128xf32>
    %cst_132 = arith.constant dense<0.000000e+00> : vector<2x128xf32>
    %499 = tpu.matmul %497, %468, %cst_132 {dimension_numbers = #tpu.dot_dimension_numbers<[1], [0], [0], [1], [0, 0, 1, 1], [], []>} : vector<2x32xf32>, vector<32x128xf32>, vector<2x128xf32> -> vector<2x128xf32>
    %500 = arith.addf %498, %499 : vector<2x128xf32>
    %501 = vector.broadcast %469 : vector<1x128xf32> to vector<2x128xf32>
    %502 = arith.addf %500, %501 : vector<2x128xf32>
    %503 = vector.extract_strided_slice %502 {offsets = [0, 0], sizes = [2, 96], strides = [1, 1]} : vector<2x128xf32> to vector<2x96xf32>
    %cst_133 = arith.constant 0.000000e+00 : f32
    %504 = vector.broadcast %cst_133 : f32 to vector<2x96xf32>
    %505 = arith.subf %504, %503 : vector<2x96xf32>
    %506 = math.exp %505 : vector<2x96xf32>
    %cst_134 = arith.constant 1.000000e+00 : f32
    %507 = vector.broadcast %cst_134 : f32 to vector<2x96xf32>
    %508 = arith.addf %507, %506 : vector<2x96xf32>
    %cst_135 = arith.constant 1.000000e+00 : f32
    %509 = vector.broadcast %cst_135 : f32 to vector<2x96xf32>
    %510 = arith.divf %509, %508 : vector<2x96xf32>
    %511 = vector.extract_strided_slice %510 {offsets = [0, 0], sizes = [2, 32], strides = [1, 1]} : vector<2x96xf32> to vector<2x32xf32>
    %512 = vector.extract_strided_slice %510 {offsets = [0, 32], sizes = [2, 32], strides = [1, 1]} : vector<2x96xf32> to vector<2x32xf32>
    %513 = vector.extract_strided_slice %510 {offsets = [0, 64], sizes = [2, 32], strides = [1, 1]} : vector<2x96xf32> to vector<2x32xf32>
    %514 = vector.extract_strided_slice %502 {offsets = [0, 96], sizes = [2, 32], strides = [1, 1]} : vector<2x128xf32> to vector<2x32xf32>
    %515 = math.tanh %514 : vector<2x32xf32>
    %516 = arith.mulf %512, %495 : vector<2x32xf32>
    %517 = arith.mulf %511, %515 : vector<2x32xf32>
    %518 = arith.addf %516, %517 : vector<2x32xf32>
    %519 = math.tanh %518 : vector<2x32xf32>
    %520 = arith.mulf %513, %519 : vector<2x32xf32>
    %521 = vector.extract_strided_slice %472 {offsets = [4, 0], sizes = [2, 128], strides = [1, 1]} : vector<32x128xf32> to vector<2x128xf32>
    %cst_136 = arith.constant dense<0.000000e+00> : vector<2x128xf32>
    %522 = tpu.matmul %520, %468, %cst_136 {dimension_numbers = #tpu.dot_dimension_numbers<[1], [0], [0], [1], [0, 0, 1, 1], [], []>} : vector<2x32xf32>, vector<32x128xf32>, vector<2x128xf32> -> vector<2x128xf32>
    %523 = arith.addf %521, %522 : vector<2x128xf32>
    %524 = vector.broadcast %469 : vector<1x128xf32> to vector<2x128xf32>
    %525 = arith.addf %523, %524 : vector<2x128xf32>
    %526 = vector.extract_strided_slice %525 {offsets = [0, 0], sizes = [2, 96], strides = [1, 1]} : vector<2x128xf32> to vector<2x96xf32>
    %cst_137 = arith.constant 0.000000e+00 : f32
    %527 = vector.broadcast %cst_137 : f32 to vector<2x96xf32>
    %528 = arith.subf %527, %526 : vector<2x96xf32>
    %529 = math.exp %528 : vector<2x96xf32>
    %cst_138 = arith.constant 1.000000e+00 : f32
    %530 = vector.broadcast %cst_138 : f32 to vector<2x96xf32>
    %531 = arith.addf %530, %529 : vector<2x96xf32>
    %cst_139 = arith.constant 1.000000e+00 : f32
    %532 = vector.broadcast %cst_139 : f32 to vector<2x96xf32>
    %533 = arith.divf %532, %531 : vector<2x96xf32>
    %534 = vector.extract_strided_slice %533 {offsets = [0, 0], sizes = [2, 32], strides = [1, 1]} : vector<2x96xf32> to vector<2x32xf32>
    %535 = vector.extract_strided_slice %533 {offsets = [0, 32], sizes = [2, 32], strides = [1, 1]} : vector<2x96xf32> to vector<2x32xf32>
    %536 = vector.extract_strided_slice %533 {offsets = [0, 64], sizes = [2, 32], strides = [1, 1]} : vector<2x96xf32> to vector<2x32xf32>
    %537 = vector.extract_strided_slice %525 {offsets = [0, 96], sizes = [2, 32], strides = [1, 1]} : vector<2x128xf32> to vector<2x32xf32>
    %538 = math.tanh %537 : vector<2x32xf32>
    %539 = arith.mulf %535, %518 : vector<2x32xf32>
    %540 = arith.mulf %534, %538 : vector<2x32xf32>
    %541 = arith.addf %539, %540 : vector<2x32xf32>
    %542 = math.tanh %541 : vector<2x32xf32>
    %543 = arith.mulf %536, %542 : vector<2x32xf32>
    %544 = vector.extract_strided_slice %472 {offsets = [6, 0], sizes = [2, 128], strides = [1, 1]} : vector<32x128xf32> to vector<2x128xf32>
    %cst_140 = arith.constant dense<0.000000e+00> : vector<2x128xf32>
    %545 = tpu.matmul %543, %468, %cst_140 {dimension_numbers = #tpu.dot_dimension_numbers<[1], [0], [0], [1], [0, 0, 1, 1], [], []>} : vector<2x32xf32>, vector<32x128xf32>, vector<2x128xf32> -> vector<2x128xf32>
    %546 = arith.addf %544, %545 : vector<2x128xf32>
    %547 = vector.broadcast %469 : vector<1x128xf32> to vector<2x128xf32>
    %548 = arith.addf %546, %547 : vector<2x128xf32>
    %549 = vector.extract_strided_slice %548 {offsets = [0, 0], sizes = [2, 96], strides = [1, 1]} : vector<2x128xf32> to vector<2x96xf32>
    %cst_141 = arith.constant 0.000000e+00 : f32
    %550 = vector.broadcast %cst_141 : f32 to vector<2x96xf32>
    %551 = arith.subf %550, %549 : vector<2x96xf32>
    %552 = math.exp %551 : vector<2x96xf32>
    %cst_142 = arith.constant 1.000000e+00 : f32
    %553 = vector.broadcast %cst_142 : f32 to vector<2x96xf32>
    %554 = arith.addf %553, %552 : vector<2x96xf32>
    %cst_143 = arith.constant 1.000000e+00 : f32
    %555 = vector.broadcast %cst_143 : f32 to vector<2x96xf32>
    %556 = arith.divf %555, %554 : vector<2x96xf32>
    %557 = vector.extract_strided_slice %556 {offsets = [0, 0], sizes = [2, 32], strides = [1, 1]} : vector<2x96xf32> to vector<2x32xf32>
    %558 = vector.extract_strided_slice %556 {offsets = [0, 32], sizes = [2, 32], strides = [1, 1]} : vector<2x96xf32> to vector<2x32xf32>
    %559 = vector.extract_strided_slice %556 {offsets = [0, 64], sizes = [2, 32], strides = [1, 1]} : vector<2x96xf32> to vector<2x32xf32>
    %560 = vector.extract_strided_slice %548 {offsets = [0, 96], sizes = [2, 32], strides = [1, 1]} : vector<2x128xf32> to vector<2x32xf32>
    %561 = math.tanh %560 : vector<2x32xf32>
    %562 = arith.mulf %558, %541 : vector<2x32xf32>
    %563 = arith.mulf %557, %561 : vector<2x32xf32>
    %564 = arith.addf %562, %563 : vector<2x32xf32>
    %565 = math.tanh %564 : vector<2x32xf32>
    %566 = arith.mulf %559, %565 : vector<2x32xf32>
    %567 = vector.extract_strided_slice %472 {offsets = [8, 0], sizes = [2, 128], strides = [1, 1]} : vector<32x128xf32> to vector<2x128xf32>
    %cst_144 = arith.constant dense<0.000000e+00> : vector<2x128xf32>
    %568 = tpu.matmul %566, %468, %cst_144 {dimension_numbers = #tpu.dot_dimension_numbers<[1], [0], [0], [1], [0, 0, 1, 1], [], []>} : vector<2x32xf32>, vector<32x128xf32>, vector<2x128xf32> -> vector<2x128xf32>
    %569 = arith.addf %567, %568 : vector<2x128xf32>
    %570 = vector.broadcast %469 : vector<1x128xf32> to vector<2x128xf32>
    %571 = arith.addf %569, %570 : vector<2x128xf32>
    %572 = vector.extract_strided_slice %571 {offsets = [0, 0], sizes = [2, 96], strides = [1, 1]} : vector<2x128xf32> to vector<2x96xf32>
    %cst_145 = arith.constant 0.000000e+00 : f32
    %573 = vector.broadcast %cst_145 : f32 to vector<2x96xf32>
    %574 = arith.subf %573, %572 : vector<2x96xf32>
    %575 = math.exp %574 : vector<2x96xf32>
    %cst_146 = arith.constant 1.000000e+00 : f32
    %576 = vector.broadcast %cst_146 : f32 to vector<2x96xf32>
    %577 = arith.addf %576, %575 : vector<2x96xf32>
    %cst_147 = arith.constant 1.000000e+00 : f32
    %578 = vector.broadcast %cst_147 : f32 to vector<2x96xf32>
    %579 = arith.divf %578, %577 : vector<2x96xf32>
    %580 = vector.extract_strided_slice %579 {offsets = [0, 0], sizes = [2, 32], strides = [1, 1]} : vector<2x96xf32> to vector<2x32xf32>
    %581 = vector.extract_strided_slice %579 {offsets = [0, 32], sizes = [2, 32], strides = [1, 1]} : vector<2x96xf32> to vector<2x32xf32>
    %582 = vector.extract_strided_slice %579 {offsets = [0, 64], sizes = [2, 32], strides = [1, 1]} : vector<2x96xf32> to vector<2x32xf32>
    %583 = vector.extract_strided_slice %571 {offsets = [0, 96], sizes = [2, 32], strides = [1, 1]} : vector<2x128xf32> to vector<2x32xf32>
    %584 = math.tanh %583 : vector<2x32xf32>
    %585 = arith.mulf %581, %564 : vector<2x32xf32>
    %586 = arith.mulf %580, %584 : vector<2x32xf32>
    %587 = arith.addf %585, %586 : vector<2x32xf32>
    %588 = math.tanh %587 : vector<2x32xf32>
    %589 = arith.mulf %582, %588 : vector<2x32xf32>
    %590 = vector.extract_strided_slice %472 {offsets = [10, 0], sizes = [2, 128], strides = [1, 1]} : vector<32x128xf32> to vector<2x128xf32>
    %cst_148 = arith.constant dense<0.000000e+00> : vector<2x128xf32>
    %591 = tpu.matmul %589, %468, %cst_148 {dimension_numbers = #tpu.dot_dimension_numbers<[1], [0], [0], [1], [0, 0, 1, 1], [], []>} : vector<2x32xf32>, vector<32x128xf32>, vector<2x128xf32> -> vector<2x128xf32>
    %592 = arith.addf %590, %591 : vector<2x128xf32>
    %593 = vector.broadcast %469 : vector<1x128xf32> to vector<2x128xf32>
    %594 = arith.addf %592, %593 : vector<2x128xf32>
    %595 = vector.extract_strided_slice %594 {offsets = [0, 0], sizes = [2, 96], strides = [1, 1]} : vector<2x128xf32> to vector<2x96xf32>
    %cst_149 = arith.constant 0.000000e+00 : f32
    %596 = vector.broadcast %cst_149 : f32 to vector<2x96xf32>
    %597 = arith.subf %596, %595 : vector<2x96xf32>
    %598 = math.exp %597 : vector<2x96xf32>
    %cst_150 = arith.constant 1.000000e+00 : f32
    %599 = vector.broadcast %cst_150 : f32 to vector<2x96xf32>
    %600 = arith.addf %599, %598 : vector<2x96xf32>
    %cst_151 = arith.constant 1.000000e+00 : f32
    %601 = vector.broadcast %cst_151 : f32 to vector<2x96xf32>
    %602 = arith.divf %601, %600 : vector<2x96xf32>
    %603 = vector.extract_strided_slice %602 {offsets = [0, 0], sizes = [2, 32], strides = [1, 1]} : vector<2x96xf32> to vector<2x32xf32>
    %604 = vector.extract_strided_slice %602 {offsets = [0, 32], sizes = [2, 32], strides = [1, 1]} : vector<2x96xf32> to vector<2x32xf32>
    %605 = vector.extract_strided_slice %602 {offsets = [0, 64], sizes = [2, 32], strides = [1, 1]} : vector<2x96xf32> to vector<2x32xf32>
    %606 = vector.extract_strided_slice %594 {offsets = [0, 96], sizes = [2, 32], strides = [1, 1]} : vector<2x128xf32> to vector<2x32xf32>
    %607 = math.tanh %606 : vector<2x32xf32>
    %608 = arith.mulf %604, %587 : vector<2x32xf32>
    %609 = arith.mulf %603, %607 : vector<2x32xf32>
    %610 = arith.addf %608, %609 : vector<2x32xf32>
    %611 = math.tanh %610 : vector<2x32xf32>
    %612 = arith.mulf %605, %611 : vector<2x32xf32>
    %613 = vector.extract_strided_slice %472 {offsets = [12, 0], sizes = [2, 128], strides = [1, 1]} : vector<32x128xf32> to vector<2x128xf32>
    %cst_152 = arith.constant dense<0.000000e+00> : vector<2x128xf32>
    %614 = tpu.matmul %612, %468, %cst_152 {dimension_numbers = #tpu.dot_dimension_numbers<[1], [0], [0], [1], [0, 0, 1, 1], [], []>} : vector<2x32xf32>, vector<32x128xf32>, vector<2x128xf32> -> vector<2x128xf32>
    %615 = arith.addf %613, %614 : vector<2x128xf32>
    %616 = vector.broadcast %469 : vector<1x128xf32> to vector<2x128xf32>
    %617 = arith.addf %615, %616 : vector<2x128xf32>
    %618 = vector.extract_strided_slice %617 {offsets = [0, 0], sizes = [2, 96], strides = [1, 1]} : vector<2x128xf32> to vector<2x96xf32>
    %cst_153 = arith.constant 0.000000e+00 : f32
    %619 = vector.broadcast %cst_153 : f32 to vector<2x96xf32>
    %620 = arith.subf %619, %618 : vector<2x96xf32>
    %621 = math.exp %620 : vector<2x96xf32>
    %cst_154 = arith.constant 1.000000e+00 : f32
    %622 = vector.broadcast %cst_154 : f32 to vector<2x96xf32>
    %623 = arith.addf %622, %621 : vector<2x96xf32>
    %cst_155 = arith.constant 1.000000e+00 : f32
    %624 = vector.broadcast %cst_155 : f32 to vector<2x96xf32>
    %625 = arith.divf %624, %623 : vector<2x96xf32>
    %626 = vector.extract_strided_slice %625 {offsets = [0, 0], sizes = [2, 32], strides = [1, 1]} : vector<2x96xf32> to vector<2x32xf32>
    %627 = vector.extract_strided_slice %625 {offsets = [0, 32], sizes = [2, 32], strides = [1, 1]} : vector<2x96xf32> to vector<2x32xf32>
    %628 = vector.extract_strided_slice %625 {offsets = [0, 64], sizes = [2, 32], strides = [1, 1]} : vector<2x96xf32> to vector<2x32xf32>
    %629 = vector.extract_strided_slice %617 {offsets = [0, 96], sizes = [2, 32], strides = [1, 1]} : vector<2x128xf32> to vector<2x32xf32>
    %630 = math.tanh %629 : vector<2x32xf32>
    %631 = arith.mulf %627, %610 : vector<2x32xf32>
    %632 = arith.mulf %626, %630 : vector<2x32xf32>
    %633 = arith.addf %631, %632 : vector<2x32xf32>
    %634 = math.tanh %633 : vector<2x32xf32>
    %635 = arith.mulf %628, %634 : vector<2x32xf32>
    %636 = vector.extract_strided_slice %472 {offsets = [14, 0], sizes = [2, 128], strides = [1, 1]} : vector<32x128xf32> to vector<2x128xf32>
    %cst_156 = arith.constant dense<0.000000e+00> : vector<2x128xf32>
    %637 = tpu.matmul %635, %468, %cst_156 {dimension_numbers = #tpu.dot_dimension_numbers<[1], [0], [0], [1], [0, 0, 1, 1], [], []>} : vector<2x32xf32>, vector<32x128xf32>, vector<2x128xf32> -> vector<2x128xf32>
    %638 = arith.addf %636, %637 : vector<2x128xf32>
    %639 = vector.broadcast %469 : vector<1x128xf32> to vector<2x128xf32>
    %640 = arith.addf %638, %639 : vector<2x128xf32>
    %641 = vector.extract_strided_slice %640 {offsets = [0, 0], sizes = [2, 96], strides = [1, 1]} : vector<2x128xf32> to vector<2x96xf32>
    %cst_157 = arith.constant 0.000000e+00 : f32
    %642 = vector.broadcast %cst_157 : f32 to vector<2x96xf32>
    %643 = arith.subf %642, %641 : vector<2x96xf32>
    %644 = math.exp %643 : vector<2x96xf32>
    %cst_158 = arith.constant 1.000000e+00 : f32
    %645 = vector.broadcast %cst_158 : f32 to vector<2x96xf32>
    %646 = arith.addf %645, %644 : vector<2x96xf32>
    %cst_159 = arith.constant 1.000000e+00 : f32
    %647 = vector.broadcast %cst_159 : f32 to vector<2x96xf32>
    %648 = arith.divf %647, %646 : vector<2x96xf32>
    %649 = vector.extract_strided_slice %648 {offsets = [0, 0], sizes = [2, 32], strides = [1, 1]} : vector<2x96xf32> to vector<2x32xf32>
    %650 = vector.extract_strided_slice %648 {offsets = [0, 32], sizes = [2, 32], strides = [1, 1]} : vector<2x96xf32> to vector<2x32xf32>
    %651 = vector.extract_strided_slice %648 {offsets = [0, 64], sizes = [2, 32], strides = [1, 1]} : vector<2x96xf32> to vector<2x32xf32>
    %652 = vector.extract_strided_slice %640 {offsets = [0, 96], sizes = [2, 32], strides = [1, 1]} : vector<2x128xf32> to vector<2x32xf32>
    %653 = math.tanh %652 : vector<2x32xf32>
    %654 = arith.mulf %650, %633 : vector<2x32xf32>
    %655 = arith.mulf %649, %653 : vector<2x32xf32>
    %656 = arith.addf %654, %655 : vector<2x32xf32>
    %657 = math.tanh %656 : vector<2x32xf32>
    %658 = arith.mulf %651, %657 : vector<2x32xf32>
    %659 = vector.extract_strided_slice %472 {offsets = [16, 0], sizes = [2, 128], strides = [1, 1]} : vector<32x128xf32> to vector<2x128xf32>
    %cst_160 = arith.constant dense<0.000000e+00> : vector<2x128xf32>
    %660 = tpu.matmul %658, %468, %cst_160 {dimension_numbers = #tpu.dot_dimension_numbers<[1], [0], [0], [1], [0, 0, 1, 1], [], []>} : vector<2x32xf32>, vector<32x128xf32>, vector<2x128xf32> -> vector<2x128xf32>
    %661 = arith.addf %659, %660 : vector<2x128xf32>
    %662 = vector.broadcast %469 : vector<1x128xf32> to vector<2x128xf32>
    %663 = arith.addf %661, %662 : vector<2x128xf32>
    %664 = vector.extract_strided_slice %663 {offsets = [0, 0], sizes = [2, 96], strides = [1, 1]} : vector<2x128xf32> to vector<2x96xf32>
    %cst_161 = arith.constant 0.000000e+00 : f32
    %665 = vector.broadcast %cst_161 : f32 to vector<2x96xf32>
    %666 = arith.subf %665, %664 : vector<2x96xf32>
    %667 = math.exp %666 : vector<2x96xf32>
    %cst_162 = arith.constant 1.000000e+00 : f32
    %668 = vector.broadcast %cst_162 : f32 to vector<2x96xf32>
    %669 = arith.addf %668, %667 : vector<2x96xf32>
    %cst_163 = arith.constant 1.000000e+00 : f32
    %670 = vector.broadcast %cst_163 : f32 to vector<2x96xf32>
    %671 = arith.divf %670, %669 : vector<2x96xf32>
    %672 = vector.extract_strided_slice %671 {offsets = [0, 0], sizes = [2, 32], strides = [1, 1]} : vector<2x96xf32> to vector<2x32xf32>
    %673 = vector.extract_strided_slice %671 {offsets = [0, 32], sizes = [2, 32], strides = [1, 1]} : vector<2x96xf32> to vector<2x32xf32>
    %674 = vector.extract_strided_slice %671 {offsets = [0, 64], sizes = [2, 32], strides = [1, 1]} : vector<2x96xf32> to vector<2x32xf32>
    %675 = vector.extract_strided_slice %663 {offsets = [0, 96], sizes = [2, 32], strides = [1, 1]} : vector<2x128xf32> to vector<2x32xf32>
    %676 = math.tanh %675 : vector<2x32xf32>
    %677 = arith.mulf %673, %656 : vector<2x32xf32>
    %678 = arith.mulf %672, %676 : vector<2x32xf32>
    %679 = arith.addf %677, %678 : vector<2x32xf32>
    %680 = math.tanh %679 : vector<2x32xf32>
    %681 = arith.mulf %674, %680 : vector<2x32xf32>
    %682 = vector.extract_strided_slice %472 {offsets = [18, 0], sizes = [2, 128], strides = [1, 1]} : vector<32x128xf32> to vector<2x128xf32>
    %cst_164 = arith.constant dense<0.000000e+00> : vector<2x128xf32>
    %683 = tpu.matmul %681, %468, %cst_164 {dimension_numbers = #tpu.dot_dimension_numbers<[1], [0], [0], [1], [0, 0, 1, 1], [], []>} : vector<2x32xf32>, vector<32x128xf32>, vector<2x128xf32> -> vector<2x128xf32>
    %684 = arith.addf %682, %683 : vector<2x128xf32>
    %685 = vector.broadcast %469 : vector<1x128xf32> to vector<2x128xf32>
    %686 = arith.addf %684, %685 : vector<2x128xf32>
    %687 = vector.extract_strided_slice %686 {offsets = [0, 0], sizes = [2, 96], strides = [1, 1]} : vector<2x128xf32> to vector<2x96xf32>
    %cst_165 = arith.constant 0.000000e+00 : f32
    %688 = vector.broadcast %cst_165 : f32 to vector<2x96xf32>
    %689 = arith.subf %688, %687 : vector<2x96xf32>
    %690 = math.exp %689 : vector<2x96xf32>
    %cst_166 = arith.constant 1.000000e+00 : f32
    %691 = vector.broadcast %cst_166 : f32 to vector<2x96xf32>
    %692 = arith.addf %691, %690 : vector<2x96xf32>
    %cst_167 = arith.constant 1.000000e+00 : f32
    %693 = vector.broadcast %cst_167 : f32 to vector<2x96xf32>
    %694 = arith.divf %693, %692 : vector<2x96xf32>
    %695 = vector.extract_strided_slice %694 {offsets = [0, 0], sizes = [2, 32], strides = [1, 1]} : vector<2x96xf32> to vector<2x32xf32>
    %696 = vector.extract_strided_slice %694 {offsets = [0, 32], sizes = [2, 32], strides = [1, 1]} : vector<2x96xf32> to vector<2x32xf32>
    %697 = vector.extract_strided_slice %694 {offsets = [0, 64], sizes = [2, 32], strides = [1, 1]} : vector<2x96xf32> to vector<2x32xf32>
    %698 = vector.extract_strided_slice %686 {offsets = [0, 96], sizes = [2, 32], strides = [1, 1]} : vector<2x128xf32> to vector<2x32xf32>
    %699 = math.tanh %698 : vector<2x32xf32>
    %700 = arith.mulf %696, %679 : vector<2x32xf32>
    %701 = arith.mulf %695, %699 : vector<2x32xf32>
    %702 = arith.addf %700, %701 : vector<2x32xf32>
    %703 = math.tanh %702 : vector<2x32xf32>
    %704 = arith.mulf %697, %703 : vector<2x32xf32>
    %705 = vector.extract_strided_slice %472 {offsets = [20, 0], sizes = [2, 128], strides = [1, 1]} : vector<32x128xf32> to vector<2x128xf32>
    %cst_168 = arith.constant dense<0.000000e+00> : vector<2x128xf32>
    %706 = tpu.matmul %704, %468, %cst_168 {dimension_numbers = #tpu.dot_dimension_numbers<[1], [0], [0], [1], [0, 0, 1, 1], [], []>} : vector<2x32xf32>, vector<32x128xf32>, vector<2x128xf32> -> vector<2x128xf32>
    %707 = arith.addf %705, %706 : vector<2x128xf32>
    %708 = vector.broadcast %469 : vector<1x128xf32> to vector<2x128xf32>
    %709 = arith.addf %707, %708 : vector<2x128xf32>
    %710 = vector.extract_strided_slice %709 {offsets = [0, 0], sizes = [2, 96], strides = [1, 1]} : vector<2x128xf32> to vector<2x96xf32>
    %cst_169 = arith.constant 0.000000e+00 : f32
    %711 = vector.broadcast %cst_169 : f32 to vector<2x96xf32>
    %712 = arith.subf %711, %710 : vector<2x96xf32>
    %713 = math.exp %712 : vector<2x96xf32>
    %cst_170 = arith.constant 1.000000e+00 : f32
    %714 = vector.broadcast %cst_170 : f32 to vector<2x96xf32>
    %715 = arith.addf %714, %713 : vector<2x96xf32>
    %cst_171 = arith.constant 1.000000e+00 : f32
    %716 = vector.broadcast %cst_171 : f32 to vector<2x96xf32>
    %717 = arith.divf %716, %715 : vector<2x96xf32>
    %718 = vector.extract_strided_slice %717 {offsets = [0, 0], sizes = [2, 32], strides = [1, 1]} : vector<2x96xf32> to vector<2x32xf32>
    %719 = vector.extract_strided_slice %717 {offsets = [0, 32], sizes = [2, 32], strides = [1, 1]} : vector<2x96xf32> to vector<2x32xf32>
    %720 = vector.extract_strided_slice %717 {offsets = [0, 64], sizes = [2, 32], strides = [1, 1]} : vector<2x96xf32> to vector<2x32xf32>
    %721 = vector.extract_strided_slice %709 {offsets = [0, 96], sizes = [2, 32], strides = [1, 1]} : vector<2x128xf32> to vector<2x32xf32>
    %722 = math.tanh %721 : vector<2x32xf32>
    %723 = arith.mulf %719, %702 : vector<2x32xf32>
    %724 = arith.mulf %718, %722 : vector<2x32xf32>
    %725 = arith.addf %723, %724 : vector<2x32xf32>
    %726 = math.tanh %725 : vector<2x32xf32>
    %727 = arith.mulf %720, %726 : vector<2x32xf32>
    %728 = vector.extract_strided_slice %472 {offsets = [22, 0], sizes = [2, 128], strides = [1, 1]} : vector<32x128xf32> to vector<2x128xf32>
    %cst_172 = arith.constant dense<0.000000e+00> : vector<2x128xf32>
    %729 = tpu.matmul %727, %468, %cst_172 {dimension_numbers = #tpu.dot_dimension_numbers<[1], [0], [0], [1], [0, 0, 1, 1], [], []>} : vector<2x32xf32>, vector<32x128xf32>, vector<2x128xf32> -> vector<2x128xf32>
    %730 = arith.addf %728, %729 : vector<2x128xf32>
    %731 = vector.broadcast %469 : vector<1x128xf32> to vector<2x128xf32>
    %732 = arith.addf %730, %731 : vector<2x128xf32>
    %733 = vector.extract_strided_slice %732 {offsets = [0, 0], sizes = [2, 96], strides = [1, 1]} : vector<2x128xf32> to vector<2x96xf32>
    %cst_173 = arith.constant 0.000000e+00 : f32
    %734 = vector.broadcast %cst_173 : f32 to vector<2x96xf32>
    %735 = arith.subf %734, %733 : vector<2x96xf32>
    %736 = math.exp %735 : vector<2x96xf32>
    %cst_174 = arith.constant 1.000000e+00 : f32
    %737 = vector.broadcast %cst_174 : f32 to vector<2x96xf32>
    %738 = arith.addf %737, %736 : vector<2x96xf32>
    %cst_175 = arith.constant 1.000000e+00 : f32
    %739 = vector.broadcast %cst_175 : f32 to vector<2x96xf32>
    %740 = arith.divf %739, %738 : vector<2x96xf32>
    %741 = vector.extract_strided_slice %740 {offsets = [0, 0], sizes = [2, 32], strides = [1, 1]} : vector<2x96xf32> to vector<2x32xf32>
    %742 = vector.extract_strided_slice %740 {offsets = [0, 32], sizes = [2, 32], strides = [1, 1]} : vector<2x96xf32> to vector<2x32xf32>
    %743 = vector.extract_strided_slice %740 {offsets = [0, 64], sizes = [2, 32], strides = [1, 1]} : vector<2x96xf32> to vector<2x32xf32>
    %744 = vector.extract_strided_slice %732 {offsets = [0, 96], sizes = [2, 32], strides = [1, 1]} : vector<2x128xf32> to vector<2x32xf32>
    %745 = math.tanh %744 : vector<2x32xf32>
    %746 = arith.mulf %742, %725 : vector<2x32xf32>
    %747 = arith.mulf %741, %745 : vector<2x32xf32>
    %748 = arith.addf %746, %747 : vector<2x32xf32>
    %749 = math.tanh %748 : vector<2x32xf32>
    %750 = arith.mulf %743, %749 : vector<2x32xf32>
    %751 = vector.extract_strided_slice %472 {offsets = [24, 0], sizes = [2, 128], strides = [1, 1]} : vector<32x128xf32> to vector<2x128xf32>
    %cst_176 = arith.constant dense<0.000000e+00> : vector<2x128xf32>
    %752 = tpu.matmul %750, %468, %cst_176 {dimension_numbers = #tpu.dot_dimension_numbers<[1], [0], [0], [1], [0, 0, 1, 1], [], []>} : vector<2x32xf32>, vector<32x128xf32>, vector<2x128xf32> -> vector<2x128xf32>
    %753 = arith.addf %751, %752 : vector<2x128xf32>
    %754 = vector.broadcast %469 : vector<1x128xf32> to vector<2x128xf32>
    %755 = arith.addf %753, %754 : vector<2x128xf32>
    %756 = vector.extract_strided_slice %755 {offsets = [0, 0], sizes = [2, 96], strides = [1, 1]} : vector<2x128xf32> to vector<2x96xf32>
    %cst_177 = arith.constant 0.000000e+00 : f32
    %757 = vector.broadcast %cst_177 : f32 to vector<2x96xf32>
    %758 = arith.subf %757, %756 : vector<2x96xf32>
    %759 = math.exp %758 : vector<2x96xf32>
    %cst_178 = arith.constant 1.000000e+00 : f32
    %760 = vector.broadcast %cst_178 : f32 to vector<2x96xf32>
    %761 = arith.addf %760, %759 : vector<2x96xf32>
    %cst_179 = arith.constant 1.000000e+00 : f32
    %762 = vector.broadcast %cst_179 : f32 to vector<2x96xf32>
    %763 = arith.divf %762, %761 : vector<2x96xf32>
    %764 = vector.extract_strided_slice %763 {offsets = [0, 0], sizes = [2, 32], strides = [1, 1]} : vector<2x96xf32> to vector<2x32xf32>
    %765 = vector.extract_strided_slice %763 {offsets = [0, 32], sizes = [2, 32], strides = [1, 1]} : vector<2x96xf32> to vector<2x32xf32>
    %766 = vector.extract_strided_slice %763 {offsets = [0, 64], sizes = [2, 32], strides = [1, 1]} : vector<2x96xf32> to vector<2x32xf32>
    %767 = vector.extract_strided_slice %755 {offsets = [0, 96], sizes = [2, 32], strides = [1, 1]} : vector<2x128xf32> to vector<2x32xf32>
    %768 = math.tanh %767 : vector<2x32xf32>
    %769 = arith.mulf %765, %748 : vector<2x32xf32>
    %770 = arith.mulf %764, %768 : vector<2x32xf32>
    %771 = arith.addf %769, %770 : vector<2x32xf32>
    %772 = math.tanh %771 : vector<2x32xf32>
    %773 = arith.mulf %766, %772 : vector<2x32xf32>
    %774 = vector.extract_strided_slice %472 {offsets = [26, 0], sizes = [2, 128], strides = [1, 1]} : vector<32x128xf32> to vector<2x128xf32>
    %cst_180 = arith.constant dense<0.000000e+00> : vector<2x128xf32>
    %775 = tpu.matmul %773, %468, %cst_180 {dimension_numbers = #tpu.dot_dimension_numbers<[1], [0], [0], [1], [0, 0, 1, 1], [], []>} : vector<2x32xf32>, vector<32x128xf32>, vector<2x128xf32> -> vector<2x128xf32>
    %776 = arith.addf %774, %775 : vector<2x128xf32>
    %777 = vector.broadcast %469 : vector<1x128xf32> to vector<2x128xf32>
    %778 = arith.addf %776, %777 : vector<2x128xf32>
    %779 = vector.extract_strided_slice %778 {offsets = [0, 0], sizes = [2, 96], strides = [1, 1]} : vector<2x128xf32> to vector<2x96xf32>
    %cst_181 = arith.constant 0.000000e+00 : f32
    %780 = vector.broadcast %cst_181 : f32 to vector<2x96xf32>
    %781 = arith.subf %780, %779 : vector<2x96xf32>
    %782 = math.exp %781 : vector<2x96xf32>
    %cst_182 = arith.constant 1.000000e+00 : f32
    %783 = vector.broadcast %cst_182 : f32 to vector<2x96xf32>
    %784 = arith.addf %783, %782 : vector<2x96xf32>
    %cst_183 = arith.constant 1.000000e+00 : f32
    %785 = vector.broadcast %cst_183 : f32 to vector<2x96xf32>
    %786 = arith.divf %785, %784 : vector<2x96xf32>
    %787 = vector.extract_strided_slice %786 {offsets = [0, 0], sizes = [2, 32], strides = [1, 1]} : vector<2x96xf32> to vector<2x32xf32>
    %788 = vector.extract_strided_slice %786 {offsets = [0, 32], sizes = [2, 32], strides = [1, 1]} : vector<2x96xf32> to vector<2x32xf32>
    %789 = vector.extract_strided_slice %786 {offsets = [0, 64], sizes = [2, 32], strides = [1, 1]} : vector<2x96xf32> to vector<2x32xf32>
    %790 = vector.extract_strided_slice %778 {offsets = [0, 96], sizes = [2, 32], strides = [1, 1]} : vector<2x128xf32> to vector<2x32xf32>
    %791 = math.tanh %790 : vector<2x32xf32>
    %792 = arith.mulf %788, %771 : vector<2x32xf32>
    %793 = arith.mulf %787, %791 : vector<2x32xf32>
    %794 = arith.addf %792, %793 : vector<2x32xf32>
    %795 = math.tanh %794 : vector<2x32xf32>
    %796 = arith.mulf %789, %795 : vector<2x32xf32>
    %797 = vector.extract_strided_slice %472 {offsets = [28, 0], sizes = [2, 128], strides = [1, 1]} : vector<32x128xf32> to vector<2x128xf32>
    %cst_184 = arith.constant dense<0.000000e+00> : vector<2x128xf32>
    %798 = tpu.matmul %796, %468, %cst_184 {dimension_numbers = #tpu.dot_dimension_numbers<[1], [0], [0], [1], [0, 0, 1, 1], [], []>} : vector<2x32xf32>, vector<32x128xf32>, vector<2x128xf32> -> vector<2x128xf32>
    %799 = arith.addf %797, %798 : vector<2x128xf32>
    %800 = vector.broadcast %469 : vector<1x128xf32> to vector<2x128xf32>
    %801 = arith.addf %799, %800 : vector<2x128xf32>
    %802 = vector.extract_strided_slice %801 {offsets = [0, 0], sizes = [2, 96], strides = [1, 1]} : vector<2x128xf32> to vector<2x96xf32>
    %cst_185 = arith.constant 0.000000e+00 : f32
    %803 = vector.broadcast %cst_185 : f32 to vector<2x96xf32>
    %804 = arith.subf %803, %802 : vector<2x96xf32>
    %805 = math.exp %804 : vector<2x96xf32>
    %cst_186 = arith.constant 1.000000e+00 : f32
    %806 = vector.broadcast %cst_186 : f32 to vector<2x96xf32>
    %807 = arith.addf %806, %805 : vector<2x96xf32>
    %cst_187 = arith.constant 1.000000e+00 : f32
    %808 = vector.broadcast %cst_187 : f32 to vector<2x96xf32>
    %809 = arith.divf %808, %807 : vector<2x96xf32>
    %810 = vector.extract_strided_slice %809 {offsets = [0, 0], sizes = [2, 32], strides = [1, 1]} : vector<2x96xf32> to vector<2x32xf32>
    %811 = vector.extract_strided_slice %809 {offsets = [0, 32], sizes = [2, 32], strides = [1, 1]} : vector<2x96xf32> to vector<2x32xf32>
    %812 = vector.extract_strided_slice %809 {offsets = [0, 64], sizes = [2, 32], strides = [1, 1]} : vector<2x96xf32> to vector<2x32xf32>
    %813 = vector.extract_strided_slice %801 {offsets = [0, 96], sizes = [2, 32], strides = [1, 1]} : vector<2x128xf32> to vector<2x32xf32>
    %814 = math.tanh %813 : vector<2x32xf32>
    %815 = arith.mulf %811, %794 : vector<2x32xf32>
    %816 = arith.mulf %810, %814 : vector<2x32xf32>
    %817 = arith.addf %815, %816 : vector<2x32xf32>
    %818 = math.tanh %817 : vector<2x32xf32>
    %819 = arith.mulf %812, %818 : vector<2x32xf32>
    %820 = vector.extract_strided_slice %472 {offsets = [30, 0], sizes = [2, 128], strides = [1, 1]} : vector<32x128xf32> to vector<2x128xf32>
    %cst_188 = arith.constant dense<0.000000e+00> : vector<2x128xf32>
    %821 = tpu.matmul %819, %468, %cst_188 {dimension_numbers = #tpu.dot_dimension_numbers<[1], [0], [0], [1], [0, 0, 1, 1], [], []>} : vector<2x32xf32>, vector<32x128xf32>, vector<2x128xf32> -> vector<2x128xf32>
    %822 = arith.addf %820, %821 : vector<2x128xf32>
    %823 = vector.broadcast %469 : vector<1x128xf32> to vector<2x128xf32>
    %824 = arith.addf %822, %823 : vector<2x128xf32>
    %825 = vector.extract_strided_slice %824 {offsets = [0, 0], sizes = [2, 96], strides = [1, 1]} : vector<2x128xf32> to vector<2x96xf32>
    %cst_189 = arith.constant 0.000000e+00 : f32
    %826 = vector.broadcast %cst_189 : f32 to vector<2x96xf32>
    %827 = arith.subf %826, %825 : vector<2x96xf32>
    %828 = math.exp %827 : vector<2x96xf32>
    %cst_190 = arith.constant 1.000000e+00 : f32
    %829 = vector.broadcast %cst_190 : f32 to vector<2x96xf32>
    %830 = arith.addf %829, %828 : vector<2x96xf32>
    %cst_191 = arith.constant 1.000000e+00 : f32
    %831 = vector.broadcast %cst_191 : f32 to vector<2x96xf32>
    %832 = arith.divf %831, %830 : vector<2x96xf32>
    %833 = vector.extract_strided_slice %832 {offsets = [0, 0], sizes = [2, 32], strides = [1, 1]} : vector<2x96xf32> to vector<2x32xf32>
    %834 = vector.extract_strided_slice %832 {offsets = [0, 32], sizes = [2, 32], strides = [1, 1]} : vector<2x96xf32> to vector<2x32xf32>
    %835 = vector.extract_strided_slice %832 {offsets = [0, 64], sizes = [2, 32], strides = [1, 1]} : vector<2x96xf32> to vector<2x32xf32>
    %836 = vector.extract_strided_slice %824 {offsets = [0, 96], sizes = [2, 32], strides = [1, 1]} : vector<2x128xf32> to vector<2x32xf32>
    %837 = math.tanh %836 : vector<2x32xf32>
    %838 = arith.mulf %834, %817 : vector<2x32xf32>
    %839 = arith.mulf %833, %837 : vector<2x32xf32>
    %840 = arith.addf %838, %839 : vector<2x32xf32>
    %841 = math.tanh %840 : vector<2x32xf32>
    %842 = arith.mulf %835, %841 : vector<2x32xf32>
    %c0_192 = arith.constant 0 : index
    %c0_193 = arith.constant 0 : index
    %843 = vector.load %arg11[%c0_192, %c0_193] : memref<32x32xf32, #tpu.memory_space<vmem>>, vector<32x32xf32>
    %cst_194 = arith.constant dense<0.000000e+00> : vector<2x32xf32>
    %844 = tpu.matmul %842, %843, %cst_194 {dimension_numbers = #tpu.dot_dimension_numbers<[1], [0], [0], [1], [0, 0, 1, 1], [], []>} : vector<2x32xf32>, vector<32x32xf32>, vector<2x32xf32> -> vector<2x32xf32>
    %c0_195 = arith.constant 0 : index
    %c0_196 = arith.constant 0 : index
    %845 = vector.load %arg12[%c0_195, %c0_196] : memref<1x32xf32, #tpu.memory_space<vmem>>, vector<1x32xf32>
    %846 = vector.broadcast %845 : vector<1x32xf32> to vector<2x32xf32>
    %847 = arith.addf %844, %846 : vector<2x32xf32>
    %cst_197 = arith.constant 0.000000e+00 : f32
    %848 = vector.broadcast %cst_197 : f32 to vector<2x32xf32>
    %849 = arith.maximumf %847, %848 : vector<2x32xf32>
    %c0_198 = arith.constant 0 : index
    %c0_199 = arith.constant 0 : index
    %850 = vector.load %arg13[%c0_198, %c0_199] : memref<32x8xf32, #tpu.memory_space<vmem>>, vector<32x8xf32>
    %cst_200 = arith.constant dense<0.000000e+00> : vector<2x8xf32>
    %851 = tpu.matmul %849, %850, %cst_200 {dimension_numbers = #tpu.dot_dimension_numbers<[1], [0], [0], [1], [0, 0, 1, 1], [], []>} : vector<2x32xf32>, vector<32x8xf32>, vector<2x8xf32> -> vector<2x8xf32>
    %c0_201 = arith.constant 0 : index
    %c0_202 = arith.constant 0 : index
    %852 = vector.load %arg14[%c0_201, %c0_202] : memref<1x8xf32, #tpu.memory_space<vmem>>, vector<1x8xf32>
    %853 = vector.broadcast %852 : vector<1x8xf32> to vector<2x8xf32>
    %854 = arith.addf %851, %853 : vector<2x8xf32>
    %c0_203 = arith.constant 0 : index
    %c0_204 = arith.constant 0 : index
    %855 = vector.load %arg15[%c0_203, %c0_204] : memref<2x8xf32, #tpu.memory_space<vmem>>, vector<2x8xf32>
    tpu.vector_store %arg15[%c0_203, %c0_204], %854 {strides = array<i32>} : memref<2x8xf32, #tpu.memory_space<vmem>>, vector<2x8xf32>,
    %c0_205 = arith.constant 0 : index
    %c0_206 = arith.constant 0 : index
    %856 = vector.load %arg16[%c0_205, %c0_206] : memref<2x32xf32, #tpu.memory_space<vmem>>, vector<2x32xf32>
    tpu.vector_store %arg16[%c0_205, %c0_206], %842 {strides = array<i32>} : memref<2x32xf32, #tpu.memory_space<vmem>>, vector<2x32xf32>,
    return
  }
}

</mosaic_0001>

<bundles_post_ra>
// kernel: idsa_forward.1
= control target key start
LH: loop header
LB: loop body
LE: loop exit
PB: predicated region body
PF: predicated region fallthrough
CT: control target
= control target key end

     0   :  { %s7989_s0 = inlined_call_operand.hbm [shape: f32[2,4,16], index: 0, kind: input, shape index: {}]   ;;  %s7990_s1 = inlined_call_operand.hbm [shape: f32[4,16], index: 1, kind: input, shape index: {}]   ;;  %s7991_s2 = inlined_call_operand.hbm [shape: f32[4,16], index: 2, kind: input, shape index: {}]   ;;  %s7992_s3 = inlined_call_operand.hbm [shape: f32[16,32], index: 3, kind: input, shape index: {}]   ;;  %s7993_s4 = inlined_call_operand.vmem [shape: f32[1,32], index: 4, kind: input, shape index: {}]   ;;  %s7994_s5 = inlined_call_operand.vmem [shape: f32[4,128], index: 5, kind: input, shape index: {}]   ;;  %s7995_s6 = inlined_call_operand.vmem [shape: f32[32,128], index: 6, kind: input, shape index: {}]   ;;  %s7996_s7 = inlined_call_operand.hbm [shape: f32[1,128], index: 7, kind: input, shape index: {}]   ;;  %s7997_s8 = inlined_call_operand.vmem [shape: f32[32,128], index: 8, kind: input, shape index: {}]   ;;  %s7998_s9 = inlined_call_operand.hbm [shape: f32[32,128], index: 9, kind: input, shape index: {}]   ;;  %s7999_s10 = inlined_call_operand.hbm [shape: f32[1,128], index: 10, kind: input, shape index: {}]   ;;  %s8000_s11 = inlined_call_operand.hbm [shape: f32[32,32], index: 11, kind: input, shape index: {}]   ;;  %s8001_s12 = inlined_call_operand.vmem [shape: f32[1,32], index: 12, kind: input, shape index: {}]   ;;  %s8002_s13 = inlined_call_operand.vmem [shape: f32[32,8], index: 13, kind: input, shape index: {}]   ;;  %s8003_s14 = inlined_call_operand.vmem [shape: f32[1,8], index: 14, kind: input, shape index: {}]   ;;  %s8004_s15 = inlined_call_operand.hbm [shape: f32[2,8], index: 15, kind: output, shape index: {0}]   ;;  %s8005_s16 = inlined_call_operand.hbm [shape: f32[2,32], index: 16, kind: output, shape index: {1}]   ;;  %s8006_s17 = inlined_call_operand.hbm [shape: f32[4,4], index: 17, kind: output, shape index: {2}]  }
   0x1   :  { %8011 = sst [smem:[#allocation28_spill]] %s7989_s0 }
   0x2   :  { %8012 = sst [smem:[#allocation29_spill]] %s7990_s1 }
   0x3   :  { %8013 = sst [smem:[#allocation30_spill]] %s8004_s15 }
   0x4   :  { %23 = vsyncpa [#allocation4], 0 }
   0x5   :  { %24 = vsyncpa [#allocation7], 0 }
   0x6   :  { %25 = vsyncpa [#allocation10], 0 }
   0x7   :  { %26 = vsyncpa [#allocation13], 0 }
   0x8   :  { %27 = vsyncpa [#allocation16], 0 }
   0x9   :  { %28 = vsyncpa [#allocation5], 0 }
   0xa   :  { %29 = vsyncpa [#allocation19], 0  ;;  %s6891_s24 = smov [#allocation6]   ;;  %s6892_s26 = smov [#allocation9]  }
   0xb   :  { %s48_s25 = sshll.u32 %s6891_s24, 4  ;;  %s67_s27 = sshll.u32 %s6892_s26, 4  ;;  %s49_s25 = int_to_ptr.vmem [resolvable:$true] %s48_s25  ;;  %s7001_s27 = int_to_ptr.vmem [resolvable:$true] %s67_s27 }
   0xc   :  { %s8014_s0 = sld [smem:[#allocation29_spill]] }
  0x12   :  { %s6635_s30 = scalar_lea.hbm %s8014_s0, 64 }
  0x13   :  { %p6636_p0 = scmp.ne.s32.totalorder %s8014_s0, %s6635_s30  ;;  %p6639_p1 = scmp.lt.u32.totalorder %s6635_s30, %s8014_s0 }
  0x15   :  { %p6641_p2 = pnand %p6639_p1, %p6636_p0 }
  0x17   :  { %6644 = shalt.err (!%p6641_p2)
}
  0x18   :  { %s6645_s21 = scalar_lea.vmem %s49_s25, 64  ;;  %p6650_p4 = scmp.lt.s32.totalorder %s49_s25, %s49_s25 }
  0x19   :  { %p6646_p3 = scmp.ne.s32.totalorder %s49_s25, %s6645_s21  ;;  %p6651_p5 = scmp.lt.s32.totalorder %s6645_s21, %s6645_s21 }
  0x1b   :  { %p6652_p6 = por %p6651_p5, %p6650_p4 }
  0x1d   :  { %p6653_p7 = pnand %p6652_p6, %p6646_p3 }
  0x1f   :  { %6656 = shalt.err (!%p6653_p7)
}
  0x20   :  { %51 = dma.hbm_to_vmem [thread:$0]  %s8014_s0, 64, %s49_s25, [#allocation7]  }
  0x21   :  { %s6657_s28 = scalar_lea.hbm %s7992_s3, 256 }
  0x22   :  { %p6658_p8 = scmp.ne.s32.totalorder %s7992_s3, %s6657_s28  ;;  %p6661_p9 = scmp.lt.u32.totalorder %s6657_s28, %s7992_s3 }
  0x24   :  { %p6663_p10 = pnand %p6661_p9, %p6658_p8 }
  0x26   :  { %6666 = shalt.err (!%p6663_p10)
}
  0x27   :  { %s6667_s1 = scalar_lea.vmem %s7001_s27, 256  ;;  %p6672_p12 = scmp.lt.s32.totalorder %s7001_s27, %s7001_s27 }
  0x28   :  { %p6668_p11 = scmp.ne.s32.totalorder %s7001_s27, %s6667_s1  ;;  %p6673_p13 = scmp.lt.s32.totalorder %s6667_s1, %s6667_s1 }
  0x2a   :  { %p6674_p0 = por %p6673_p13, %p6672_p12 }
  0x2c   :  { %p6675_p1 = pnand %p6674_p0, %p6668_p11 }
  0x2e   :  { %6678 = shalt.err (!%p6675_p1)
}
  0x2f   :  { %s8010_s25 = smov 128   ;;  %s6894_s0 = smov 8  }
  0x30   :  { %73 = dma.hbm_to_vmem [thread:$0]  %s7992_s3, 256, %s7001_s27, [#allocation10], %s8010_s25, %s8010_s25, %s6894_s0  }
  0x31   :  { %s6895_s22 = smov [#allocation12]   ;;  %s6896_s24 = smov [#allocation3]  }
  0x32   :  { %s97_s23 = sshll.u32 %s6895_s22, 4  ;;  %s35_s26 = sshll.u32 %s6896_s24, 4  ;;  %s98_s23 = int_to_ptr.vmem [resolvable:$true] %s97_s23  ;;  %s7035_s26 = int_to_ptr.vmem [resolvable:$true] %s35_s26 }
  0x33   :  { %s6679_s18 = scalar_lea.hbm %s7998_s9, 512 }
  0x34   :  { %p6680_p2 = scmp.ne.s32.totalorder %s7998_s9, %s6679_s18  ;;  %p6683_p3 = scmp.lt.u32.totalorder %s6679_s18, %s7998_s9 }
  0x36   :  { %p6685_p4 = pnand %p6683_p3, %p6680_p2 }
  0x38   :  { %6688 = shalt.err (!%p6685_p4)
}
  0x39   :  { %s6689_s3 = scalar_lea.vmem %s98_s23, 512  ;;  %p6694_p6 = scmp.lt.s32.totalorder %s98_s23, %s98_s23 }
  0x3a   :  { %p6690_p5 = scmp.ne.s32.totalorder %s98_s23, %s6689_s3  ;;  %p6695_p7 = scmp.lt.s32.totalorder %s6689_s3, %s6689_s3 }
  0x3c   :  { %p6696_p8 = por %p6695_p7, %p6694_p6 }
  0x3e   :  { %p6697_p9 = pnand %p6696_p8, %p6690_p5 }
  0x40   :  { %6700 = shalt.err (!%p6697_p9)
}
  0x41   :  { %103 = dma.hbm_to_vmem [thread:$0]  %s7998_s9, 512, %s98_s23, [#allocation13], %s8010_s25, %s8010_s25, %s6894_s0  }
  0x42   :  { %s8015_s15 = sld [smem:[#allocation28_spill]] }
  0x48   :  { %s6701_s24 = scalar_lea.hbm %s8015_s15, 128 }
  0x49   :  { %p6702_p10 = scmp.ne.s32.totalorder %s8015_s15, %s6701_s24  ;;  %p6705_p11 = scmp.lt.u32.totalorder %s6701_s24, %s8015_s15 }
  0x4b   :  { %p6707_p12 = pnand %p6705_p11, %p6702_p10 }
  0x4d   :  { %6710 = shalt.err (!%p6707_p12)
}
  0x4e   :  { %s6711_s19 = scalar_lea.vmem %s7035_s26, 128  ;;  %p6716_p0 = scmp.lt.s32.totalorder %s7035_s26, %s7035_s26 }
  0x4f   :  { %p6712_p13 = scmp.ne.s32.totalorder %s7035_s26, %s6711_s19  ;;  %p6717_p1 = scmp.lt.s32.totalorder %s6711_s19, %s6711_s19 }
  0x51   :  { %p6718_p2 = por %p6717_p1, %p6716_p0 }
  0x53   :  { %p6719_p3 = pnand %p6718_p2, %p6712_p13 }
  0x55   :  { %6722 = shalt.err (!%p6719_p3)
}
  0x56   :  { %s6897_s9 = smov 64   ;;  %s6898_s23 = smov 4  }
  0x57   :  { %41 = dma.hbm_to_vmem [thread:$0]  %s8015_s15, 128, %s7035_s26, [#allocation4], %s6897_s9, %s6897_s9, %s6898_s23  }
  0x58   :  { %s6899_s27 = smov [#allocation8]   ;;  %s6900_s21 = smov [#allocation11]  }
  0x59   :  { %s58_s20 = sshll.u32 %s6899_s27, 4  ;;  %s86_s22 = sshll.u32 %s6900_s21, 4  ;;  %s59_s20 = int_to_ptr.vmem [resolvable:$true] %s58_s20  ;;  %s87_s22 = int_to_ptr.vmem [resolvable:$true] %s86_s22 }
  0x5a   :  { %s6723_s29 = scalar_lea.hbm %s7991_s2, 64 }
  0x5b   :  { %p6724_p4 = scmp.ne.s32.totalorder %s7991_s2, %s6723_s29  ;;  %p6727_p5 = scmp.lt.u32.totalorder %s6723_s29, %s7991_s2 }
  0x5d   :  { %p6729_p6 = pnand %p6727_p5, %p6724_p4 }
  0x5f   :  { %6732 = shalt.err (!%p6729_p6)
}
  0x60   :  { %s6733_s26 = scalar_lea.vmem %s59_s20, 64  ;;  %p6738_p8 = scmp.lt.s32.totalorder %s59_s20, %s59_s20 }
  0x61   :  { %p6734_p7 = scmp.ne.s32.totalorder %s59_s20, %s6733_s26  ;;  %p6739_p9 = scmp.lt.s32.totalorder %s6733_s26, %s6733_s26 }
  0x63   :  { %p6740_p10 = por %p6739_p9, %p6738_p8 }
  0x65   :  { %p6741_p11 = pnand %p6740_p10, %p6734_p7 }
  0x67   :  { %6744 = shalt.err (!%p6741_p11)
}
  0x68   :  { %61 = dma.hbm_to_vmem [thread:$0]  %s7991_s2, 64, %s59_s20, [#allocation7]  }
  0x69   :  { %s6745_s27 = scalar_lea.hbm %s7996_s7, 16 }
  0x6a   :  { %p6746_p12 = scmp.ne.s32.totalorder %s7996_s7, %s6745_s27  ;;  %p6749_p13 = scmp.lt.u32.totalorder %s6745_s27, %s7996_s7 }
  0x6c   :  { %p6751_p0 = pnand %p6749_p13, %p6746_p12 }
  0x6e   :  { %6754 = shalt.err (!%p6751_p0)
}
  0x6f   :  { %s6755_s29 = scalar_lea.vmem %s87_s22, 16  ;;  %s6759_s18 = scalar_lea.vmem %s87_s22, 32 }
  0x70   :  { %p6756_p1 = scmp.ne.s32.totalorder %s87_s22, %s6755_s29  ;;  %p6760_p2 = scmp.lt.s32.totalorder %s87_s22, %s87_s22 }
  0x71   :  { %p6761_p3 = scmp.lt.s32.totalorder %s6759_s18, %s6755_s29 }
  0x73   :  { %p6762_p4 = por %p6761_p3, %p6760_p2 }
  0x75   :  { %p6763_p5 = pnand %p6762_p4, %p6756_p1 }
  0x77   :  { %6766 = shalt.err (!%p6763_p5)
}
  0x78   :  { %89 = dma.hbm_to_vmem [thread:$0]  %s7996_s7, 16, %s87_s22, [#allocation10]  }
  0x79   :  { %s6901_s30 = smov [#allocation14]   ;;  %s6902_s26 = smov [#allocation15]  }
  0x7a   :  { %s110_s19 = sshll.u32 %s6901_s30, 4  ;;  %s119_s15 = sshll.u32 %s6902_s26, 4  ;;  %s111_s19 = int_to_ptr.vmem [resolvable:$true] %s110_s19  ;;  %s7095_s15 = int_to_ptr.vmem [resolvable:$true] %s119_s15 }
  0x7b   :  { %s6767_s3 = scalar_lea.hbm %s7999_s10, 16 }
  0x7c   :  { %p6768_p6 = scmp.ne.s32.totalorder %s7999_s10, %s6767_s3  ;;  %p6771_p7 = scmp.lt.u32.totalorder %s6767_s3, %s7999_s10 }
  0x7e   :  { %p6773_p8 = pnand %p6771_p7, %p6768_p6 }
  0x80   :  { %6776 = shalt.err (!%p6773_p8)
}
  0x81   :  { %s6777_s7 = scalar_lea.vmem %s111_s19, 16  ;;  %s6781_s22 = scalar_lea.vmem %s111_s19, 32 }
  0x82   :  { %p6778_p9 = scmp.ne.s32.totalorder %s111_s19, %s6777_s7  ;;  %p6782_p10 = scmp.lt.s32.totalorder %s111_s19, %s111_s19 }
  0x83   :  { %p6783_p11 = scmp.lt.s32.totalorder %s6781_s22, %s6777_s7 }
  0x85   :  { %p6784_p12 = por %p6783_p11, %p6782_p10 }
  0x87   :  { %p6785_p13 = pnand %p6784_p12, %p6778_p9 }
  0x89   :  { %6788 = shalt.err (!%p6785_p13)
}
  0x8a   :  { %113 = dma.hbm_to_vmem [thread:$0]  %s7999_s10, 16, %s111_s19, [#allocation13]  }
  0x8b   :  { %s6789_s20 = scalar_lea.hbm %s8000_s11, 512 }
  0x8c   :  { %p6790_p0 = scmp.ne.s32.totalorder %s8000_s11, %s6789_s20  ;;  %p6793_p1 = scmp.lt.u32.totalorder %s6789_s20, %s8000_s11 }
  0x8e   :  { %p6795_p2 = pnand %p6793_p1, %p6790_p0 }
  0x90   :  { %6798 = shalt.err (!%p6795_p2)
}
  0x91   :  { %s6799_s3 = scalar_lea.vmem %s7095_s15, 512  ;;  %p6804_p4 = scmp.lt.s32.totalorder %s7095_s15, %s7095_s15 }
  0x92   :  { %p6800_p3 = scmp.ne.s32.totalorder %s7095_s15, %s6799_s3  ;;  %p6805_p5 = scmp.lt.s32.totalorder %s6799_s3, %s6799_s3 }
  0x94   :  { %p6806_p6 = por %p6805_p5, %p6804_p4 }
  0x96   :  { %p6807_p7 = pnand %p6806_p6, %p6800_p3 }
  0x98   :  { %6810 = shalt.err (!%p6807_p7)
}
  0x99   :  { %s8016_s10 = smov 128  }
  0x9a   :  { %125 = dma.hbm_to_vmem [thread:$0]  %s8000_s11, 512, %s7095_s15, [#allocation16], %s8016_s10, %s8016_s10, %s6894_s0  }
  0x9b   :  { %6877 = dma.done.wait [#allocation4], 128  }
  0x9c   :  { %6878 = vsyncadd [#allocation4], 4294967168 }
  0x9d   :  { %6879 = dma.done.wait [#allocation7], 128  }
  0x9e   :  { %6880 = vsyncadd [#allocation7], 4294967168 }
  0x9f   :  { %6881 = dma.done.wait [#allocation10], 272  }
  0xa0   :  { %6882 = vsyncadd [#allocation10], 4294967024 }
  0xa1   :  { %6883 = dma.done.wait [#allocation13], 528  }
  0xa2   :  { %6884 = vsyncadd [#allocation13], 4294966768 }
  0xa3   :  { %6885 = dma.done.wait [#allocation16], 512  }
  0xa4   :  { %6886 = vsyncadd [#allocation16], 4294966784  ;;  %v6903_v0 = vmov 0.0   ;;  %vm6904_vm0 = vmmov 0   ;;  %vm158_vm1 = vcmask 130048   ;;  %v248_v6 = vld [vmem:[#allocation9] sm:$0xff] }
  0xa5   :  { %5570 = vmatprep.subr.mxu1 %v6903_v0  ;;  %5572 = vmatprep.mubr.msk.f32.mxu1 %vm6904_vm0, %v6903_v0  ;;  %v157_v1 = vld [vmem:[#allocation8] sm:$0xf]  ;;  %v156_v2 = vld [vmem:[#allocation6] sm:$0xf]  ;;  %v244_v3 = vld [vmem:[#allocation3] sm:$0xf] }
  0xa6   :  { %5582 = vmatprep.subr.mxu0 %v6903_v0  ;;  %5584 = vmatprep.mubr.msk.f32.mxu0 %vm6904_vm0, %v6903_v0  ;;  %v245_v4 = vld [vmem:[#allocation3 + $0x4] sm:$0xf]  ;;  %v7136_v5 = vadd.f32 %v244_v3, %v156_v2  ;;  %v249_v7 = vld [vmem:[#allocation9 + $0x8] sm:$0xff]  ;;  %v6905_v9 = vmov 0.0|0.0   ;;  %v5317_v14 = vld [vmem:[%s7993_s4] ss:$0 sm:$0xff] }
  0xa7   :  { %5571 = vmatpush3.xpose.msk.msra.mxu1 %vm158_vm1, %v157_v1  ;;  %v7138_v8 = vadd.f32 %v245_v4, %v156_v2  ;;  %v6001_v10 = vpack.c.bf16 %v249_v7, %v248_v6  ;;  %s6906_s15 = smov 112   ;;  %vm236_vm2 = vcmask 27648   ;;  %vm426_vm3 = vcmask 1043456   ;;  %v332_v46 = vld [vmem:[%s7994_s5] sm:$0xf]  ;;  %v897_v50 = vld [vmem:[%s7995_s6 + $0x8] sm:$0xff] }
  0xa8   :  { %6000 = vmatprep.subr.bf16.mxu1 %v6905_v9  ;;  %vm422_vm4 = vcmask 31744   ;;  %v896_v49 = vld [vmem:[%s7995_s6] sm:$0xff]  ;;  %v898_v55 = vld [vmem:[%s7995_s6 + $0x10] sm:$0xff]  ;;  %v899_v56 = vld [vmem:[%s7995_s6 + $0x18] sm:$0xff]  ;;  %s6907_s6 = smov 32   ;;  %vm1040_vm5 = vcmask 1041409  }
  0xa9   :  { %v259_v11 = vcombine.low %v7136_v5, %v7138_v8  ;;  %v7191_v53 = vpack.c.bf16 %v897_v50, %v896_v49  ;;  %v7202_v57 = vpack.c.bf16 %v899_v56, %v898_v55  ;;  %v7222_v4 = vld [vmem:[#allocation11] ss:$0 sm:$0xff]  ;;  %vm1045_vm6 = vcmask 254976   ;;  %s6908_s24 = smov [#allocation18]  }
  0xaa   :  { %5573 = vmatmul.mubr.msk.f32.vlgmr.msra.gmra.mrb[0].mxu1 %vm158_vm1, %v156_v2  ;;  %vm901_vm7 = vcmask 261120   ;;  %vm1184_vm8 = vcmask 1042434   ;;  %vm1333_vm9 = vcmask 1043459   ;;  %vm1483_vm10 = vcmask 1044484   ;;  %s5285_s5 = sshll.u32 %s6908_s24, 4  ;;  %s5286_s5 = int_to_ptr.vmem [resolvable:$true] %s5285_s5 }
  0xab   :  { %6002 = vmatpush3.bf16.msra.mxu1 %v6001_v10  ;;  %5579 = vmatprep.mubr.msk.f32.mxu1 %vm6904_vm0, %v6903_v0  ;;  %vm1633_vm11 = vcmask 1045509   ;;  %vm1783_vm12 = vcmask 1046534   ;;  %vm1933_vm13 = vcmask 1047559   ;;  %vm1338_vm14 = vcmask 257026   ;;  %s6811_s7 = scalar_lea.vmem %s5286_s5, 32  ;;  %p6816_p9 = scmp.lt.s32.totalorder %s5286_s5, %s5286_s5 }
  0xac   :  { %5587 = vmatprep.subr.mxu1 %v6903_v0  ;;  %vm1189_vm15 = vcmask 256001   ;;  %p6812_p8 = scmp.ne.s32.totalorder %s5286_s5, %s6811_s7  ;;  %p6817_p10 = scmp.lt.s32.totalorder %s6811_s7, %s6811_s7 }
  0xae   :  { %5580 = vmatmul.mubr.msk.f32.vlgmr.msra.gmra.mrb[2].mxu1 %vm158_vm1, %v259_v11  ;;  %p6818_p11 = por %p6817_p10, %p6816_p9 }
  0xaf   :  { %5589 = vmatprep.mubr.msk.f32.mxu1 %vm6904_vm0, %v6903_v0  ;;  %5588 = vmatpush3.msk.msra.mxu1 %vm426_vm3, %v7136_v5 }
  0xb0   :  { %5597 = vmatprep.subr.mxu1 %v6903_v0  ;;  %p6819_p12 = pnand %p6818_p11, %p6812_p8 }
 0x17d   :  { %v7150_v12 = vpop.f32.mrb[0].mxu1 }
 0x17e   :  { %v5574_v13 = vpop.f32.mrb[1].mxu1 }
 0x181   :  { %v328_v15 = vpop.f32.mrb[2].mxu1 }
 0x182   :  { %v329_v16 = vadd.f32 %v5317_v14, %v328_v15  ;;  %v5581_v17 = vpop.f32.mrb[3].mxu1 }
 0x184   :  { %334 = vrot.lane.b32.xlu0 %v329_v16, %s6906_s15  ;;  %v617_v28 = vrot.slane %v329_v16, 4 }
 0x1f6   :  { %v335_v18 = vpop.permute.xlu0 %334 }
 0x1f7   :  { %5583 = vmatpush3.xpose.msk.msra.mxu0 %vm158_vm1, %v335_v18 }
 0x1f8   :  { %5592 = vmatprep.subr.msk.mxu0 %vm426_vm3, %v332_v46 }
 0x1fa   :  { %5585 = vmatmul.mubr.msk.f32.vlgmr.msra.gmra.mrb[0].mxu0 %vm158_vm1, %v329_v16 }
 0x1fb   :  { %5593 = vmatpush3.msk.msra.mxu0 %vm426_vm3, %v332_v46 }
 0x1fc   :  { %5602 = vmatprep.subr.mxu0 %v6903_v0 }
 0x2cd   :  { %v406_v19 = vpop.f32.mrb[0].mxu0 }
 0x2ce   :  { %v410_v20 = vmul.f32 0.25, %v406_v19  ;;  %v5586_v21 = vpop.f32.mrb[1].mxu0 }
 0x2d0   :  { %v411_v22 = vsel %vm236_vm2, %v410_v20, -inf }
 0x2d1   :  { %412 = vmax.xlane.f32.xlu0 %v411_v22 }
 0x35e   :  { %v413_v23 = vpop.xlane.xlu0 %412 }
 0x35f   :  { %v414_v24 = vsub.f32 %v410_v20, %v413_v23 }
 0x361   :  { %v415_v25 = vmul.f32 1.442695, %v414_v24 }
 0x363   :  { %6235 = vpow2.f32 %v415_v25 }
 0x36d   :  { %v6236_v26 = vpop.eup %6235 }
 0x36e   :  { %v417_v27 = vsel %vm236_vm2, %v6236_v26, 0.0 }
 0x36f   :  { %418 = vadd.xlane.f32.xlu1 %v417_v27 }
 0x380   :  { %618 = vrot.lane.b32.xlu1 %v617_v28, %s6906_s15 }
 0x3fc   :  { %v419_v29 = vpop.xlane.xlu1 %418 }
 0x3fd   :  { %6237 = vrcp.f32 %v419_v29 }
 0x400   :  { %v619_v32 = vpop.permute.xlu1 %618 }
 0x407   :  { %v6238_v30 = vpop.eup %6237 }
 0x408   :  { %v421_v31 = vmul.f32 %v6238_v30, %v6236_v26 }
 0x40a   :  { %5590 = vmatmul.mubr.msk.f32.vlgmr.msra.gmra.mrb[4].mxu1 %vm422_vm4, %v421_v31 }
 0x40b   :  { %5598 = vmatpush3.xpose.msk.msra.mxu1 %vm158_vm1, %v619_v32  ;;  %5599 = vmatprep.mubr.msk.f32.mxu1 %vm6904_vm0, %v6903_v0 }
 0x40c   :  { %5607 = vmatprep.subr.msk.mxu1 %vm426_vm3, %v332_v46 }
 0x40e   :  { %5600 = vmatmul.mubr.msk.f32.vlgmr.msra.gmra.mrb[6].mxu1 %vm158_vm1, %v617_v28  ;;  %vm1638_vm1 = vcmask 259076  }
 0x40f   :  { %5608 = vmatpush3.msk.msra.mxu1 %vm426_vm3, %v332_v46 }
 0x410   :  { %6009 = vmatprep.subr.bf16.mxu1 %v6905_v9 }
 0x4dd   :  { %v495_v33 = vpop.f32.mrb[4].mxu1 }
 0x4de   :  { %v5591_v34 = vpop.f32.mrb[5].mxu1 }
 0x4e1   :  { %v690_v35 = vpop.f32.mrb[6].mxu1 }
 0x4e2   :  { %v694_v36 = vmul.f32 0.25, %v690_v35  ;;  %v5601_v37 = vpop.f32.mrb[7].mxu1 }
 0x4e4   :  { %v695_v38 = vsel %vm236_vm2, %v694_v36, -inf }
 0x4e5   :  { %696 = vmax.xlane.f32.xlu1 %v695_v38 }
 0x572   :  { %v697_v39 = vpop.xlane.xlu1 %696 }
 0x573   :  { %v698_v40 = vsub.f32 %v694_v36, %v697_v39 }
 0x575   :  { %v699_v41 = vmul.f32 1.442695, %v698_v40 }
 0x577   :  { %6239 = vpow2.f32 %v699_v41 }
 0x578   :  { %6241 = vtanh.f32 %v495_v33 }
 0x581   :  { %v6240_v42 = vpop.eup %6239 }
 0x582   :  { %v701_v43 = vsel %vm236_vm2, %v6240_v42, 0.0  ;;  %v6242_v44 = vpop.eup %6241 }
 0x583   :  { %702 = vadd.xlane.f32.xlu0 %v701_v43  ;;  %v500_v45 = vadd.f32 %v6242_v44, %v7136_v5 }
 0x5b0   :  { %501 = vxpose.xlu0.b32.start.end [1/1] (short) (narrow) %v500_v45, 16 }
 0x610   :  { %v703_v47 = vpop.xlane.xlu0 %702 }
 0x611   :  { %6243 = vrcp.f32 %v703_v47 }
 0x61b   :  { %v6244_v51 = vpop.eup %6243 }
 0x61c   :  { %v705_v54 = vmul.f32 %v6244_v51, %v6240_v42 }
 0x630   :  { %v517_v48 = vpop.trf.xlu0 }
 0x631   :  { %5594 = vmatprep.mubr.msk.f32.mxu0 %vm422_vm4, %v517_v48 }
 0x634   :  { %v518_v52 = vpop.trf.xlu0 }
 0x635   :  { %5595 = vmatmul.mubr.msk.f32.vlgmr.msra.gmra.mrb[2].mxu0 %vm422_vm4, %v518_v52 }
 0x636   :  { %5603 = vmatpush3.msk.msra.mxu0 %vm426_vm3, %v7138_v8  ;;  %5604 = vmatprep.mubr.msk.f32.mxu0 %vm6904_vm0, %v6903_v0  ;;  %vm1488_vm3 = vcmask 258051  }
 0x637   :  { %6003 = vmatprep.subr.bf16.mxu0 %v6905_v9 }
 0x639   :  { %5605 = vmatmul.mubr.msk.f32.vlgmr.msra.gmra.mrb[4].mxu0 %vm422_vm4, %v705_v54 }
 0x63a   :  { %6005 = vmatpush3.bf16.msra.mxu0 %v7191_v53  ;;  %5620 = vmatprep.mubr.msk.f32.mxu0 %vm6904_vm0, %v6903_v0 }
 0x63b   :  { %6006 = vmatprep.subr.bf16.mxu0 %v6905_v9 }
 0x63e   :  { %6008 = vmatpush3.bf16.msra.mxu0 %v7202_v57 }
 0x63f   :  { %6015 = vmatprep.subr.bf16.mxu0 %v6905_v9 }
 0x641   :  { %5621 = vmatmul.mubr.f32.vlgmr.msra.gmra.mrb[6].mxu0 %v6903_v0 }
 0x642   :  { %6017 = vmatpush3.bf16.msra.mxu0 %v7191_v53  ;;  %5642 = vmatprep.mubr.msk.f32.mxu0 %vm6904_vm0, %v6903_v0 }
 0x643   :  { %6018 = vmatprep.subr.bf16.mxu0 %v6905_v9 }
 0x646   :  { %6020 = vmatpush3.bf16.msra.mxu0 %v7202_v57 }
 0x647   :  { %6027 = vmatprep.subr.bf16.mxu0 %v6905_v9 }
 0x708   :  { %v7216_v58 = vpop.f32.mrb[2].mxu0 }
 0x709   :  { %v7218_v59 = vpop.f32.mrb[3].mxu0 }
 0x70c   :  { %v777_v60 = vpop.f32.mrb[4].mxu0 }
 0x70d   :  { %6245 = vtanh.f32 %v777_v60  ;;  %v5606_v61 = vpop.f32.mrb[5].mxu0 }
 0x714   :  { %v971_v62 = vpop.f32.mrb[6].mxu0 }
 0x715   :  { %v979_v63 = vadd.f32 %v971_v62, %v7218_v59  ;;  %v5622_v1 = vpop.f32.mrb[7].mxu0 }
 0x717   :  { %v6246_v2 = vpop.eup %6245  ;;  %v987_v5 = vadd.f32 %v7222_v4, %v979_v63 }
 0x718   :  { %v782_v3 = vadd.f32 %v6246_v2, %v7138_v8  ;;  %v976_v8 = vrot.slane %v971_v62, 1 }
 0x719   :  { %6247 = vtanh.f32 %v987_v5  ;;  %v989_v18 = vsub.f32 0.0, %v987_v5 }
 0x71a   :  { %783 = vxpose.xlu1.b32.start.end [1/1] (short) (narrow) %v782_v3, 16 }
 0x71b   :  { %v991_v20 = vmul.f32 1.442695, %v989_v18 }
 0x723   :  { %v6248_v6 = vpop.eup %6247 }
 0x73c   :  { %1007 = vrot.lane.b32.xlu1 %v6248_v6, %s6907_s6 }
 0x79a   :  { %v799_v7 = vpop.trf.xlu1 }
 0x79b   :  { %5609 = vmatprep.mubr.msk.f32.mxu1 %vm422_vm4, %v799_v7 }
 0x79e   :  { %v800_v10 = vpop.trf.xlu1 }
 0x79f   :  { %5610 = vmatmul.mubr.msk.f32.vlgmr.msra.gmra.mrb[8].mxu1 %vm422_vm4, %v800_v10  ;;  %vm1788_vm4 = vcmask 260101  }
 0x7a0   :  { %6011 = vmatpush3.bf16.msra.mxu1 %v7191_v53  ;;  %5631 = vmatprep.mubr.msk.f32.mxu1 %vm6904_vm0, %v6903_v0 }
 0x7a1   :  { %6012 = vmatprep.subr.bf16.mxu1 %v6905_v9 }
 0x7a4   :  { %6014 = vmatpush3.bf16.msra.mxu1 %v7202_v57 }
 0x7a5   :  { %6021 = vmatprep.subr.bf16.mxu1 %v6905_v9 }
 0x7ae   :  { %v1008_v28 = vpop.permute.xlu1 %1007 }
 0x872   :  { %v7234_v11 = vpop.f32.mrb[8].mxu1 }
 0x873   :  { %v7236_v13 = vpop.f32.mrb[9].mxu1 }
 0x874   :  { %v980_v14 = vadd.f32 %v976_v8, %v7236_v13 }
 0x876   :  { %v988_v15 = vadd.f32 %v7222_v4, %v980_v14 }
 0x878   :  { %6249 = vtanh.f32 %v988_v15  ;;  %v990_v17 = vsub.f32 0.0, %v988_v15 }
 0x87a   :  { %v993_v19 = vmul.f32 1.442695, %v990_v17 }
 0x87c   :  { %6251 = vpow2.f32 %v993_v19 }
 0x87d   :  { %6253 = vpow2.f32 %v991_v20 }
 0x882   :  { %v6250_v16 = vpop.eup %6249 }
 0x883   :  { %1009 = vrot.lane.b32.xlu0 %v6250_v16, %s6907_s6 }
 0x886   :  { %v6252_v21 = vpop.eup %6251 }
 0x887   :  { %v996_v22 = vadd.f32 1.0, %v6252_v21  ;;  %v6254_v23 = vpop.eup %6253 }
 0x888   :  { %v995_v24 = vadd.f32 1.0, %v6254_v23 }
 0x889   :  { %6255 = vrcp.f32 %v996_v22 }
 0x88a   :  { %6257 = vrcp.f32 %v995_v24 }
 0x893   :  { %v6256_v25 = vpop.eup %6255 }
 0x894   :  { %v6258_v29 = vpop.eup %6257  ;;  %v1004_v31 = vmul.f32 0.0, %v6256_v25 }
 0x895   :  { %v1013_v30 = vmul.f32 %v6258_v29, %v1008_v28  ;;  %v1003_v34 = vmul.f32 0.0, %v6258_v29 }
 0x8f5   :  { %v1010_v26 = vpop.permute.xlu0 %1009 }
 0x8f6   :  { %v1014_v27 = vmul.f32 %v6256_v25, %v1010_v26 }
 0x8f8   :  { %1019 = vrot.lane.b32.xlu0 %v1014_v27, %s6907_s6 }
 0x8fc   :  { %1017 = vrot.lane.b32.xlu0 %v1013_v30, %s6907_s6 }
 0x96a   :  { %v1020_v32 = vpop.permute.xlu0 %1019 }
 0x96b   :  { %v7243_v33 = vadd.f32 %v1020_v32, %v1004_v31 }
 0x96d   :  { %6259 = vtanh.f32 %v7243_v33  ;;  %v1144_v15 = vrot.slane %v7243_v33, 7 }
 0x96e   :  { %v1018_v35 = vpop.permute.xlu0 %1017 }
 0x96f   :  { %v7246_v36 = vadd.f32 %v1018_v35, %v1003_v34 }
 0x971   :  { %6261 = vtanh.f32 %v7246_v36  ;;  %v1143_v16 = vrot.slane %v7246_v36, 7 }
 0x977   :  { %v6260_v37 = vpop.eup %6259 }
 0x978   :  { %1031 = vrot.lane.b32.xlu0 %v6260_v37, %s6907_s6 }
 0x97b   :  { %v6262_v38 = vpop.eup %6261 }
 0x97c   :  { %1029 = vrot.lane.b32.xlu0 %v6262_v38, %s6907_s6 }
 0x9ea   :  { %v1032_v39 = vpop.permute.xlu0 %1031 }
 0x9eb   :  { %v1036_v40 = vmul.f32 %v6256_v25, %v1032_v39 }
 0x9ed   :  { %v1039_v42 = vrot.slane %v1036_v40, 7 }
 0x9ee   :  { %v1030_v41 = vpop.permute.xlu0 %1029 }
 0x9ef   :  { %v1035_v43 = vmul.f32 %v6258_v29, %v1030_v41 }
 0x9f1   :  { %v1041_v44 = vsel %vm1040_vm5, %v1039_v42, %v1035_v43 }
 0x9f2   :  { %1042 = vrot.lane.b32.xlu1 %v1041_v44, %s6897_s9 }
 0xa64   :  { %v1043_v45 = vpop.permute.xlu1 %1042 }
 0xa65   :  { %1046 = vst.msk [vmem:[#allocation2] sm:$0x3] %vm1045_vm6, %v1043_v45  ;;  %5632 = vmatmul.mubr.msk.f32.vlgmr.msra.gmra.mrb[10].mxu1 %vm901_vm7, %v1043_v45 }
 0xa66   :  { %6023 = vmatpush3.bf16.msra.mxu1 %v7191_v53  ;;  %5653 = vmatprep.mubr.msk.f32.mxu1 %vm6904_vm0, %v6903_v0 }
 0xa67   :  { %6024 = vmatprep.subr.bf16.mxu1 %v6905_v9 }
 0xa6a   :  { %6026 = vmatpush3.bf16.msra.mxu1 %v7202_v57 }
 0xa6b   :  { %6033 = vmatprep.subr.bf16.mxu1 %v6905_v9 }
 0xb38   :  { %v1115_v46 = vpop.f32.mrb[10].mxu1 }
 0xb39   :  { %v1120_v47 = vrot.slane %v1115_v46, 7  ;;  %v1124_v48 = vadd.f32 %v1115_v46, %v7236_v13  ;;  %v5633_v49 = vpop.f32.mrb[11].mxu1 }
 0xb3b   :  { %v1123_v50 = vadd.f32 %v1120_v47, %v7218_v59  ;;  %v1126_v51 = vadd.f32 %v7222_v4, %v1124_v48 }
 0xb3d   :  { %v1125_v52 = vadd.f32 %v7222_v4, %v1123_v50  ;;  %6263 = vtanh.f32 %v1126_v51  ;;  %v1128_v56 = vsub.f32 0.0, %v1126_v51 }
 0xb3f   :  { %6265 = vtanh.f32 %v1125_v52  ;;  %v1127_v60 = vsub.f32 0.0, %v1125_v52  ;;  %v1131_v61 = vmul.f32 1.442695, %v1128_v56 }
 0xb41   :  { %v1129_v62 = vmul.f32 1.442695, %v1127_v60  ;;  %6267 = vpow2.f32 %v1131_v61 }
 0xb43   :  { %6269 = vpow2.f32 %v1129_v62 }
 0xb47   :  { %v6264_v54 = vpop.eup %6263 }
 0xb48   :  { %1153 = vrot.lane.b32.xlu1 %v6264_v54, %s6907_s6 }
 0xb49   :  { %v6266_v55 = vpop.eup %6265 }
 0xb4a   :  { %1151 = vrot.lane.b32.xlu0 %v6266_v55, %s6907_s6 }
 0xb4b   :  { %v6268_v63 = vpop.eup %6267 }
 0xb4c   :  { %v1134_v2 = vadd.f32 1.0, %v6268_v63 }
 0xb4d   :  { %v6270_v1 = vpop.eup %6269 }
 0xb4e   :  { %v1133_v3 = vadd.f32 1.0, %v6270_v1  ;;  %6271 = vrcp.f32 %v1134_v2 }
 0xb50   :  { %6273 = vrcp.f32 %v1133_v3 }
 0xb58   :  { %v6272_v5 = vpop.eup %6271 }
 0xb59   :  { %v1148_v17 = vmul.f32 %v6272_v5, %v1144_v15 }
 0xb5a   :  { %v6274_v10 = vpop.eup %6273 }
 0xb5b   :  { %v1147_v20 = vmul.f32 %v6274_v10, %v1143_v16 }
 0xbba   :  { %v1154_v6 = vpop.permute.xlu1 %1153 }
 0xbbb   :  { %v1158_v7 = vmul.f32 %v6272_v5, %v1154_v6 }
 0xbbc   :  { %v1152_v8 = vpop.permute.xlu0 %1151 }
 0xbbd   :  { %v1157_v14 = vmul.f32 %v6274_v10, %v1152_v8  ;;  %1163 = vrot.lane.b32.xlu1 %v1158_v7, %s6907_s6 }
 0xbbf   :  { %1161 = vrot.lane.b32.xlu0 %v1157_v14, %s6907_s6 }
 0xc2f   :  { %v1164_v18 = vpop.permute.xlu1 %1163 }
 0xc30   :  { %v7271_v19 = vadd.f32 %v1164_v18, %v1148_v17 }
 0xc31   :  { %v1162_v21 = vpop.permute.xlu0 %1161 }
 0xc32   :  { %6275 = vtanh.f32 %v7271_v19  ;;  %v1167_v22 = vadd.f32 %v1162_v21, %v1147_v20  ;;  %v1293_v63 = vrot.slane %v7271_v19, 7 }
 0xc34   :  { %6277 = vtanh.f32 %v1167_v22  ;;  %v1292_v62 = vrot.slane %v1167_v22, 7 }
 0xc3c   :  { %v6276_v23 = vpop.eup %6275 }
 0xc3d   :  { %1175 = vrot.lane.b32.xlu1 %v6276_v23, %s6907_s6 }
 0xc3e   :  { %v6278_v24 = vpop.eup %6277 }
 0xc3f   :  { %1173 = vrot.lane.b32.xlu0 %v6278_v24, %s6907_s6 }
 0xcaf   :  { %v1176_v25 = vpop.permute.xlu1 %1175 }
 0xcb0   :  { %v1180_v26 = vmul.f32 %v6272_v5, %v1176_v25 }
 0xcb1   :  { %v1174_v27 = vpop.permute.xlu0 %1173 }
 0xcb2   :  { %v1183_v28 = vrot.slane %v1180_v26, 7  ;;  %v1179_v29 = vmul.f32 %v6274_v10, %v1174_v27 }
 0xcb4   :  { %v1191_v30 = vrot.slane %v1179_v29, 1  ;;  %v7277_v31 = vsel %vm1184_vm8, %v1183_v28, %v1179_v29 }
 0xcb6   :  { %v1192_v32 = vsel %vm1040_vm5, %v1180_v26, %v1191_v30 }
 0xcb7   :  { %1193 = vrot.lane.b32.xlu0 %v1192_v32, %s6897_s9 }
 0xd29   :  { %v1194_v33 = vpop.permute.xlu0 %1193 }
 0xd2a   :  { %5643 = vmatmul.mubr.msk.f32.vlgmr.msra.gmra.mrb[8].mxu0 %vm901_vm7, %v1194_v33 }
 0xd2b   :  { %6029 = vmatpush3.bf16.msra.mxu0 %v7191_v53  ;;  %5664 = vmatprep.mubr.msk.f32.mxu0 %vm6904_vm0, %v6903_v0 }
 0xd2c   :  { %6030 = vmatprep.subr.bf16.mxu0 %v6905_v9 }
 0xd2f   :  { %6032 = vmatpush3.bf16.msra.mxu0 %v7202_v57 }
 0xd30   :  { %6039 = vmatprep.subr.bf16.mxu0 %v6905_v9 }
 0xdfd   :  { %v1263_v34 = vpop.f32.mrb[8].mxu0 }
 0xdfe   :  { %v1268_v35 = vrot.slane %v1263_v34, 6  ;;  %v1269_v36 = vrot.slane %v1263_v34, 7  ;;  %v5644_v37 = vpop.f32.mrb[9].mxu0 }
 0xe00   :  { %v1272_v38 = vadd.f32 %v1268_v35, %v7218_v59  ;;  %v1273_v39 = vadd.f32 %v1269_v36, %v7236_v13 }
 0xe02   :  { %v1274_v40 = vadd.f32 %v7222_v4, %v1272_v38  ;;  %v1275_v41 = vadd.f32 %v7222_v4, %v1273_v39 }
 0xe04   :  { %6279 = vtanh.f32 %v1274_v40  ;;  %v1276_v44 = vsub.f32 0.0, %v1274_v40  ;;  %v1277_v45 = vsub.f32 0.0, %v1275_v41 }
 0xe05   :  { %6281 = vtanh.f32 %v1275_v41 }
 0xe06   :  { %v1278_v46 = vmul.f32 1.442695, %v1276_v44  ;;  %v1280_v47 = vmul.f32 1.442695, %v1277_v45 }
 0xe08   :  { %6283 = vpow2.f32 %v1278_v46 }
 0xe09   :  { %6285 = vpow2.f32 %v1280_v47 }
 0xe0e   :  { %v6280_v42 = vpop.eup %6279 }
 0xe0f   :  { %v6282_v43 = vpop.eup %6281  ;;  %1300 = vrot.lane.b32.xlu1 %v6280_v42, %s6907_s6 }
 0xe10   :  { %1302 = vrot.lane.b32.xlu0 %v6282_v43, %s6907_s6 }
 0xe12   :  { %v6284_v48 = vpop.eup %6283 }
 0xe13   :  { %v6286_v49 = vpop.eup %6285  ;;  %v1282_v50 = vadd.f32 1.0, %v6284_v48 }
 0xe14   :  { %v1283_v51 = vadd.f32 1.0, %v6286_v49 }
 0xe15   :  { %6287 = vrcp.f32 %v1282_v50 }
 0xe16   :  { %6289 = vrcp.f32 %v1283_v51 }
 0xe1f   :  { %v6288_v52 = vpop.eup %6287 }
 0xe20   :  { %v6290_v55 = vpop.eup %6289  ;;  %v1296_v1 = vmul.f32 %v6288_v52, %v1292_v62 }
 0xe21   :  { %v1297_v2 = vmul.f32 %v6290_v55, %v1293_v63 }
 0xe81   :  { %v1301_v54 = vpop.permute.xlu1 %1300 }
 0xe82   :  { %v1303_v56 = vpop.permute.xlu0 %1302  ;;  %v1306_v60 = vmul.f32 %v6288_v52, %v1301_v54 }
 0xe83   :  { %v1307_v61 = vmul.f32 %v6290_v55, %v1303_v56 }
 0xe84   :  { %1310 = vrot.lane.b32.xlu1 %v1306_v60, %s6907_s6 }
 0xe85   :  { %1312 = vrot.lane.b32.xlu0 %v1307_v61, %s6907_s6 }
 0xef6   :  { %v1311_v3 = vpop.permute.xlu1 %1310 }
 0xef7   :  { %v1313_v5 = vpop.permute.xlu0 %1312  ;;  %v7297_v6 = vadd.f32 %v1311_v3, %v1296_v1 }
 0xef8   :  { %v7299_v7 = vadd.f32 %v1313_v5, %v1297_v2 }
 0xef9   :  { %6291 = vtanh.f32 %v7297_v6  ;;  %v1442_v49 = vrot.slane %v7297_v6, 7 }
 0xefa   :  { %6293 = vtanh.f32 %v7299_v7  ;;  %v1443_v50 = vrot.slane %v7299_v7, 7 }
 0xf03   :  { %v6292_v10 = vpop.eup %6291 }
 0xf04   :  { %v6294_v8 = vpop.eup %6293  ;;  %1322 = vrot.lane.b32.xlu1 %v6292_v10, %s6907_s6 }
 0xf05   :  { %1324 = vrot.lane.b32.xlu0 %v6294_v8, %s6907_s6 }
 0xf76   :  { %v1323_v14 = vpop.permute.xlu1 %1322 }
 0xf77   :  { %v1325_v15 = vpop.permute.xlu0 %1324  ;;  %v1328_v16 = vmul.f32 %v6288_v52, %v1323_v14 }
 0xf78   :  { %v1329_v17 = vmul.f32 %v6290_v55, %v1325_v15 }
 0xf79   :  { %v1340_v18 = vrot.slane %v1328_v16, 2 }
 0xf7a   :  { %v1332_v19 = vrot.slane %v1329_v17, 7  ;;  %v1341_v20 = vrot.slane %v1329_v17, 1 }
 0xf7c   :  { %v1342_v21 = vsel %vm1040_vm5, %v1341_v20, %v1340_v18  ;;  %v7307_v22 = vsel %vm1333_vm9, %v1332_v19, %v1328_v16 }
 0xf7d   :  { %1343 = vrot.lane.b32.xlu1 %v1342_v21, %s6897_s9 }
 0xfef   :  { %v1344_v23 = vpop.permute.xlu1 %1343 }
 0xff0   :  { %5654 = vmatmul.mubr.msk.f32.vlgmr.msra.gmra.mrb[12].mxu1 %vm901_vm7, %v1344_v23 }
 0xff1   :  { %6035 = vmatpush3.bf16.msra.mxu1 %v7191_v53  ;;  %5675 = vmatprep.mubr.msk.f32.mxu1 %vm6904_vm0, %v6903_v0 }
 0xff2   :  { %6036 = vmatprep.subr.bf16.mxu1 %v6905_v9 }
 0xff5   :  { %6038 = vmatpush3.bf16.msra.mxu1 %v7202_v57 }
 0xff6   :  { %6045 = vmatprep.subr.bf16.mxu1 %v6905_v9 }
0x10c3   :  { %v1413_v24 = vpop.f32.mrb[12].mxu1 }
0x10c4   :  { %v1418_v25 = vrot.slane %v1413_v24, 5  ;;  %v1419_v26 = vrot.slane %v1413_v24, 6  ;;  %v5655_v27 = vpop.f32.mrb[13].mxu1 }
0x10c6   :  { %v1422_v28 = vadd.f32 %v1418_v25, %v7218_v59  ;;  %v1423_v29 = vadd.f32 %v1419_v26, %v7236_v13 }
0x10c8   :  { %v1424_v30 = vadd.f32 %v7222_v4, %v1422_v28  ;;  %v1425_v32 = vadd.f32 %v7222_v4, %v1423_v29 }
0x10ca   :  { %6295 = vtanh.f32 %v1424_v30  ;;  %v1426_v35 = vsub.f32 0.0, %v1424_v30  ;;  %v1427_v36 = vsub.f32 0.0, %v1425_v32 }
0x10cb   :  { %6297 = vtanh.f32 %v1425_v32 }
0x10cc   :  { %v1428_v37 = vmul.f32 1.442695, %v1426_v35  ;;  %v1430_v38 = vmul.f32 1.442695, %v1427_v36 }
0x10ce   :  { %6299 = vpow2.f32 %v1428_v37 }
0x10cf   :  { %6301 = vpow2.f32 %v1430_v38 }
0x10d4   :  { %v6296_v33 = vpop.eup %6295 }
0x10d5   :  { %v6298_v34 = vpop.eup %6297  ;;  %1450 = vrot.lane.b32.xlu0 %v6296_v33, %s6907_s6 }
0x10d6   :  { %1452 = vrot.lane.b32.xlu1 %v6298_v34, %s6907_s6 }
0x10d8   :  { %v6300_v39 = vpop.eup %6299 }
0x10d9   :  { %v6302_v40 = vpop.eup %6301  ;;  %v1432_v41 = vadd.f32 1.0, %v6300_v39 }
0x10da   :  { %v1433_v42 = vadd.f32 1.0, %v6302_v40 }
0x10db   :  { %6303 = vrcp.f32 %v1432_v41 }
0x10dc   :  { %6305 = vrcp.f32 %v1433_v42 }
0x10e5   :  { %v6304_v43 = vpop.eup %6303 }
0x10e6   :  { %v6306_v45 = vpop.eup %6305  ;;  %v1446_v51 = vmul.f32 %v6304_v43, %v1442_v49 }
0x10e7   :  { %v1447_v52 = vmul.f32 %v6306_v45, %v1443_v50 }
0x1147   :  { %v1451_v44 = vpop.permute.xlu0 %1450 }
0x1148   :  { %v1453_v46 = vpop.permute.xlu1 %1452  ;;  %v1456_v47 = vmul.f32 %v6304_v43, %v1451_v44 }
0x1149   :  { %v1457_v48 = vmul.f32 %v6306_v45, %v1453_v46 }
0x114a   :  { %1460 = vrot.lane.b32.xlu0 %v1456_v47, %s6907_s6 }
0x114b   :  { %1462 = vrot.lane.b32.xlu1 %v1457_v48, %s6907_s6 }
0x11bc   :  { %v1461_v54 = vpop.permute.xlu0 %1460 }
0x11bd   :  { %v1463_v55 = vpop.permute.xlu1 %1462  ;;  %v7327_v56 = vadd.f32 %v1461_v54, %v1446_v51 }
0x11be   :  { %v7329_v60 = vadd.f32 %v1463_v55, %v1447_v52 }
0x11bf   :  { %6307 = vtanh.f32 %v7327_v56  ;;  %v1592_v41 = vrot.slane %v7327_v56, 7 }
0x11c0   :  { %6309 = vtanh.f32 %v7329_v60  ;;  %v1593_v42 = vrot.slane %v7329_v60, 7 }
0x11c9   :  { %v6308_v61 = vpop.eup %6307 }
0x11ca   :  { %v6310_v62 = vpop.eup %6309  ;;  %1472 = vrot.lane.b32.xlu0 %v6308_v61, %s6907_s6 }
0x11cb   :  { %1474 = vrot.lane.b32.xlu1 %v6310_v62, %s6907_s6 }
0x123c   :  { %v1473_v63 = vpop.permute.xlu0 %1472 }
0x123d   :  { %v1475_v1 = vpop.permute.xlu1 %1474  ;;  %v1478_v2 = vmul.f32 %v6304_v43, %v1473_v63 }
0x123e   :  { %v1479_v3 = vmul.f32 %v6306_v45, %v1475_v1 }
0x123f   :  { %v1490_v5 = vrot.slane %v1478_v2, 3 }
0x1240   :  { %v1482_v6 = vrot.slane %v1479_v3, 7  ;;  %v1491_v7 = vrot.slane %v1479_v3, 2 }
0x1242   :  { %v1492_v10 = vsel %vm1040_vm5, %v1491_v7, %v1490_v5  ;;  %v7337_v8 = vsel %vm1483_vm10, %v1482_v6, %v1478_v2 }
0x1243   :  { %1493 = vrot.lane.b32.xlu0 %v1492_v10, %s6897_s9 }
0x12b5   :  { %v1494_v14 = vpop.permute.xlu0 %1493 }
0x12b6   :  { %5665 = vmatmul.mubr.msk.f32.vlgmr.msra.gmra.mrb[10].mxu0 %vm901_vm7, %v1494_v14 }
0x12b7   :  { %6041 = vmatpush3.bf16.msra.mxu0 %v7191_v53  ;;  %5686 = vmatprep.mubr.msk.f32.mxu0 %vm6904_vm0, %v6903_v0 }
0x12b8   :  { %6042 = vmatprep.subr.bf16.mxu0 %v6905_v9 }
0x12bb   :  { %6044 = vmatpush3.bf16.msra.mxu0 %v7202_v57 }
0x12bc   :  { %6051 = vmatprep.subr.bf16.mxu0 %v6905_v9 }
0x1389   :  { %v1563_v15 = vpop.f32.mrb[10].mxu0 }
0x138a   :  { %v1568_v16 = vrot.slane %v1563_v15, 4  ;;  %v1569_v17 = vrot.slane %v1563_v15, 5  ;;  %v5666_v18 = vpop.f32.mrb[11].mxu0 }
0x138c   :  { %v1572_v19 = vadd.f32 %v1568_v16, %v7218_v59  ;;  %v1573_v20 = vadd.f32 %v1569_v17, %v7236_v13 }
0x138e   :  { %v1574_v21 = vadd.f32 %v7222_v4, %v1572_v19  ;;  %v1575_v23 = vadd.f32 %v7222_v4, %v1573_v20 }
0x1390   :  { %6311 = vtanh.f32 %v1574_v21  ;;  %v1576_v26 = vsub.f32 0.0, %v1574_v21  ;;  %v1577_v27 = vsub.f32 0.0, %v1575_v23 }
0x1391   :  { %6313 = vtanh.f32 %v1575_v23 }
0x1392   :  { %v1578_v28 = vmul.f32 1.442695, %v1576_v26  ;;  %v1580_v29 = vmul.f32 1.442695, %v1577_v27 }
0x1394   :  { %6315 = vpow2.f32 %v1578_v28 }
0x1395   :  { %6317 = vpow2.f32 %v1580_v29 }
0x139a   :  { %v6312_v24 = vpop.eup %6311 }
0x139b   :  { %v6314_v25 = vpop.eup %6313  ;;  %1600 = vrot.lane.b32.xlu1 %v6312_v24, %s6907_s6 }
0x139c   :  { %1602 = vrot.lane.b32.xlu0 %v6314_v25, %s6907_s6 }
0x139e   :  { %v6316_v30 = vpop.eup %6315 }
0x139f   :  { %v6318_v32 = vpop.eup %6317  ;;  %v1582_v33 = vadd.f32 1.0, %v6316_v30 }
0x13a0   :  { %v1583_v34 = vadd.f32 1.0, %v6318_v32 }
0x13a1   :  { %6319 = vrcp.f32 %v1582_v33 }
0x13a2   :  { %6321 = vrcp.f32 %v1583_v34 }
0x13ab   :  { %v6320_v35 = vpop.eup %6319 }
0x13ac   :  { %v6322_v37 = vpop.eup %6321  ;;  %v1596_v43 = vmul.f32 %v6320_v35, %v1592_v41 }
0x13ad   :  { %v1597_v44 = vmul.f32 %v6322_v37, %v1593_v42 }
0x140d   :  { %v1601_v36 = vpop.permute.xlu1 %1600 }
0x140e   :  { %v1603_v38 = vpop.permute.xlu0 %1602  ;;  %v1606_v39 = vmul.f32 %v6320_v35, %v1601_v36 }
0x140f   :  { %v1607_v40 = vmul.f32 %v6322_v37, %v1603_v38 }
0x1410   :  { %1610 = vrot.lane.b32.xlu1 %v1606_v39, %s6907_s6 }
0x1411   :  { %1612 = vrot.lane.b32.xlu0 %v1607_v40, %s6907_s6 }
0x1482   :  { %v1611_v45 = vpop.permute.xlu1 %1610 }
0x1483   :  { %v1613_v46 = vpop.permute.xlu0 %1612  ;;  %v7357_v47 = vadd.f32 %v1611_v45, %v1596_v43 }
0x1484   :  { %v7359_v48 = vadd.f32 %v1613_v46, %v1597_v44 }
0x1485   :  { %6323 = vtanh.f32 %v7357_v47  ;;  %v1742_v34 = vrot.slane %v7357_v47, 7 }
0x1486   :  { %6325 = vtanh.f32 %v7359_v48 }
0x148f   :  { %v6324_v49 = vpop.eup %6323 }
0x1490   :  { %v6326_v50 = vpop.eup %6325  ;;  %1622 = vrot.lane.b32.xlu1 %v6324_v49, %s6907_s6 }
0x1491   :  { %1624 = vrot.lane.b32.xlu0 %v6326_v50, %s6907_s6 }
0x1502   :  { %v1623_v51 = vpop.permute.xlu1 %1622 }
0x1503   :  { %v1625_v52 = vpop.permute.xlu0 %1624  ;;  %v1628_v54 = vmul.f32 %v6320_v35, %v1623_v51  ;;  %v1743_v35 = vrot.slane %v7359_v48, 7 }
0x1504   :  { %v1629_v55 = vmul.f32 %v6322_v37, %v1625_v52 }
0x1505   :  { %v1640_v56 = vrot.slane %v1628_v54, 4 }
0x1506   :  { %v1632_v60 = vrot.slane %v1629_v55, 7  ;;  %v1641_v61 = vrot.slane %v1629_v55, 3 }
0x1508   :  { %v1642_v62 = vsel %vm1040_vm5, %v1641_v61, %v1640_v56  ;;  %v7367_v63 = vsel %vm1633_vm11, %v1632_v60, %v1628_v54 }
0x1509   :  { %1643 = vrot.lane.b32.xlu1 %v1642_v62, %s6897_s9 }
0x157b   :  { %v1644_v1 = vpop.permute.xlu1 %1643 }
0x157c   :  { %5676 = vmatmul.mubr.msk.f32.vlgmr.msra.gmra.mrb[14].mxu1 %vm901_vm7, %v1644_v1 }
0x157d   :  { %6047 = vmatpush3.bf16.msra.mxu1 %v7191_v53  ;;  %5697 = vmatprep.mubr.msk.f32.mxu1 %vm6904_vm0, %v6903_v0 }
0x157e   :  { %6048 = vmatprep.subr.bf16.mxu1 %v6905_v9 }
0x1581   :  { %6050 = vmatpush3.bf16.msra.mxu1 %v7202_v57 }
0x1582   :  { %6057 = vmatprep.subr.bf16.mxu1 %v6905_v9 }
0x164f   :  { %v1713_v2 = vpop.f32.mrb[14].mxu1 }
0x1650   :  { %v1718_v3 = vrot.slane %v1713_v2, 3  ;;  %v1719_v5 = vrot.slane %v1713_v2, 4  ;;  %v5677_v6 = vpop.f32.mrb[15].mxu1 }
0x1652   :  { %v1722_v7 = vadd.f32 %v1718_v3, %v7218_v59  ;;  %v1723_v10 = vadd.f32 %v1719_v5, %v7236_v13 }
0x1654   :  { %v1724_v14 = vadd.f32 %v7222_v4, %v1722_v7  ;;  %v1725_v15 = vadd.f32 %v7222_v4, %v1723_v10 }
0x1656   :  { %6327 = vtanh.f32 %v1724_v14  ;;  %v1726_v18 = vsub.f32 0.0, %v1724_v14  ;;  %v1727_v19 = vsub.f32 0.0, %v1725_v15 }
0x1657   :  { %6329 = vtanh.f32 %v1725_v15 }
0x1658   :  { %v1728_v20 = vmul.f32 1.442695, %v1726_v18  ;;  %v1730_v21 = vmul.f32 1.442695, %v1727_v19 }
0x165a   :  { %6331 = vpow2.f32 %v1728_v20 }
0x165b   :  { %6333 = vpow2.f32 %v1730_v21 }
0x1660   :  { %v6328_v16 = vpop.eup %6327 }
0x1661   :  { %v6330_v17 = vpop.eup %6329  ;;  %1750 = vrot.lane.b32.xlu0 %v6328_v16, %s6907_s6 }
0x1662   :  { %1752 = vrot.lane.b32.xlu1 %v6330_v17, %s6907_s6 }
0x1664   :  { %v6332_v23 = vpop.eup %6331 }
0x1665   :  { %v6334_v24 = vpop.eup %6333  ;;  %v1732_v25 = vadd.f32 1.0, %v6332_v23 }
0x1666   :  { %v1733_v26 = vadd.f32 1.0, %v6334_v24 }
0x1667   :  { %6335 = vrcp.f32 %v1732_v25 }
0x1668   :  { %6337 = vrcp.f32 %v1733_v26 }
0x1671   :  { %v6336_v27 = vpop.eup %6335 }
0x1672   :  { %v6338_v29 = vpop.eup %6337  ;;  %v1746_v36 = vmul.f32 %v6336_v27, %v1742_v34 }
0x1673   :  { %v1747_v37 = vmul.f32 %v6338_v29, %v1743_v35 }
0x16d3   :  { %v1751_v28 = vpop.permute.xlu0 %1750 }
0x16d4   :  { %v1753_v30 = vpop.permute.xlu1 %1752  ;;  %v1756_v32 = vmul.f32 %v6336_v27, %v1751_v28 }
0x16d5   :  { %v1757_v33 = vmul.f32 %v6338_v29, %v1753_v30 }
0x16d6   :  { %1760 = vrot.lane.b32.xlu0 %v1756_v32, %s6907_s6 }
0x16d7   :  { %1762 = vrot.lane.b32.xlu1 %v1757_v33, %s6907_s6 }
0x1748   :  { %v1761_v38 = vpop.permute.xlu0 %1760 }
0x1749   :  { %v1763_v39 = vpop.permute.xlu1 %1762  ;;  %v7387_v40 = vadd.f32 %v1761_v38, %v1746_v36 }
0x174a   :  { %v7389_v41 = vadd.f32 %v1763_v39, %v1747_v37 }
0x174b   :  { %6339 = vtanh.f32 %v7387_v40 }
0x174c   :  { %6341 = vtanh.f32 %v7389_v41  ;;  %v1893_v28 = vrot.slane %v7389_v41, 7 }
0x1755   :  { %v6340_v42 = vpop.eup %6339 }
0x1756   :  { %v6342_v43 = vpop.eup %6341  ;;  %1772 = vrot.lane.b32.xlu0 %v6340_v42, %s6907_s6 }
0x1757   :  { %1774 = vrot.lane.b32.xlu1 %v6342_v43, %s6907_s6 }
0x17c8   :  { %v1773_v44 = vpop.permute.xlu0 %1772 }
0x17c9   :  { %v1775_v45 = vpop.permute.xlu1 %1774  ;;  %v1778_v46 = vmul.f32 %v6336_v27, %v1773_v44  ;;  %v1892_v27 = vrot.slane %v7387_v40, 7 }
0x17ca   :  { %v1779_v47 = vmul.f32 %v6338_v29, %v1775_v45 }
0x17cb   :  { %v1790_v48 = vrot.slane %v1778_v46, 5 }
0x17cc   :  { %v1782_v49 = vrot.slane %v1779_v47, 7  ;;  %v1791_v50 = vrot.slane %v1779_v47, 4 }
0x17ce   :  { %v1792_v51 = vsel %vm1040_vm5, %v1791_v50, %v1790_v48  ;;  %v7397_v52 = vsel %vm1783_vm12, %v1782_v49, %v1778_v46 }
0x17cf   :  { %1793 = vrot.lane.b32.xlu0 %v1792_v51, %s6897_s9 }
0x1841   :  { %v1794_v54 = vpop.permute.xlu0 %1793 }
0x1842   :  { %5687 = vmatmul.mubr.msk.f32.vlgmr.msra.gmra.mrb[12].mxu0 %vm901_vm7, %v1794_v54 }
0x1843   :  { %6053 = vmatpush3.bf16.msra.mxu0 %v7191_v53  ;;  %5708 = vmatprep.mubr.msk.f32.mxu0 %vm6904_vm0, %v6903_v0 }
0x1844   :  { %6054 = vmatprep.subr.bf16.mxu0 %v6905_v9 }
0x1847   :  { %6056 = vmatpush3.bf16.msra.mxu0 %v7202_v57 }
0x1848   :  { %6063 = vmatprep.subr.bf16.mxu0 %v6905_v9 }
0x1915   :  { %v1863_v55 = vpop.f32.mrb[12].mxu0 }
0x1916   :  { %v1868_v56 = vrot.slane %v1863_v55, 2  ;;  %v1869_v60 = vrot.slane %v1863_v55, 3  ;;  %v5688_v61 = vpop.f32.mrb[13].mxu0 }
0x1918   :  { %v1872_v62 = vadd.f32 %v1868_v56, %v7218_v59  ;;  %v1873_v1 = vadd.f32 %v1869_v60, %v7236_v13 }
0x191a   :  { %v1874_v2 = vadd.f32 %v7222_v4, %v1872_v62  ;;  %v1875_v3 = vadd.f32 %v7222_v4, %v1873_v1 }
0x191c   :  { %6343 = vtanh.f32 %v1874_v2  ;;  %v1876_v7 = vsub.f32 0.0, %v1874_v2  ;;  %v1877_v10 = vsub.f32 0.0, %v1875_v3 }
0x191d   :  { %6345 = vtanh.f32 %v1875_v3 }
0x191e   :  { %v1878_v14 = vmul.f32 1.442695, %v1876_v7  ;;  %v1880_v15 = vmul.f32 1.442695, %v1877_v10 }
0x1920   :  { %6347 = vpow2.f32 %v1878_v14 }
0x1921   :  { %6349 = vpow2.f32 %v1880_v15 }
0x1926   :  { %v6344_v5 = vpop.eup %6343 }
0x1927   :  { %v6346_v6 = vpop.eup %6345  ;;  %1900 = vrot.lane.b32.xlu1 %v6344_v5, %s6907_s6 }
0x1928   :  { %1902 = vrot.lane.b32.xlu0 %v6346_v6, %s6907_s6 }
0x192a   :  { %v6348_v16 = vpop.eup %6347 }
0x192b   :  { %v6350_v17 = vpop.eup %6349  ;;  %v1882_v18 = vadd.f32 1.0, %v6348_v16 }
0x192c   :  { %v1883_v19 = vadd.f32 1.0, %v6350_v17 }
0x192d   :  { %6351 = vrcp.f32 %v1882_v18 }
0x192e   :  { %6353 = vrcp.f32 %v1883_v19 }
0x1937   :  { %v6352_v20 = vpop.eup %6351 }
0x1938   :  { %v6354_v23 = vpop.eup %6353  ;;  %v1896_v29 = vmul.f32 %v6352_v20, %v1892_v27 }
0x1939   :  { %v1897_v30 = vmul.f32 %v6354_v23, %v1893_v28 }
0x1999   :  { %v1901_v21 = vpop.permute.xlu1 %1900 }
0x199a   :  { %v1903_v24 = vpop.permute.xlu0 %1902  ;;  %v1906_v25 = vmul.f32 %v6352_v20, %v1901_v21 }
0x199b   :  { %v1907_v26 = vmul.f32 %v6354_v23, %v1903_v24 }
0x199c   :  { %1910 = vrot.lane.b32.xlu1 %v1906_v25, %s6907_s6 }
0x199d   :  { %1912 = vrot.lane.b32.xlu0 %v1907_v26, %s6907_s6 }
0x1a0e   :  { %v1911_v32 = vpop.permute.xlu1 %1910 }
0x1a0f   :  { %v1913_v33 = vpop.permute.xlu0 %1912  ;;  %v7417_v34 = vadd.f32 %v1911_v32, %v1896_v29 }
0x1a10   :  { %v7419_v35 = vadd.f32 %v1913_v33, %v1897_v30 }
0x1a11   :  { %6355 = vtanh.f32 %v7417_v34  ;;  %v2042_v18 = vrot.slane %v7417_v34, 7 }
0x1a12   :  { %6357 = vtanh.f32 %v7419_v35  ;;  %v2043_v19 = vrot.slane %v7419_v35, 7 }
0x1a1b   :  { %v6356_v36 = vpop.eup %6355 }
0x1a1c   :  { %v6358_v37 = vpop.eup %6357  ;;  %1922 = vrot.lane.b32.xlu1 %v6356_v36, %s6907_s6 }
0x1a1d   :  { %1924 = vrot.lane.b32.xlu0 %v6358_v37, %s6907_s6 }
0x1a8e   :  { %v1923_v38 = vpop.permute.xlu1 %1922 }
0x1a8f   :  { %v1925_v39 = vpop.permute.xlu0 %1924  ;;  %v1928_v40 = vmul.f32 %v6352_v20, %v1923_v38 }
0x1a90   :  { %v1929_v41 = vmul.f32 %v6354_v23, %v1925_v39 }
0x1a91   :  { %v1940_v42 = vrot.slane %v1928_v40, 6 }
0x1a92   :  { %v1932_v43 = vrot.slane %v1929_v41, 7  ;;  %v1941_v44 = vrot.slane %v1929_v41, 5 }
0x1a94   :  { %v1942_v45 = vsel %vm1040_vm5, %v1941_v44, %v1940_v42  ;;  %v7427_v46 = vsel %vm1933_vm13, %v1932_v43, %v1928_v40  ;;  %v7466_v43 = vld [vmem:[#allocation11] ss:$0 sm:$0xff] }
0x1a95   :  { %1943 = vrot.lane.b32.xlu1 %v1942_v45, %s6897_s9 }
0x1b07   :  { %v1944_v47 = vpop.permute.xlu1 %1943 }
0x1b08   :  { %5698 = vmatmul.mubr.msk.f32.vlgmr.msra.gmra.mrb[16].mxu1 %vm901_vm7, %v1944_v47 }
0x1b09   :  { %6059 = vmatpush3.bf16.msra.mxu1 %v7191_v53  ;;  %5719 = vmatprep.mubr.msk.f32.mxu1 %vm6904_vm0, %v6903_v0 }
0x1b0a   :  { %6060 = vmatprep.subr.bf16.mxu1 %v6905_v9 }
0x1b0d   :  { %6062 = vmatpush3.bf16.msra.mxu1 %v7202_v57 }
0x1b0e   :  { %6069 = vmatprep.subr.bf16.mxu1 %v6905_v9 }
0x1bdb   :  { %v2013_v48 = vpop.f32.mrb[16].mxu1 }
0x1bdc   :  { %v2018_v49 = vrot.slane %v2013_v48, 1  ;;  %v2019_v50 = vrot.slane %v2013_v48, 2  ;;  %v5699_v51 = vpop.f32.mrb[17].mxu1 }
0x1bde   :  { %v2022_v54 = vadd.f32 %v2018_v49, %v7218_v59  ;;  %v2023_v55 = vadd.f32 %v2019_v50, %v7236_v13 }
0x1be0   :  { %v2024_v56 = vadd.f32 %v7222_v4, %v2022_v54  ;;  %v2025_v60 = vadd.f32 %v7222_v4, %v2023_v55 }
0x1be2   :  { %6359 = vtanh.f32 %v2024_v56  ;;  %v2026_v1 = vsub.f32 0.0, %v2024_v56  ;;  %v2027_v2 = vsub.f32 0.0, %v2025_v60 }
0x1be3   :  { %6361 = vtanh.f32 %v2025_v60 }
0x1be4   :  { %v2028_v3 = vmul.f32 1.442695, %v2026_v1  ;;  %v2030_v5 = vmul.f32 1.442695, %v2027_v2 }
0x1be6   :  { %6363 = vpow2.f32 %v2028_v3 }
0x1be7   :  { %6365 = vpow2.f32 %v2030_v5 }
0x1bec   :  { %v6360_v61 = vpop.eup %6359 }
0x1bed   :  { %v6362_v62 = vpop.eup %6361  ;;  %2050 = vrot.lane.b32.xlu0 %v6360_v61, %s6907_s6 }
0x1bee   :  { %2052 = vrot.lane.b32.xlu1 %v6362_v62, %s6907_s6 }
0x1bf0   :  { %v6364_v59 = vpop.eup %6363 }
0x1bf1   :  { %v6366_v13 = vpop.eup %6365  ;;  %v2032_v6 = vadd.f32 1.0, %v6364_v59 }
0x1bf2   :  { %v2033_v7 = vadd.f32 1.0, %v6366_v13 }
0x1bf3   :  { %6367 = vrcp.f32 %v2032_v6 }
0x1bf4   :  { %6369 = vrcp.f32 %v2033_v7 }
0x1bfd   :  { %v6368_v4 = vpop.eup %6367 }
0x1bfe   :  { %v6370_v14 = vpop.eup %6369  ;;  %v2046_v20 = vmul.f32 %v6368_v4, %v2042_v18 }
0x1bff   :  { %v2047_v21 = vmul.f32 %v6370_v14, %v2043_v19 }
0x1c5f   :  { %v2051_v10 = vpop.permute.xlu0 %2050 }
0x1c60   :  { %v2053_v15 = vpop.permute.xlu1 %2052  ;;  %v2056_v16 = vmul.f32 %v6368_v4, %v2051_v10 }
0x1c61   :  { %v2057_v17 = vmul.f32 %v6370_v14, %v2053_v15 }
0x1c62   :  { %2060 = vrot.lane.b32.xlu0 %v2056_v16, %s6907_s6 }
0x1c63   :  { %2062 = vrot.lane.b32.xlu1 %v2057_v17, %s6907_s6 }
0x1cd4   :  { %v2061_v23 = vpop.permute.xlu0 %2060 }
0x1cd5   :  { %v2063_v24 = vpop.permute.xlu1 %2062  ;;  %v2066_v25 = vadd.f32 %v2061_v23, %v2046_v20 }
0x1cd6   :  { %v2067_v26 = vadd.f32 %v2063_v24, %v2047_v21 }
0x1cd7   :  { %6371 = vtanh.f32 %v2066_v25  ;;  %v2194_v13 = vrot.slane %v2066_v25, 7 }
0x1cd8   :  { %6373 = vtanh.f32 %v2067_v26  ;;  %v2195_v6 = vrot.slane %v2067_v26, 7 }
0x1ce1   :  { %v6372_v27 = vpop.eup %6371 }
0x1ce2   :  { %v6374_v28 = vpop.eup %6373  ;;  %2072 = vrot.lane.b32.xlu0 %v6372_v27, %s6907_s6 }
0x1ce3   :  { %2074 = vrot.lane.b32.xlu1 %v6374_v28, %s6907_s6 }
0x1d54   :  { %v2073_v29 = vpop.permute.xlu0 %2072 }
0x1d55   :  { %v2075_v30 = vpop.permute.xlu1 %2074  ;;  %v7449_v32 = vmul.f32 %v6368_v4, %v2073_v29 }
0x1d56   :  { %v7451_v33 = vmul.f32 %v6370_v14, %v2075_v30 }
0x1d57   :  { %v2093_v34 = vrot.slane %v7449_v32, 7 }
0x1d58   :  { %v2094_v35 = vrot.slane %v7451_v33, 6 }
0x1d5a   :  { %v2095_v36 = vsel %vm1040_vm5, %v2094_v35, %v2093_v34 }
0x1d5b   :  { %2096 = vrot.lane.b32.xlu0 %v2095_v36, %s6897_s9 }
0x1dcd   :  { %v2097_v37 = vpop.permute.xlu0 %2096 }
0x1dce   :  { %5709 = vmatmul.mubr.msk.f32.vlgmr.msra.gmra.mrb[14].mxu0 %vm901_vm7, %v2097_v37 }
0x1dcf   :  { %6065 = vmatpush3.bf16.msra.mxu0 %v7191_v53  ;;  %5730 = vmatprep.mubr.msk.f32.mxu0 %vm6904_vm0, %v6903_v0 }
0x1dd0   :  { %6066 = vmatprep.subr.bf16.mxu0 %v6905_v9 }
0x1dd3   :  { %6068 = vmatpush3.bf16.msra.mxu0 %v7202_v57 }
0x1dd4   :  { %6075 = vmatprep.subr.bf16.mxu0 %v6905_v9 }
0x1ea1   :  { %v2166_v38 = vpop.f32.mrb[14].mxu0 }
0x1ea2   :  { %v2171_v39 = vrot.slane %v2166_v38, 1  ;;  %v2174_v40 = vadd.f32 %v7216_v58, %v2166_v38  ;;  %v5710_v41 = vpop.f32.mrb[15].mxu0 }
0x1ea4   :  { %v2175_v42 = vadd.f32 %v7234_v11, %v2171_v39  ;;  %v2176_v44 = vadd.f32 %v7466_v43, %v2174_v40 }
0x1ea6   :  { %v2177_v45 = vadd.f32 %v7466_v43, %v2175_v42  ;;  %6375 = vtanh.f32 %v2176_v44  ;;  %v2178_v49 = vsub.f32 0.0, %v2176_v44 }
0x1ea8   :  { %6377 = vtanh.f32 %v2177_v45  ;;  %v2179_v50 = vsub.f32 0.0, %v2177_v45  ;;  %v2180_v51 = vmul.f32 1.442695, %v2178_v49 }
0x1eaa   :  { %v2182_v54 = vmul.f32 1.442695, %v2179_v50  ;;  %6379 = vpow2.f32 %v2180_v51 }
0x1eac   :  { %6381 = vpow2.f32 %v2182_v54 }
0x1eb0   :  { %v6376_v47 = vpop.eup %6375 }
0x1eb1   :  { %2202 = vrot.lane.b32.xlu0 %v6376_v47, %s6907_s6 }
0x1eb2   :  { %v6378_v48 = vpop.eup %6377 }
0x1eb3   :  { %2204 = vrot.lane.b32.xlu1 %v6378_v48, %s6907_s6 }
0x1eb4   :  { %v6380_v55 = vpop.eup %6379 }
0x1eb5   :  { %v2184_v60 = vadd.f32 1.0, %v6380_v55 }
0x1eb6   :  { %v6382_v56 = vpop.eup %6381 }
0x1eb7   :  { %v2185_v61 = vadd.f32 1.0, %v6382_v56  ;;  %6383 = vrcp.f32 %v2184_v60 }
0x1eb9   :  { %6385 = vrcp.f32 %v2185_v61 }
0x1ec1   :  { %v6384_v62 = vpop.eup %6383 }
0x1ec2   :  { %v2198_v7 = vmul.f32 %v6384_v62, %v2194_v13 }
0x1ec3   :  { %v6386_v3 = vpop.eup %6385 }
0x1ec4   :  { %v2199_v14 = vmul.f32 %v6386_v3, %v2195_v6 }
0x1f23   :  { %v2203_v1 = vpop.permute.xlu0 %2202 }
0x1f24   :  { %v2208_v2 = vmul.f32 %v6384_v62, %v2203_v1 }
0x1f25   :  { %v2205_v5 = vpop.permute.xlu1 %2204 }
0x1f26   :  { %v2209_v59 = vmul.f32 %v6386_v3, %v2205_v5  ;;  %2212 = vrot.lane.b32.xlu0 %v2208_v2, %s6907_s6 }
0x1f28   :  { %2214 = vrot.lane.b32.xlu1 %v2209_v59, %s6907_s6 }
0x1f98   :  { %v2213_v4 = vpop.permute.xlu0 %2212 }
0x1f99   :  { %v7474_v10 = vadd.f32 %v2213_v4, %v2198_v7 }
0x1f9a   :  { %v2215_v15 = vpop.permute.xlu1 %2214 }
0x1f9b   :  { %6387 = vtanh.f32 %v7474_v10  ;;  %v2219_v16 = vadd.f32 %v2215_v15, %v2199_v14  ;;  %v2336_v61 = vrot.slane %v7474_v10, 7 }
0x1f9d   :  { %6389 = vtanh.f32 %v2219_v16  ;;  %v2337_v60 = vrot.slane %v2219_v16, 7 }
0x1fa5   :  { %v6388_v17 = vpop.eup %6387 }
0x1fa6   :  { %2224 = vrot.lane.b32.xlu0 %v6388_v17, %s6907_s6 }
0x1fa7   :  { %v6390_v18 = vpop.eup %6389 }
0x1fa8   :  { %2226 = vrot.lane.b32.xlu1 %v6390_v18, %s6907_s6 }
0x2018   :  { %v2225_v19 = vpop.permute.xlu0 %2224 }
0x2019   :  { %v2230_v23 = vmul.f32 %v6384_v62, %v2225_v19 }
0x201a   :  { %v2227_v20 = vpop.permute.xlu1 %2226 }
0x201b   :  { %v2231_v21 = vmul.f32 %v6386_v3, %v2227_v20 }
0x201d   :  { %v2234_v24 = vrot.slane %v2231_v21, 7 }
0x201f   :  { %v2235_v25 = vsel %vm1040_vm5, %v2234_v24, %v2230_v23 }
0x2020   :  { %2236 = vrot.lane.b32.xlu1 %v2235_v25, %s6897_s9 }
0x2092   :  { %v2237_v26 = vpop.permute.xlu1 %2236 }
0x2093   :  { %2239 = vst.msk [vmem:[#allocation2 + $0x10] sm:$0x3] %vm1045_vm6, %v2237_v26  ;;  %5720 = vmatmul.mubr.msk.f32.vlgmr.msra.gmra.mrb[18].mxu1 %vm901_vm7, %v2237_v26  ;;  %vm1938_vm6 = vcmask 261126  }
0x2094   :  { %6071 = vmatpush3.bf16.msra.mxu1 %v7191_v53  ;;  %5741 = vmatprep.mubr.msk.f32.mxu1 %vm6904_vm0, %v6903_v0 }
0x2095   :  { %6072 = vmatprep.subr.bf16.mxu1 %v6905_v9 }
0x2098   :  { %6074 = vmatpush3.bf16.msra.mxu1 %v7202_v57 }
0x2099   :  { %6081 = vmatprep.subr.bf16.mxu1 %v6905_v9 }
0x2166   :  { %v2308_v27 = vpop.f32.mrb[18].mxu1 }
0x2167   :  { %v2313_v28 = vrot.slane %v2308_v27, 7  ;;  %v2317_v29 = vadd.f32 %v7234_v11, %v2308_v27  ;;  %v5721_v30 = vpop.f32.mrb[19].mxu1 }
0x2169   :  { %v2316_v34 = vadd.f32 %v7216_v58, %v2313_v28  ;;  %v2319_v35 = vadd.f32 %v7466_v43, %v2317_v29 }
0x216b   :  { %v2318_v36 = vadd.f32 %v7466_v43, %v2316_v34  ;;  %6391 = vtanh.f32 %v2319_v35  ;;  %v2321_v39 = vsub.f32 0.0, %v2319_v35 }
0x216d   :  { %6393 = vtanh.f32 %v2318_v36  ;;  %v2320_v40 = vsub.f32 0.0, %v2318_v36  ;;  %v2324_v41 = vmul.f32 1.442695, %v2321_v39 }
0x216f   :  { %v2322_v42 = vmul.f32 1.442695, %v2320_v40  ;;  %6395 = vpow2.f32 %v2324_v41 }
0x2171   :  { %6397 = vpow2.f32 %v2322_v42 }
0x2175   :  { %v6392_v37 = vpop.eup %6391 }
0x2176   :  { %2346 = vrot.lane.b32.xlu1 %v6392_v37, %s6907_s6 }
0x2177   :  { %v6394_v38 = vpop.eup %6393 }
0x2178   :  { %2344 = vrot.lane.b32.xlu0 %v6394_v38, %s6907_s6 }
0x2179   :  { %v6396_v44 = vpop.eup %6395 }
0x217a   :  { %v2327_v47 = vadd.f32 1.0, %v6396_v44 }
0x217b   :  { %v6398_v45 = vpop.eup %6397 }
0x217c   :  { %v2326_v48 = vadd.f32 1.0, %v6398_v45  ;;  %6399 = vrcp.f32 %v2327_v47 }
0x217e   :  { %6401 = vrcp.f32 %v2326_v48 }
0x2186   :  { %v6400_v49 = vpop.eup %6399 }
0x2187   :  { %v2341_v62 = vmul.f32 %v6400_v49, %v2337_v60 }
0x2188   :  { %v6402_v54 = vpop.eup %6401 }
0x2189   :  { %v2340_v3 = vmul.f32 %v6402_v54, %v2336_v61 }
0x21e8   :  { %v2347_v50 = vpop.permute.xlu1 %2346 }
0x21e9   :  { %v2351_v51 = vmul.f32 %v6400_v49, %v2347_v50 }
0x21ea   :  { %v2345_v55 = vpop.permute.xlu0 %2344 }
0x21eb   :  { %v2350_v56 = vmul.f32 %v6402_v54, %v2345_v55  ;;  %2356 = vrot.lane.b32.xlu1 %v2351_v51, %s6907_s6 }
0x21ed   :  { %2354 = vrot.lane.b32.xlu0 %v2350_v56, %s6907_s6 }
0x225d   :  { %v2357_v1 = vpop.permute.xlu1 %2356 }
0x225e   :  { %v7498_v2 = vadd.f32 %v2357_v1, %v2341_v62 }
0x225f   :  { %v2355_v5 = vpop.permute.xlu0 %2354 }
0x2260   :  { %6403 = vtanh.f32 %v7498_v2  ;;  %v2360_v59 = vadd.f32 %v2355_v5, %v2340_v3  ;;  %v2484_v51 = vrot.slane %v7498_v2, 7 }
0x2262   :  { %6405 = vtanh.f32 %v2360_v59  ;;  %v2483_v50 = vrot.slane %v2360_v59, 7 }
0x226a   :  { %v6404_v13 = vpop.eup %6403 }
0x226b   :  { %2368 = vrot.lane.b32.xlu1 %v6404_v13, %s6907_s6 }
0x226c   :  { %v6406_v6 = vpop.eup %6405 }
0x226d   :  { %2366 = vrot.lane.b32.xlu0 %v6406_v6, %s6907_s6 }
0x22dd   :  { %v2369_v7 = vpop.permute.xlu1 %2368 }
0x22de   :  { %v2373_v4 = vmul.f32 %v6400_v49, %v2369_v7 }
0x22df   :  { %v2367_v14 = vpop.permute.xlu0 %2366 }
0x22e0   :  { %v2376_v10 = vrot.slane %v2373_v4, 7  ;;  %v2372_v15 = vmul.f32 %v6402_v54, %v2367_v14 }
0x22e2   :  { %v2382_v16 = vrot.slane %v2372_v15, 1  ;;  %v7504_v17 = vsel %vm1184_vm8, %v2376_v10, %v2372_v15  ;;  %vm2091_vm8 = vcmask 253952  }
0x22e4   :  { %v2383_v18 = vsel %vm1040_vm5, %v2373_v4, %v2382_v16 }
0x22e5   :  { %2384 = vrot.lane.b32.xlu0 %v2383_v18, %s6897_s9 }
0x2357   :  { %v2385_v19 = vpop.permute.xlu0 %2384 }
0x2358   :  { %5731 = vmatmul.mubr.msk.f32.vlgmr.msra.gmra.mrb[16].mxu0 %vm901_vm7, %v2385_v19 }
0x2359   :  { %6077 = vmatpush3.bf16.msra.mxu0 %v7191_v53  ;;  %5752 = vmatprep.mubr.msk.f32.mxu0 %vm6904_vm0, %v6903_v0 }
0x235a   :  { %6078 = vmatprep.subr.bf16.mxu0 %v6905_v9 }
0x235d   :  { %6080 = vmatpush3.bf16.msra.mxu0 %v7202_v57 }
0x235e   :  { %6087 = vmatprep.subr.bf16.mxu0 %v6905_v9 }
0x242b   :  { %v2454_v20 = vpop.f32.mrb[16].mxu0 }
0x242c   :  { %v2459_v21 = vrot.slane %v2454_v20, 6  ;;  %v2460_v23 = vrot.slane %v2454_v20, 7  ;;  %v5732_v24 = vpop.f32.mrb[17].mxu0 }
0x242e   :  { %v2463_v25 = vadd.f32 %v7216_v58, %v2459_v21  ;;  %v2464_v26 = vadd.f32 %v7234_v11, %v2460_v23 }
0x2430   :  { %v2465_v27 = vadd.f32 %v7466_v43, %v2463_v25  ;;  %v2466_v28 = vadd.f32 %v7466_v43, %v2464_v26 }
0x2432   :  { %6407 = vtanh.f32 %v2465_v27  ;;  %v2467_v34 = vsub.f32 0.0, %v2465_v27  ;;  %v2468_v35 = vsub.f32 0.0, %v2466_v28 }
0x2433   :  { %6409 = vtanh.f32 %v2466_v28 }
0x2434   :  { %v2469_v36 = vmul.f32 1.442695, %v2467_v34  ;;  %v2471_v37 = vmul.f32 1.442695, %v2468_v35 }
0x2436   :  { %6411 = vpow2.f32 %v2469_v36 }
0x2437   :  { %6413 = vpow2.f32 %v2471_v37 }
0x243c   :  { %v6408_v29 = vpop.eup %6407 }
0x243d   :  { %v6410_v30 = vpop.eup %6409  ;;  %2491 = vrot.lane.b32.xlu1 %v6408_v29, %s6907_s6 }
0x243e   :  { %2493 = vrot.lane.b32.xlu0 %v6410_v30, %s6907_s6 }
0x2440   :  { %v6412_v38 = vpop.eup %6411 }
0x2441   :  { %v6414_v39 = vpop.eup %6413  ;;  %v2473_v40 = vadd.f32 1.0, %v6412_v38 }
0x2442   :  { %v2474_v41 = vadd.f32 1.0, %v6414_v39 }
0x2443   :  { %6415 = vrcp.f32 %v2473_v40 }
0x2444   :  { %6417 = vrcp.f32 %v2474_v41 }
0x244d   :  { %v6416_v42 = vpop.eup %6415 }
0x244e   :  { %v6418_v45 = vpop.eup %6417  ;;  %v2487_v54 = vmul.f32 %v6416_v42, %v2483_v50 }
0x244f   :  { %v2488_v55 = vmul.f32 %v6418_v45, %v2484_v51 }
0x24af   :  { %v2492_v44 = vpop.permute.xlu1 %2491 }
0x24b0   :  { %v2494_v47 = vpop.permute.xlu0 %2493  ;;  %v2497_v48 = vmul.f32 %v6416_v42, %v2492_v44 }
0x24b1   :  { %v2498_v49 = vmul.f32 %v6418_v45, %v2494_v47 }
0x24b2   :  { %2501 = vrot.lane.b32.xlu1 %v2497_v48, %s6907_s6 }
0x24b3   :  { %2503 = vrot.lane.b32.xlu0 %v2498_v49, %s6907_s6 }
0x2524   :  { %v2502_v56 = vpop.permute.xlu1 %2501 }
0x2525   :  { %v2504_v60 = vpop.permute.xlu0 %2503  ;;  %v2507_v61 = vadd.f32 %v2502_v56, %v2487_v54 }
0x2526   :  { %v2508_v62 = vadd.f32 %v2504_v60, %v2488_v55 }
0x2527   :  { %6419 = vtanh.f32 %v2507_v61  ;;  %v2631_v47 = vrot.slane %v2507_v61, 7 }
0x2528   :  { %6421 = vtanh.f32 %v2508_v62  ;;  %v2632_v48 = vrot.slane %v2508_v62, 7 }
0x2531   :  { %v6420_v1 = vpop.eup %6419 }
0x2532   :  { %v6422_v3 = vpop.eup %6421  ;;  %2513 = vrot.lane.b32.xlu1 %v6420_v1, %s6907_s6 }
0x2533   :  { %2515 = vrot.lane.b32.xlu0 %v6422_v3, %s6907_s6 }
0x25a4   :  { %v2514_v5 = vpop.permute.xlu1 %2513 }
0x25a5   :  { %v2516_v13 = vpop.permute.xlu0 %2515  ;;  %v2519_v6 = vmul.f32 %v6416_v42, %v2514_v5 }
0x25a6   :  { %v2520_v59 = vmul.f32 %v6418_v45, %v2516_v13 }
0x25a7   :  { %v2529_v7 = vrot.slane %v2519_v6, 2 }
0x25a8   :  { %v2523_v2 = vrot.slane %v2520_v59, 7  ;;  %v2530_v4 = vrot.slane %v2520_v59, 1 }
0x25aa   :  { %v2531_v14 = vsel %vm1040_vm5, %v2530_v4, %v2529_v7  ;;  %v7528_v10 = vsel %vm1333_vm9, %v2523_v2, %v2519_v6 }
0x25ab   :  { %2532 = vrot.lane.b32.xlu1 %v2531_v14, %s6897_s9 }
0x261d   :  { %v2533_v15 = vpop.permute.xlu1 %2532 }
0x261e   :  { %5742 = vmatmul.mubr.msk.f32.vlgmr.msra.gmra.mrb[20].mxu1 %vm901_vm7, %v2533_v15 }
0x261f   :  { %6083 = vmatpush3.bf16.msra.mxu1 %v7191_v53  ;;  %5763 = vmatprep.mubr.msk.f32.mxu1 %vm6904_vm0, %v6903_v0 }
0x2620   :  { %6084 = vmatprep.subr.bf16.mxu1 %v6905_v9 }
0x2623   :  { %6086 = vmatpush3.bf16.msra.mxu1 %v7202_v57 }
0x2624   :  { %6093 = vmatprep.subr.bf16.mxu1 %v6905_v9 }
0x26f1   :  { %v2602_v16 = vpop.f32.mrb[20].mxu1 }
0x26f2   :  { %v2607_v18 = vrot.slane %v2602_v16, 5  ;;  %v2608_v19 = vrot.slane %v2602_v16, 6  ;;  %v5743_v20 = vpop.f32.mrb[21].mxu1 }
0x26f4   :  { %v2611_v21 = vadd.f32 %v7216_v58, %v2607_v18  ;;  %v2612_v23 = vadd.f32 %v7234_v11, %v2608_v19 }
0x26f6   :  { %v2613_v24 = vadd.f32 %v7466_v43, %v2611_v21  ;;  %v2614_v25 = vadd.f32 %v7466_v43, %v2612_v23 }
0x26f8   :  { %6423 = vtanh.f32 %v2613_v24  ;;  %v2615_v28 = vsub.f32 0.0, %v2613_v24  ;;  %v2616_v29 = vsub.f32 0.0, %v2614_v25 }
0x26f9   :  { %6425 = vtanh.f32 %v2614_v25 }
0x26fa   :  { %v2617_v30 = vmul.f32 1.442695, %v2615_v28  ;;  %v2619_v34 = vmul.f32 1.442695, %v2616_v29 }
0x26fc   :  { %6427 = vpow2.f32 %v2617_v30 }
0x26fd   :  { %6429 = vpow2.f32 %v2619_v34 }
0x2702   :  { %v6424_v26 = vpop.eup %6423 }
0x2703   :  { %v6426_v27 = vpop.eup %6425  ;;  %2639 = vrot.lane.b32.xlu0 %v6424_v26, %s6907_s6 }
0x2704   :  { %2641 = vrot.lane.b32.xlu1 %v6426_v27, %s6907_s6 }
0x2706   :  { %v6428_v35 = vpop.eup %6427 }
0x2707   :  { %v6430_v36 = vpop.eup %6429  ;;  %v2621_v37 = vadd.f32 1.0, %v6428_v35 }
0x2708   :  { %v2622_v38 = vadd.f32 1.0, %v6430_v36 }
0x2709   :  { %6431 = vrcp.f32 %v2621_v37 }
0x270a   :  { %6433 = vrcp.f32 %v2622_v38 }
0x2713   :  { %v6432_v39 = vpop.eup %6431 }
0x2714   :  { %v6434_v41 = vpop.eup %6433  ;;  %v2635_v49 = vmul.f32 %v6432_v39, %v2631_v47 }
0x2715   :  { %v2636_v50 = vmul.f32 %v6434_v41, %v2632_v48 }
0x2775   :  { %v2640_v40 = vpop.permute.xlu0 %2639 }
0x2776   :  { %v2642_v42 = vpop.permute.xlu1 %2641  ;;  %v2645_v44 = vmul.f32 %v6432_v39, %v2640_v40 }
0x2777   :  { %v2646_v45 = vmul.f32 %v6434_v41, %v2642_v42 }
0x2778   :  { %2649 = vrot.lane.b32.xlu0 %v2645_v44, %s6907_s6 }
0x2779   :  { %2651 = vrot.lane.b32.xlu1 %v2646_v45, %s6907_s6 }
0x27ea   :  { %v2650_v51 = vpop.permute.xlu0 %2649 }
0x27eb   :  { %v2652_v54 = vpop.permute.xlu1 %2651  ;;  %v2655_v55 = vadd.f32 %v2650_v51, %v2635_v49 }
0x27ec   :  { %v2656_v56 = vadd.f32 %v2652_v54, %v2636_v50 }
0x27ed   :  { %6435 = vtanh.f32 %v2655_v55  ;;  %v2779_v44 = vrot.slane %v2655_v55, 7 }
0x27ee   :  { %6437 = vtanh.f32 %v2656_v56  ;;  %v2780_v45 = vrot.slane %v2656_v56, 7 }
0x27f7   :  { %v6436_v60 = vpop.eup %6435 }
0x27f8   :  { %v6438_v1 = vpop.eup %6437  ;;  %2661 = vrot.lane.b32.xlu0 %v6436_v60, %s6907_s6 }
0x27f9   :  { %2663 = vrot.lane.b32.xlu1 %v6438_v1, %s6907_s6 }
0x286a   :  { %v2662_v3 = vpop.permute.xlu0 %2661 }
0x286b   :  { %v2664_v5 = vpop.permute.xlu1 %2663  ;;  %v2667_v13 = vmul.f32 %v6432_v39, %v2662_v3 }
0x286c   :  { %v2668_v6 = vmul.f32 %v6434_v41, %v2664_v5 }
0x286d   :  { %v2677_v61 = vrot.slane %v2667_v13, 3 }
0x286e   :  { %v2671_v62 = vrot.slane %v2668_v6, 7  ;;  %v2678_v59 = vrot.slane %v2668_v6, 2 }
0x2870   :  { %v2679_v7 = vsel %vm1040_vm5, %v2678_v59, %v2677_v61  ;;  %v7550_v2 = vsel %vm1483_vm10, %v2671_v62, %v2667_v13 }
0x2871   :  { %2680 = vrot.lane.b32.xlu0 %v2679_v7, %s6897_s9 }
0x28e3   :  { %v2681_v4 = vpop.permute.xlu0 %2680 }
0x28e4   :  { %5753 = vmatmul.mubr.msk.f32.vlgmr.msra.gmra.mrb[18].mxu0 %vm901_vm7, %v2681_v4 }
0x28e5   :  { %6089 = vmatpush3.bf16.msra.mxu0 %v7191_v53  ;;  %5774 = vmatprep.mubr.msk.f32.mxu0 %vm6904_vm0, %v6903_v0 }
0x28e6   :  { %6090 = vmatprep.subr.bf16.mxu0 %v6905_v9 }
0x28e9   :  { %6092 = vmatpush3.bf16.msra.mxu0 %v7202_v57 }
0x29b7   :  { %v2750_v14 = vpop.f32.mrb[18].mxu0 }
0x29b8   :  { %v2755_v15 = vrot.slane %v2750_v14, 4  ;;  %v2756_v16 = vrot.slane %v2750_v14, 5  ;;  %v5754_v18 = vpop.f32.mrb[19].mxu0 }
0x29ba   :  { %v2759_v19 = vadd.f32 %v7216_v58, %v2755_v15  ;;  %v2760_v20 = vadd.f32 %v7234_v11, %v2756_v16 }
0x29bc   :  { %v2761_v21 = vadd.f32 %v7466_v43, %v2759_v19  ;;  %v2762_v23 = vadd.f32 %v7466_v43, %v2760_v20 }
0x29be   :  { %6439 = vtanh.f32 %v2761_v21  ;;  %v2763_v26 = vsub.f32 0.0, %v2761_v21  ;;  %v2764_v27 = vsub.f32 0.0, %v2762_v23 }
0x29bf   :  { %6441 = vtanh.f32 %v2762_v23 }
0x29c0   :  { %v2765_v28 = vmul.f32 1.442695, %v2763_v26  ;;  %v2767_v29 = vmul.f32 1.442695, %v2764_v27 }
0x29c2   :  { %6443 = vpow2.f32 %v2765_v28 }
0x29c3   :  { %6445 = vpow2.f32 %v2767_v29 }
0x29c8   :  { %v6440_v24 = vpop.eup %6439 }
0x29c9   :  { %v6442_v25 = vpop.eup %6441  ;;  %2787 = vrot.lane.b32.xlu1 %v6440_v24, %s6907_s6 }
0x29ca   :  { %2789 = vrot.lane.b32.xlu0 %v6442_v25, %s6907_s6 }
0x29cc   :  { %v6444_v30 = vpop.eup %6443 }
0x29cd   :  { %v6446_v34 = vpop.eup %6445  ;;  %v2769_v35 = vadd.f32 1.0, %v6444_v30 }
0x29ce   :  { %v2770_v36 = vadd.f32 1.0, %v6446_v34 }
0x29cf   :  { %6447 = vrcp.f32 %v2769_v35 }
0x29d0   :  { %6449 = vrcp.f32 %v2770_v36 }
0x29d9   :  { %v6448_v37 = vpop.eup %6447 }
0x29da   :  { %v6450_v39 = vpop.eup %6449  ;;  %v2783_v47 = vmul.f32 %v6448_v37, %v2779_v44 }
0x29db   :  { %v2784_v48 = vmul.f32 %v6450_v39, %v2780_v45 }
0x2a3b   :  { %v2788_v38 = vpop.permute.xlu1 %2787 }
0x2a3c   :  { %v2790_v40 = vpop.permute.xlu0 %2789  ;;  %v2793_v41 = vmul.f32 %v6448_v37, %v2788_v38 }
0x2a3d   :  { %v2794_v42 = vmul.f32 %v6450_v39, %v2790_v40 }
0x2a3e   :  { %2797 = vrot.lane.b32.xlu1 %v2793_v41, %s6907_s6 }
0x2a3f   :  { %2799 = vrot.lane.b32.xlu0 %v2794_v42, %s6907_s6 }
0x2ab0   :  { %v2798_v49 = vpop.permute.xlu1 %2797 }
0x2ab1   :  { %v2800_v50 = vpop.permute.xlu0 %2799  ;;  %v2803_v51 = vadd.f32 %v2798_v49, %v2783_v47 }
0x2ab2   :  { %v2804_v54 = vadd.f32 %v2800_v50, %v2784_v48 }
0x2ab3   :  { %6451 = vtanh.f32 %v2803_v51  ;;  %v2927_v40 = vrot.slane %v2803_v51, 7 }
0x2ab4   :  { %6453 = vtanh.f32 %v2804_v54  ;;  %v2928_v41 = vrot.slane %v2804_v54, 7 }
0x2abd   :  { %v6452_v60 = vpop.eup %6451 }
0x2abe   :  { %v6454_v1 = vpop.eup %6453  ;;  %2809 = vrot.lane.b32.xlu1 %v6452_v60, %s6907_s6 }
0x2abf   :  { %2811 = vrot.lane.b32.xlu0 %v6454_v1, %s6907_s6 }
0x2b30   :  { %v2810_v3 = vpop.permute.xlu1 %2809 }
0x2b31   :  { %v2812_v5 = vpop.permute.xlu0 %2811  ;;  %v2815_v13 = vmul.f32 %v6448_v37, %v2810_v3 }
0x2b32   :  { %v2816_v6 = vmul.f32 %v6450_v39, %v2812_v5 }
0x2b33   :  { %v2825_v55 = vrot.slane %v2815_v13, 4 }
0x2b34   :  { %v2819_v56 = vrot.slane %v2816_v6, 7  ;;  %v2826_v61 = vrot.slane %v2816_v6, 3 }
0x2b36   :  { %v2827_v62 = vsel %vm1040_vm5, %v2826_v61, %v2825_v55  ;;  %v7571_v59 = vsel %vm1633_vm11, %v2819_v56, %v2815_v13 }
0x2b37   :  { %2828 = vrot.lane.b32.xlu1 %v2827_v62, %s6897_s9 }
0x2ba9   :  { %v2829_v7 = vpop.permute.xlu1 %2828 }
0x2baa   :  { %5764 = vmatmul.mubr.msk.f32.vlgmr.msra.gmra.mrb[22].mxu1 %vm901_vm7, %v2829_v7 }
0x2bab   :  { %6095 = vmatpush3.bf16.msra.mxu1 %v7191_v53  ;;  %5785 = vmatprep.mubr.msk.f32.mxu1 %vm6904_vm0, %v6903_v0 }
0x2bac   :  { %6096 = vmatprep.subr.bf16.mxu1 %v6905_v9 }
0x2baf   :  { %6098 = vmatpush3.bf16.msra.mxu1 %v7202_v57 }
0x2bb0   :  { %6107 = vmatprep.subr.bf16.mxu1 %v6905_v9 }
0x2c7d   :  { %v2898_v4 = vpop.f32.mrb[22].mxu1 }
0x2c7e   :  { %v2903_v14 = vrot.slane %v2898_v4, 3  ;;  %v2904_v15 = vrot.slane %v2898_v4, 4  ;;  %v5765_v16 = vpop.f32.mrb[23].mxu1 }
0x2c80   :  { %v2907_v18 = vadd.f32 %v7216_v58, %v2903_v14  ;;  %v2908_v19 = vadd.f32 %v7234_v11, %v2904_v15 }
0x2c82   :  { %v2909_v20 = vadd.f32 %v7466_v43, %v2907_v18  ;;  %v2910_v53 = vadd.f32 %v7466_v43, %v2908_v19 }
0x2c84   :  { %6455 = vtanh.f32 %v2909_v20  ;;  %v2911_v57 = vsub.f32 0.0, %v2909_v20  ;;  %v2912_v24 = vsub.f32 0.0, %v2910_v53 }
0x2c85   :  { %6457 = vtanh.f32 %v2910_v53 }
0x2c86   :  { %v2913_v25 = vmul.f32 1.442695, %v2911_v57  ;;  %v2915_v26 = vmul.f32 1.442695, %v2912_v24 }
0x2c88   :  { %6459 = vpow2.f32 %v2913_v25 }
0x2c89   :  { %6461 = vpow2.f32 %v2915_v26 }
0x2c8e   :  { %v6456_v21 = vpop.eup %6455 }
0x2c8f   :  { %v6458_v23 = vpop.eup %6457  ;;  %2935 = vrot.lane.b32.xlu0 %v6456_v21, %s6907_s6 }
0x2c90   :  { %2937 = vrot.lane.b32.xlu1 %v6458_v23, %s6907_s6 }
0x2c92   :  { %v6460_v27 = vpop.eup %6459 }
0x2c93   :  { %v6462_v28 = vpop.eup %6461  ;;  %v2917_v29 = vadd.f32 1.0, %v6460_v27 }
0x2c94   :  { %v2918_v30 = vadd.f32 1.0, %v6462_v28 }
0x2c95   :  { %6463 = vrcp.f32 %v2917_v29 }
0x2c96   :  { %6465 = vrcp.f32 %v2918_v30 }
0x2c9f   :  { %v6464_v34 = vpop.eup %6463 }
0x2ca0   :  { %v6466_v36 = vpop.eup %6465  ;;  %v2931_v42 = vmul.f32 %v6464_v34, %v2927_v40 }
0x2ca1   :  { %v2932_v44 = vmul.f32 %v6466_v36, %v2928_v41 }
0x2d01   :  { %v2936_v35 = vpop.permute.xlu0 %2935 }
0x2d02   :  { %v2938_v37 = vpop.permute.xlu1 %2937  ;;  %v2941_v38 = vmul.f32 %v6464_v34, %v2936_v35 }
0x2d03   :  { %v2942_v39 = vmul.f32 %v6466_v36, %v2938_v37 }
0x2d04   :  { %2945 = vrot.lane.b32.xlu0 %v2941_v38, %s6907_s6 }
0x2d05   :  { %2947 = vrot.lane.b32.xlu1 %v2942_v39, %s6907_s6 }
0x2d76   :  { %v2946_v45 = vpop.permute.xlu0 %2945 }
0x2d77   :  { %v2948_v47 = vpop.permute.xlu1 %2947  ;;  %v2951_v48 = vadd.f32 %v2946_v45, %v2931_v42 }
0x2d78   :  { %v2952_v49 = vadd.f32 %v2948_v47, %v2932_v44 }
0x2d79   :  { %6467 = vtanh.f32 %v2951_v48  ;;  %v3075_v38 = vrot.slane %v2951_v48, 7  ;;  %v3277_v48 = vld [vmem:[%s7997_s8] sm:$0xff] }
0x2d7a   :  { %6469 = vtanh.f32 %v2952_v49  ;;  %v3076_v39 = vrot.slane %v2952_v49, 7 }
0x2d83   :  { %v6468_v50 = vpop.eup %6467 }
0x2d84   :  { %v6470_v60 = vpop.eup %6469  ;;  %2957 = vrot.lane.b32.xlu0 %v6468_v50, %s6907_s6 }
0x2d85   :  { %2959 = vrot.lane.b32.xlu1 %v6470_v60, %s6907_s6 }
0x2df6   :  { %v2958_v1 = vpop.permute.xlu0 %2957 }
0x2df7   :  { %v2960_v3 = vpop.permute.xlu1 %2959  ;;  %v2963_v5 = vmul.f32 %v6464_v34, %v2958_v1 }
0x2df8   :  { %v2964_v13 = vmul.f32 %v6466_v36, %v2960_v3 }
0x2df9   :  { %v2973_v51 = vrot.slane %v2963_v5, 5 }
0x2dfa   :  { %v2967_v54 = vrot.slane %v2964_v13, 7  ;;  %v2974_v6 = vrot.slane %v2964_v13, 4 }
0x2dfc   :  { %v2975_v55 = vsel %vm1040_vm5, %v2974_v6, %v2973_v51  ;;  %v7593_v56 = vsel %vm1783_vm12, %v2967_v54, %v2963_v5 }
0x2dfd   :  { %2976 = vrot.lane.b32.xlu0 %v2975_v55, %s6897_s9 }
0x2e6f   :  { %v2977_v61 = vpop.permute.xlu0 %2976 }
0x2e70   :  { %5775 = vmatmul.mubr.msk.f32.vlgmr.msra.gmra.mrb[20].mxu0 %vm901_vm7, %v2977_v61 }
0x2f43   :  { %v3046_v62 = vpop.f32.mrb[20].mxu0 }
0x2f44   :  { %v3051_v7 = vrot.slane %v3046_v62, 2  ;;  %v3052_v4 = vrot.slane %v3046_v62, 3  ;;  %v5776_v14 = vpop.f32.mrb[21].mxu0 }
0x2f46   :  { %v3055_v15 = vadd.f32 %v7216_v58, %v3051_v7  ;;  %v3056_v16 = vadd.f32 %v7234_v11, %v3052_v4  ;;  %v2082_v4 = vrot.slane %v7451_v33, 7 }
0x2f48   :  { %v3057_v18 = vadd.f32 %v7466_v43, %v3055_v15  ;;  %v3058_v19 = vadd.f32 %v7466_v43, %v3056_v16 }
0x2f4a   :  { %6471 = vtanh.f32 %v3057_v18  ;;  %v3059_v21 = vsub.f32 0.0, %v3057_v18  ;;  %v3060_v23 = vsub.f32 0.0, %v3058_v19  ;;  %v3272_v18 = vld [vmem:[#allocation12] sm:$0xff] }
0x2f4b   :  { %6473 = vtanh.f32 %v3058_v19  ;;  %v3273_v19 = vld [vmem:[#allocation12 + $0x8] sm:$0xff] }
0x2f4c   :  { %v3061_v57 = vmul.f32 1.442695, %v3059_v21  ;;  %v3063_v24 = vmul.f32 1.442695, %v3060_v23 }
0x2f4e   :  { %6475 = vpow2.f32 %v3061_v57 }
0x2f4f   :  { %6477 = vpow2.f32 %v3063_v24 }
0x2f54   :  { %v6472_v20 = vpop.eup %6471 }
0x2f55   :  { %v6474_v53 = vpop.eup %6473  ;;  %3083 = vrot.lane.b32.xlu1 %v6472_v20, %s6907_s6  ;;  %v7654_v20 = vpack.c.bf16 %v3273_v19, %v3272_v18 }
0x2f56   :  { %3085 = vrot.lane.b32.xlu0 %v6474_v53, %s6907_s6  ;;  %v3275_v53 = vld [vmem:[#allocation12 + $0x18] sm:$0xff] }
0x2f58   :  { %v6476_v25 = vpop.eup %6475 }
0x2f59   :  { %v6478_v26 = vpop.eup %6477  ;;  %v3065_v27 = vadd.f32 1.0, %v6476_v25 }
0x2f5a   :  { %v3066_v28 = vadd.f32 1.0, %v6478_v26 }
0x2f5b   :  { %6479 = vrcp.f32 %v3065_v27 }
0x2f5c   :  { %6481 = vrcp.f32 %v3066_v28 }
0x2f65   :  { %v6480_v29 = vpop.eup %6479 }
0x2f66   :  { %v6482_v34 = vpop.eup %6481  ;;  %v3079_v40 = vmul.f32 %v6480_v29, %v3075_v38 }
0x2f67   :  { %v3080_v41 = vmul.f32 %v6482_v34, %v3076_v39 }
0x2fc7   :  { %v3084_v30 = vpop.permute.xlu1 %3083 }
0x2fc8   :  { %v3086_v35 = vpop.permute.xlu0 %3085  ;;  %v3089_v36 = vmul.f32 %v6480_v29, %v3084_v30 }
0x2fc9   :  { %v3090_v37 = vmul.f32 %v6482_v34, %v3086_v35 }
0x2fca   :  { %3093 = vrot.lane.b32.xlu1 %v3089_v36, %s6907_s6 }
0x2fcb   :  { %3095 = vrot.lane.b32.xlu0 %v3090_v37, %s6907_s6 }
0x303c   :  { %v3094_v42 = vpop.permute.xlu1 %3093 }
0x303d   :  { %v3096_v44 = vpop.permute.xlu0 %3095  ;;  %v7605_v45 = vadd.f32 %v3094_v42, %v3079_v40 }
0x303e   :  { %v7607_v47 = vadd.f32 %v3096_v44, %v3080_v41  ;;  %v7687_v41 = vld [vmem:[#allocation14] ss:$0 sm:$0xff] }
0x303f   :  { %6483 = vtanh.f32 %v7605_v45 }
0x3040   :  { %6485 = vtanh.f32 %v7607_v47 }
0x3049   :  { %v6484_v50 = vpop.eup %6483 }
0x304a   :  { %v6486_v60 = vpop.eup %6485  ;;  %3105 = vrot.lane.b32.xlu1 %v6484_v50, %s6907_s6 }
0x304b   :  { %3107 = vrot.lane.b32.xlu0 %v6486_v60, %s6907_s6 }
0x304e   :  { %1335 = vrot.lane.b32.xlu1 %v7307_v22, %s6897_s9 }
0x304f   :  { %1186 = vrot.lane.b32.xlu0 %v7277_v31, %s6897_s9  ;;  %v3278_v31 = vld [vmem:[%s7997_s8 + $0x8] sm:$0xff] }
0x3050   :  { %v6099_v49 = vpack.c.bf16 %v3278_v31, %v3277_v48 }
0x3052   :  { %1635 = vrot.lane.b32.xlu1 %v7367_v63, %s6897_s9  ;;  %6100 = vmatprep.subr.bf16.mxu0 %v6099_v49 }
0x3053   :  { %1485 = vrot.lane.b32.xlu0 %v7337_v8, %s6897_s9  ;;  %v3279_v8 = vld [vmem:[%s7997_s8 + $0x10] sm:$0xff]  ;;  %6102 = vmatpush3.bf16.msra.mxu0 %v6099_v49 }
0x3057   :  { %1785 = vrot.lane.b32.xlu0 %v7397_v52, %s6897_s9  ;;  %v3280_v52 = vld [vmem:[%s7997_s8 + $0x18] sm:$0xff] }
0x3058   :  { %v6103_v5 = vpack.c.bf16 %v3280_v52, %v3279_v8 }
0x305a   :  { %6104 = vmatprep.subr.bf16.mxu0 %v6103_v5 }
0x305b   :  { %2083 = vrot.lane.b32.xlu0 %v7449_v32, %s6897_s9  ;;  %6106 = vmatpush3.bf16.msra.mxu0 %v6103_v5 }
0x305c   :  { %6113 = vmatprep.subr.bf16.mxu0 %v6905_v9 }
0x30bc   :  { %v3106_v22 = vpop.permute.xlu1 %3105 }
0x30bd   :  { %v3108_v63 = vpop.permute.xlu0 %3107  ;;  %v3111_v1 = vmul.f32 %v6480_v29, %v3106_v22 }
0x30be   :  { %v3112_v3 = vmul.f32 %v6482_v34, %v3108_v63 }
0x30bf   :  { %v3121_v32 = vrot.slane %v3111_v1, 6 }
0x30c0   :  { %v3115_v13 = vrot.slane %v3112_v3, 7  ;;  %v3122_v51 = vrot.slane %v3112_v3, 5  ;;  %v1336_v54 = vpop.permute.xlu1 %1335 }
0x30c1   :  { %v1187_v6 = vpop.permute.xlu0 %1186  ;;  %1339 = vst.msk [vmem:[#allocation2 + $0x2] sm:$0xc] %vm1338_vm14, %v1336_v54 }
0x30c2   :  { %1190 = vst.msk [vmem:[#allocation2 + $0x1] sm:$0x6] %vm1189_vm15, %v1187_v6  ;;  %v3123_v55 = vsel %vm1040_vm5, %v3122_v51, %v3121_v32  ;;  %v7641_v61 = vsel %vm1933_vm13, %v3115_v13, %v3111_v1  ;;  %vm2089_vm5 = vcmask 261127  }
0x30c3   :  { %3124 = vrot.lane.b32.xlu1 %v3123_v55, %s6897_s9 }
0x30c4   :  { %v1636_v62 = vpop.permute.xlu1 %1635 }
0x30c5   :  { %v1486_v7 = vpop.permute.xlu0 %1485  ;;  %1639 = vst.msk [vmem:[#allocation2 + $0x4] sm:$0x30] %vm1638_vm1, %v1636_v62 }
0x30c6   :  { %1489 = vst.msk [vmem:[#allocation2 + $0x3] sm:$0x18] %vm1488_vm3, %v1486_v7 }
0x30c7   :  { %1935 = vrot.lane.b32.xlu1 %v7427_v46, %s6897_s9  ;;  %v3274_v46 = vld [vmem:[#allocation12 + $0x10] sm:$0xff] }
0x30c8   :  { %v7658_v33 = vpack.c.bf16 %v3275_v53, %v3274_v46 }
0x30c9   :  { %v1786_v14 = vpop.permute.xlu0 %1785 }
0x30ca   :  { %1789 = vst.msk [vmem:[#allocation2 + $0x5] sm:$0x60] %vm1788_vm4, %v1786_v14  ;;  %v3224_v14 = vrot.slane %v7607_v47, 7 }
0x30cb   :  { %2085 = vrot.lane.b32.xlu1 %v2082_v4, %s6897_s9  ;;  %v3223_v4 = vrot.slane %v7605_v45, 7 }
0x30cd   :  { %v2084_v15 = vpop.permute.xlu0 %2083  ;;  %v3281_v16 = vld [vmem:[#allocation2] sm:$0xff] }
0x30ce   :  { %2090 = vst.msk [vmem:[#allocation2 + $0x7] sm:$0x80] %vm2089_vm5, %v2084_v15  ;;  %5796 = vmatprep.mubr.msk.f32.mxu0 %vm901_vm7, %v3281_v16 }
0x3135   :  { %v3125_v21 = vpop.permute.xlu1 %3124 }
0x3136   :  { %5786 = vmatmul.mubr.msk.f32.vlgmr.msra.gmra.mrb[24].mxu1 %vm901_vm7, %v3125_v21 }
0x3137   :  { %6109 = vmatpush3.bf16.msra.mxu1 %v7654_v20  ;;  %5810 = vmatprep.mubr.msk.f32.mxu1 %vm6904_vm0, %v6903_v0 }
0x3138   :  { %6110 = vmatprep.subr.bf16.mxu1 %v6905_v9 }
0x3139   :  { %v1936_v23 = vpop.permute.xlu1 %1935 }
0x313a   :  { %1939 = vst.msk [vmem:[#allocation2 + $0x6] sm:$0xc0] %vm1938_vm6, %v1936_v23 }
0x313b   :  { %6112 = vmatpush3.bf16.msra.mxu1 %v7658_v33 }
0x313c   :  { %6119 = vmatprep.subr.bf16.mxu1 %v6905_v9 }
0x313d   :  { %v2086_v57 = vpop.permute.xlu1 %2085 }
0x313e   :  { %2092 = vst.msk [vmem:[#allocation2 + $0xf] sm:$0x1] %vm2091_vm8, %v2086_v57  ;;  %5811 = vmatmul.mubr.f32.vlgmr.msra.gmra.mrb[26].mxu1 %v6903_v0 }
0x313f   :  { %6121 = vmatpush3.bf16.msra.mxu1 %v7654_v20  ;;  %5832 = vmatprep.mubr.msk.f32.mxu1 %vm6904_vm0, %v6903_v0 }
0x3140   :  { %6122 = vmatprep.subr.bf16.mxu1 %v6905_v9 }
0x3143   :  { %6124 = vmatpush3.bf16.msra.mxu1 %v7658_v33 }
0x3144   :  { %6131 = vmatprep.subr.bf16.mxu1 %v6905_v9 }
0x3145   :  { %v3282_v24 = vld [vmem:[#allocation2 + $0x8] sm:$0xff] }
0x3146   :  { %5797 = vmatmul.mubr.msk.f32.vlgmr.msra.gmra.mrb[22].mxu0 %vm901_vm7, %v3282_v24 }
0x3147   :  { %6115 = vmatpush3.bf16.msra.mxu0 %v7654_v20 }
0x3148   :  { %6116 = vmatprep.subr.bf16.mxu0 %v6905_v9 }
0x314b   :  { %6118 = vmatpush3.bf16.msra.mxu0 %v7658_v33 }
0x314c   :  { %6125 = vmatprep.subr.bf16.mxu0 %v6905_v9 }
0x3209   :  { %v3194_v25 = vpop.f32.mrb[24].mxu1 }
0x320a   :  { %v3199_v26 = vrot.slane %v3194_v25, 1  ;;  %v3200_v27 = vrot.slane %v3194_v25, 2  ;;  %v5787_v28 = vpop.f32.mrb[25].mxu1 }
0x320c   :  { %v3203_v29 = vadd.f32 %v7216_v58, %v3199_v26  ;;  %v3204_v30 = vadd.f32 %v7234_v11, %v3200_v27 }
0x320e   :  { %v3205_v34 = vadd.f32 %v7466_v43, %v3203_v29  ;;  %v3206_v35 = vadd.f32 %v7466_v43, %v3204_v30 }
0x3210   :  { %6487 = vtanh.f32 %v3205_v34  ;;  %v3207_v44 = vsub.f32 0.0, %v3205_v34  ;;  %v3208_v50 = vsub.f32 0.0, %v3206_v35 }
0x3211   :  { %6489 = vtanh.f32 %v3206_v35  ;;  %v3448_v36 = vpop.f32.mrb[26].mxu1 }
0x3212   :  { %v5812_v37 = vpop.f32.mrb[27].mxu1  ;;  %v3209_v60 = vmul.f32 1.442695, %v3207_v44  ;;  %v3211_v48 = vmul.f32 1.442695, %v3208_v50 }
0x3219   :  { %v7683_v38 = vpop.f32.mrb[22].mxu0 }
0x321a   :  { %v6488_v39 = vpop.eup %6487  ;;  %v7685_v40 = vpop.f32.mrb[23].mxu0 }
0x321b   :  { %v6490_v42 = vpop.eup %6489  ;;  %v3452_v58 = vadd.f32 %v3448_v36, %v7685_v40  ;;  %3231 = vrot.lane.b32.xlu1 %v6488_v39, %s6907_s6 }
0x321c   :  { %3233 = vrot.lane.b32.xlu0 %v6490_v42, %s6907_s6 }
0x321d   :  { %v3459_v11 = vadd.f32 %v7687_v41, %v3452_v58 }
0x321f   :  { %6491 = vtanh.f32 %v3459_v11  ;;  %v3460_v31 = vsub.f32 0.0, %v3459_v11 }
0x3220   :  { %6493 = vpow2.f32 %v3209_v60 }
0x3221   :  { %6495 = vpow2.f32 %v3211_v48  ;;  %v3461_v63 = vmul.f32 1.442695, %v3460_v31 }
0x3223   :  { %6497 = vpow2.f32 %v3461_v63 }
0x3229   :  { %v6492_v43 = vpop.eup %6491 }
0x322a   :  { %3469 = vrot.lane.b32.xlu0 %v6492_v43, %s6907_s6  ;;  %v6494_v22 = vpop.eup %6493 }
0x322b   :  { %v6496_v49 = vpop.eup %6495  ;;  %v3213_v1 = vadd.f32 1.0, %v6494_v22 }
0x322c   :  { %v3214_v3 = vadd.f32 1.0, %v6496_v49 }
0x322d   :  { %6499 = vrcp.f32 %v3213_v1  ;;  %v6498_v8 = vpop.eup %6497 }
0x322e   :  { %6501 = vrcp.f32 %v3214_v3  ;;  %v3463_v13 = vadd.f32 1.0, %v6498_v8 }
0x3230   :  { %6503 = vrcp.f32 %v3463_v13 }
0x3237   :  { %v6500_v52 = vpop.eup %6499 }
0x3238   :  { %v6502_v5 = vpop.eup %6501  ;;  %v3227_v15 = vmul.f32 %v6500_v52, %v3223_v4 }
0x3239   :  { %v3228_v16 = vmul.f32 %v6502_v5, %v3224_v14 }
0x323a   :  { %v6504_v55 = vpop.eup %6503 }
0x323b   :  { %v3467_v57 = vmul.f32 0.0, %v6504_v55 }
0x328d   :  { %v3232_v32 = vpop.permute.xlu1 %3231 }
0x328e   :  { %v3234_v51 = vpop.permute.xlu0 %3233  ;;  %v3237_v54 = vmul.f32 %v6500_v52, %v3232_v32 }
0x328f   :  { %v3238_v6 = vmul.f32 %v6502_v5, %v3234_v51 }
0x3290   :  { %3241 = vrot.lane.b32.xlu0 %v3237_v54, %s6907_s6 }
0x3291   :  { %3243 = vrot.lane.b32.xlu1 %v3238_v6, %s6907_s6 }
0x329c   :  { %v3470_v62 = vpop.permute.xlu0 %3469 }
0x329d   :  { %v3472_v7 = vmul.f32 %v6504_v55, %v3470_v62 }
0x329f   :  { %3474 = vrot.lane.b32.xlu1 %v3472_v7, %s6907_s6 }
0x3302   :  { %v3242_v18 = vpop.permute.xlu0 %3241 }
0x3303   :  { %v3244_v19 = vpop.permute.xlu1 %3243  ;;  %v3247_v46 = vadd.f32 %v3242_v18, %v3227_v15 }
0x3304   :  { %v3248_v53 = vadd.f32 %v3244_v19, %v3228_v16 }
0x3305   :  { %6505 = vtanh.f32 %v3247_v46 }
0x3306   :  { %6507 = vtanh.f32 %v3248_v53 }
0x330f   :  { %v6506_v21 = vpop.eup %6505 }
0x3310   :  { %v6508_v23 = vpop.eup %6507  ;;  %3253 = vrot.lane.b32.xlu1 %v6506_v21, %s6907_s6 }
0x3311   :  { %3255 = vrot.lane.b32.xlu0 %v6508_v23, %s6907_s6  ;;  %v3475_v24 = vpop.permute.xlu1 %3474 }
0x3312   :  { %v7701_v25 = vadd.f32 %v3475_v24, %v3467_v57 }
0x3314   :  { %6509 = vtanh.f32 %v7701_v25  ;;  %2378 = vrot.lane.b32.xlu1 %v7504_v17, %s6897_s9  ;;  %v3572_v32 = vrot.slane %v7701_v25, 6 }
0x3318   :  { %2673 = vrot.lane.b32.xlu1 %v7550_v2, %s6897_s9 }
0x331c   :  { %2969 = vrot.lane.b32.xlu1 %v7593_v56, %s6897_s9 }
0x331e   :  { %v6510_v45 = vpop.eup %6509 }
0x331f   :  { %3480 = vrot.lane.b32.xlu0 %v6510_v45, %s6907_s6 }
0x3323   :  { %2525 = vrot.lane.b32.xlu0 %v7528_v10, %s6897_s9 }
0x3327   :  { %2821 = vrot.lane.b32.xlu0 %v7571_v59, %s6897_s9 }
0x332b   :  { %3117 = vrot.lane.b32.xlu0 %v7641_v61, %s6897_s9 }
0x3382   :  { %v3254_v47 = vpop.permute.xlu1 %3253 }
0x3383   :  { %v3256_v17 = vpop.permute.xlu0 %3255  ;;  %v3259_v26 = vmul.f32 %v6500_v52, %v3254_v47 }
0x3384   :  { %v3260_v27 = vmul.f32 %v6502_v5, %v3256_v17 }
0x3385   :  { %3264 = vrot.lane.b32.xlu1 %v3259_v26, %s6897_s9 }
0x3386   :  { %v3263_v2 = vrot.slane %v3260_v27, 7  ;;  %v2379_v56 = vpop.permute.xlu1 %2378 }
0x3387   :  { %2381 = vst.msk [vmem:[#allocation2 + $0x11] sm:$0x6] %vm1189_vm15, %v2379_v56 }
0x3388   :  { %3266 = vrot.lane.b32.xlu0 %v3263_v2, %s6897_s9 }
0x338a   :  { %v2674_v28 = vpop.permute.xlu1 %2673 }
0x338b   :  { %2676 = vst.msk [vmem:[#allocation2 + $0x13] sm:$0x18] %vm1488_vm3, %v2674_v28 }
0x338e   :  { %v2970_v10 = vpop.permute.xlu1 %2969 }
0x338f   :  { %2972 = vst.msk [vmem:[#allocation2 + $0x15] sm:$0x60] %vm1788_vm4, %v2970_v10 }
0x3391   :  { %v3481_v59 = vpop.permute.xlu0 %3480 }
0x3392   :  { %v3483_v61 = vmul.f32 %v6504_v55, %v3481_v59 }
0x3394   :  { %3485 = vrot.lane.b32.xlu1 %v3483_v61, %s6897_s9 }
0x3395   :  { %v2526_v29 = vpop.permute.xlu0 %2525 }
0x3396   :  { %2528 = vst.msk [vmem:[#allocation2 + $0x12] sm:$0xc] %vm1338_vm14, %v2526_v29 }
0x3399   :  { %v2822_v30 = vpop.permute.xlu0 %2821 }
0x339a   :  { %2824 = vst.msk [vmem:[#allocation2 + $0x14] sm:$0x30] %vm1638_vm1, %v2822_v30 }
0x339d   :  { %v3118_v34 = vpop.permute.xlu0 %3117  ;;  %v3283_v35 = vld [vmem:[#allocation2 + $0x10] sm:$0xff] }
0x339e   :  { %3120 = vst.msk [vmem:[#allocation2 + $0x16] sm:$0xc0] %vm1938_vm6, %v3118_v34  ;;  %5799 = vmatprep.mubr.msk.f32.mxu0 %vm901_vm7, %v3283_v35 }
0x33f7   :  { %v3265_v36 = vpop.permute.xlu1 %3264 }
0x33f8   :  { %3270 = vst.msk [vmem:[#allocation2 + $0x17] sm:$0x80] %vm2089_vm5, %v3265_v36 }
0x33fa   :  { %v3267_v37 = vpop.permute.xlu0 %3266 }
0x33fb   :  { %3271 = vst.msk [vmem:[#allocation2 + $0x1f] sm:$0x1] %vm2091_vm8, %v3267_v37 }
0x3402   :  { %v3284_v39 = vld [vmem:[#allocation2 + $0x18] sm:$0xff] }
0x3403   :  { %5800 = vmatmul.mubr.msk.f32.gmra.mrb[24].mxu0 %vm901_vm7, %v3284_v39 }
0x3404   :  { %5821 = vmatprep.mubr.msk.f32.mxu0 %vm6904_vm0, %v6903_v0 }
0x3406   :  { %v3486_v42 = vpop.permute.xlu1 %3485 }
0x3407   :  { %5822 = vmatmul.mubr.msk.f32.vlgmr.msra.gmra.mrb[26].mxu0 %vm901_vm7, %v3486_v42 }
0x3408   :  { %6127 = vmatpush3.bf16.msra.mxu0 %v7654_v20  ;;  %5843 = vmatprep.mubr.msk.f32.mxu0 %vm6904_vm0, %v6903_v0 }
0x3409   :  { %6128 = vmatprep.subr.bf16.mxu0 %v6905_v9 }
0x340c   :  { %6130 = vmatpush3.bf16.msra.mxu0 %v7658_v33 }
0x340d   :  { %6137 = vmatprep.subr.bf16.mxu0 %v6905_v9 }
0x34d6   :  { %v7739_v58 = vpop.f32.mrb[24].mxu0 }
0x34d7   :  { %v7741_v11 = vpop.f32.mrb[25].mxu0 }
0x34da   :  { %v3555_v43 = vpop.f32.mrb[26].mxu0 }
0x34db   :  { %v3560_v44 = vrot.slane %v3555_v43, 6  ;;  %v5823_v50 = vpop.f32.mrb[27].mxu0 }
0x34dd   :  { %v3562_v60 = vadd.f32 %v3560_v44, %v7685_v40 }
0x34df   :  { %v3563_v48 = vadd.f32 %v7687_v41, %v3562_v60 }
0x34e1   :  { %6511 = vtanh.f32 %v3563_v48  ;;  %v3564_v22 = vsub.f32 0.0, %v3563_v48 }
0x34e3   :  { %v3565_v49 = vmul.f32 1.442695, %v3564_v22 }
0x34e5   :  { %6513 = vpow2.f32 %v3565_v49 }
0x34eb   :  { %v6512_v31 = vpop.eup %6511 }
0x34ec   :  { %3576 = vrot.lane.b32.xlu0 %v6512_v31, %s6907_s6 }
0x34ef   :  { %v6514_v63 = vpop.eup %6513 }
0x34f0   :  { %v3567_v1 = vadd.f32 1.0, %v6514_v63 }
0x34f2   :  { %6515 = vrcp.f32 %v3567_v1 }
0x34fc   :  { %v6516_v3 = vpop.eup %6515 }
0x34fd   :  { %v3574_v5 = vmul.f32 %v6516_v3, %v3572_v32 }
0x355e   :  { %v3577_v8 = vpop.permute.xlu0 %3576 }
0x355f   :  { %v3579_v52 = vmul.f32 %v6516_v3, %v3577_v8 }
0x3561   :  { %3581 = vrot.lane.b32.xlu1 %v3579_v52, %s6907_s6 }
0x35d3   :  { %v3582_v13 = vpop.permute.xlu1 %3581 }
0x35d4   :  { %v3584_v51 = vadd.f32 %v3582_v13, %v3574_v5 }
0x35d6   :  { %6517 = vtanh.f32 %v3584_v51  ;;  %v3680_v45 = vrot.slane %v3584_v51, 6 }
0x35e0   :  { %v6518_v54 = vpop.eup %6517 }
0x35e1   :  { %3587 = vrot.lane.b32.xlu0 %v6518_v54, %s6907_s6 }
0x3653   :  { %v3588_v6 = vpop.permute.xlu0 %3587 }
0x3654   :  { %v3590_v55 = vmul.f32 %v6516_v3, %v3588_v6 }
0x3656   :  { %v3592_v62 = vrot.slane %v3590_v55, 2 }
0x3658   :  { %3593 = vrot.lane.b32.xlu1 %v3592_v62, %s6897_s9 }
0x36ca   :  { %v3594_v7 = vpop.permute.xlu1 %3593 }
0x36cb   :  { %5833 = vmatmul.mubr.msk.f32.vlgmr.msra.gmra.mrb[28].mxu1 %vm901_vm7, %v3594_v7 }
0x36cc   :  { %6133 = vmatpush3.bf16.msra.mxu1 %v7654_v20  ;;  %5854 = vmatprep.mubr.msk.f32.mxu1 %vm6904_vm0, %v6903_v0 }
0x36cd   :  { %6134 = vmatprep.subr.bf16.mxu1 %v6905_v9 }
0x36d0   :  { %6136 = vmatpush3.bf16.msra.mxu1 %v7658_v33 }
0x36d1   :  { %6143 = vmatprep.subr.bf16.mxu1 %v6905_v9 }
0x379e   :  { %v3663_v4 = vpop.f32.mrb[28].mxu1 }
0x379f   :  { %v3668_v14 = vrot.slane %v3663_v4, 4  ;;  %v5834_v15 = vpop.f32.mrb[29].mxu1 }
0x37a1   :  { %v3670_v16 = vadd.f32 %v3668_v14, %v7685_v40 }
0x37a3   :  { %v3671_v18 = vadd.f32 %v7687_v41, %v3670_v16 }
0x37a5   :  { %6519 = vtanh.f32 %v3671_v18  ;;  %v3672_v46 = vsub.f32 0.0, %v3671_v18 }
0x37a7   :  { %v3673_v53 = vmul.f32 1.442695, %v3672_v46 }
0x37a9   :  { %6521 = vpow2.f32 %v3673_v53 }
0x37af   :  { %v6520_v19 = vpop.eup %6519 }
0x37b0   :  { %3684 = vrot.lane.b32.xlu0 %v6520_v19, %s6907_s6 }
0x37b3   :  { %v6522_v21 = vpop.eup %6521 }
0x37b4   :  { %v3675_v23 = vadd.f32 1.0, %v6522_v21 }
0x37b6   :  { %6523 = vrcp.f32 %v3675_v23 }
0x37c0   :  { %v6524_v57 = vpop.eup %6523 }
0x37c1   :  { %v3682_v47 = vmul.f32 %v6524_v57, %v3680_v45 }
0x3822   :  { %v3685_v24 = vpop.permute.xlu0 %3684 }
0x3823   :  { %v3687_v25 = vmul.f32 %v6524_v57, %v3685_v24 }
0x3825   :  { %3689 = vrot.lane.b32.xlu1 %v3687_v25, %s6907_s6 }
0x3897   :  { %v3690_v17 = vpop.permute.xlu1 %3689 }
0x3898   :  { %v3692_v26 = vadd.f32 %v3690_v17, %v3682_v47 }
0x389a   :  { %6525 = vtanh.f32 %v3692_v26  ;;  %v3788_v60 = vrot.slane %v3692_v26, 6 }
0x38a4   :  { %v6526_v27 = vpop.eup %6525 }
0x38a5   :  { %3695 = vrot.lane.b32.xlu0 %v6526_v27, %s6907_s6 }
0x3917   :  { %v3696_v2 = vpop.permute.xlu0 %3695 }
0x3918   :  { %v3698_v56 = vmul.f32 %v6524_v57, %v3696_v2 }
0x391a   :  { %v3700_v28 = vrot.slane %v3698_v56, 4 }
0x391c   :  { %3701 = vrot.lane.b32.xlu1 %v3700_v28, %s6897_s9 }
0x398e   :  { %v3702_v10 = vpop.permute.xlu1 %3701 }
0x398f   :  { %5844 = vmatmul.mubr.msk.f32.vlgmr.msra.gmra.mrb[28].mxu0 %vm901_vm7, %v3702_v10 }
0x3990   :  { %6139 = vmatpush3.bf16.msra.mxu0 %v7654_v20  ;;  %5865 = vmatprep.mubr.msk.f32.mxu0 %vm6904_vm0, %v6903_v0 }
0x3991   :  { %6140 = vmatprep.subr.bf16.mxu0 %v6905_v9 }
0x3994   :  { %6142 = vmatpush3.bf16.msra.mxu0 %v7658_v33 }
0x3995   :  { %6149 = vmatprep.subr.bf16.mxu0 %v6905_v9 }
0x3a62   :  { %v3771_v59 = vpop.f32.mrb[28].mxu0 }
0x3a63   :  { %v3776_v61 = vrot.slane %v3771_v59, 2  ;;  %v5845_v29 = vpop.f32.mrb[29].mxu0 }
0x3a65   :  { %v3778_v30 = vadd.f32 %v3776_v61, %v7685_v40 }
0x3a67   :  { %v3779_v34 = vadd.f32 %v7687_v41, %v3778_v30 }
0x3a69   :  { %6527 = vtanh.f32 %v3779_v34  ;;  %v3780_v36 = vsub.f32 0.0, %v3779_v34 }
0x3a6b   :  { %v3781_v37 = vmul.f32 1.442695, %v3780_v36 }
0x3a6d   :  { %6529 = vpow2.f32 %v3781_v37 }
0x3a73   :  { %v6528_v35 = vpop.eup %6527 }
0x3a74   :  { %3792 = vrot.lane.b32.xlu0 %v6528_v35, %s6907_s6 }
0x3a77   :  { %v6530_v39 = vpop.eup %6529 }
0x3a78   :  { %v3783_v42 = vadd.f32 1.0, %v6530_v39 }
0x3a7a   :  { %6531 = vrcp.f32 %v3783_v42 }
0x3a84   :  { %v6532_v43 = vpop.eup %6531 }
0x3a85   :  { %v3790_v48 = vmul.f32 %v6532_v43, %v3788_v60 }
0x3ae6   :  { %v3793_v44 = vpop.permute.xlu0 %3792 }
0x3ae7   :  { %v3795_v50 = vmul.f32 %v6532_v43, %v3793_v44 }
0x3ae9   :  { %3797 = vrot.lane.b32.xlu1 %v3795_v50, %s6907_s6 }
0x3b5b   :  { %v3798_v40 = vpop.permute.xlu1 %3797 }
0x3b5c   :  { %v3800_v31 = vadd.f32 %v3798_v40, %v3790_v48 }
0x3b5e   :  { %6533 = vtanh.f32 %v3800_v31  ;;  %v3893_v14 = vrot.slane %v3800_v31, 6 }
0x3b68   :  { %v6534_v22 = vpop.eup %6533 }
0x3b69   :  { %3803 = vrot.lane.b32.xlu0 %v6534_v22, %s6907_s6 }
0x3bdb   :  { %v3804_v49 = vpop.permute.xlu0 %3803 }
0x3bdc   :  { %v3806_v63 = vmul.f32 %v6532_v43, %v3804_v49 }
0x3bde   :  { %v3808_v1 = vrot.slane %v3806_v63, 6 }
0x3be0   :  { %3809 = vrot.lane.b32.xlu1 %v3808_v1, %s6897_s9 }
0x3c52   :  { %v3810_v3 = vpop.permute.xlu1 %3809 }
0x3c53   :  { %5855 = vmatmul.mubr.msk.f32.vlgmr.msra.gmra.mrb[30].mxu1 %vm901_vm7, %v3810_v3 }
0x3c54   :  { %6145 = vmatpush3.bf16.msra.mxu1 %v7654_v20  ;;  %5876 = vmatprep.mubr.msk.f32.mxu1 %vm6904_vm0, %v6903_v0 }
0x3c55   :  { %6146 = vmatprep.subr.bf16.mxu1 %v6905_v9 }
0x3c58   :  { %6148 = vmatpush3.bf16.msra.mxu1 %v7658_v33 }
0x3c59   :  { %6155 = vmatprep.subr.bf16.mxu1 %v6905_v9 }
0x3d26   :  { %v3879_v8 = vpop.f32.mrb[30].mxu1 }
0x3d27   :  { %v3883_v52 = vadd.f32 %v7683_v38, %v3879_v8  ;;  %v5856_v32 = vpop.f32.mrb[31].mxu1 }
0x3d29   :  { %v3884_v5 = vadd.f32 %v7687_v41, %v3883_v52 }
0x3d2b   :  { %6535 = vtanh.f32 %v3884_v5  ;;  %v3885_v51 = vsub.f32 0.0, %v3884_v5 }
0x3d2d   :  { %v3886_v54 = vmul.f32 1.442695, %v3885_v51 }
0x3d2f   :  { %6537 = vpow2.f32 %v3886_v54 }
0x3d35   :  { %v6536_v13 = vpop.eup %6535 }
0x3d36   :  { %3897 = vrot.lane.b32.xlu0 %v6536_v13, %s6907_s6 }
0x3d39   :  { %v6538_v6 = vpop.eup %6537 }
0x3d3a   :  { %v3888_v55 = vadd.f32 1.0, %v6538_v6 }
0x3d3c   :  { %6539 = vrcp.f32 %v3888_v55 }
0x3d46   :  { %v6540_v62 = vpop.eup %6539 }
0x3d47   :  { %v3895_v15 = vmul.f32 %v6540_v62, %v3893_v14 }
0x3da8   :  { %v3898_v7 = vpop.permute.xlu0 %3897 }
0x3da9   :  { %v3900_v4 = vmul.f32 %v6540_v62, %v3898_v7 }
0x3dab   :  { %3902 = vrot.lane.b32.xlu1 %v3900_v4, %s6907_s6 }
0x3e1d   :  { %v3903_v16 = vpop.permute.xlu1 %3902 }
0x3e1e   :  { %v3905_v18 = vadd.f32 %v3903_v16, %v3895_v15 }
0x3e20   :  { %6541 = vtanh.f32 %v3905_v18  ;;  %v4000_v59 = vrot.slane %v3905_v18, 6 }
0x3e2a   :  { %v6542_v19 = vpop.eup %6541 }
0x3e2b   :  { %3908 = vrot.lane.b32.xlu0 %v6542_v19, %s6907_s6 }
0x3e9d   :  { %v3909_v46 = vpop.permute.xlu0 %3908 }
0x3e9e   :  { %v3911_v53 = vmul.f32 %v6540_v62, %v3909_v46 }
0x3ea0   :  { %3913 = vrot.lane.b32.xlu1 %v3911_v53, %s6897_s9 }
0x3f12   :  { %v3914_v21 = vpop.permute.xlu1 %3913 }
0x3f13   :  { %5866 = vmatmul.mubr.msk.f32.vlgmr.msra.gmra.mrb[30].mxu0 %vm901_vm7, %v3914_v21 }
0x3f14   :  { %6151 = vmatpush3.bf16.msra.mxu0 %v7654_v20  ;;  %5887 = vmatprep.mubr.msk.f32.mxu0 %vm6904_vm0, %v6903_v0 }
0x3f15   :  { %6152 = vmatprep.subr.bf16.mxu0 %v6905_v9 }
0x3f18   :  { %6154 = vmatpush3.bf16.msra.mxu0 %v7658_v33 }
0x3f19   :  { %6161 = vmatprep.subr.bf16.mxu0 %v6905_v9 }
0x3fe6   :  { %v3983_v23 = vpop.f32.mrb[30].mxu0 }
0x3fe7   :  { %v3988_v57 = vrot.slane %v3983_v23, 6  ;;  %v5867_v24 = vpop.f32.mrb[31].mxu0 }
0x3fe9   :  { %v3990_v25 = vadd.f32 %v7683_v38, %v3988_v57 }
0x3feb   :  { %v3991_v45 = vadd.f32 %v7687_v41, %v3990_v25 }
0x3fed   :  { %6543 = vtanh.f32 %v3991_v45  ;;  %v3992_v17 = vsub.f32 0.0, %v3991_v45 }
0x3fef   :  { %v3993_v26 = vmul.f32 1.442695, %v3992_v17 }
0x3ff1   :  { %6545 = vpow2.f32 %v3993_v26 }
0x3ff7   :  { %v6544_v47 = vpop.eup %6543 }
0x3ff8   :  { %4004 = vrot.lane.b32.xlu0 %v6544_v47, %s6907_s6 }
0x3ffb   :  { %v6546_v27 = vpop.eup %6545 }
0x3ffc   :  { %v3995_v2 = vadd.f32 1.0, %v6546_v27 }
0x3ffe   :  { %6547 = vrcp.f32 %v3995_v2 }
0x4008   :  { %v6548_v56 = vpop.eup %6547 }
0x4009   :  { %v4002_v61 = vmul.f32 %v6548_v56, %v4000_v59 }
0x406a   :  { %v4005_v28 = vpop.permute.xlu0 %4004 }
0x406b   :  { %v4007_v10 = vmul.f32 %v6548_v56, %v4005_v28 }
0x406d   :  { %4009 = vrot.lane.b32.xlu1 %v4007_v10, %s6907_s6 }
0x40df   :  { %v4010_v29 = vpop.permute.xlu1 %4009 }
0x40e0   :  { %v4012_v30 = vadd.f32 %v4010_v29, %v4002_v61 }
0x40e2   :  { %6549 = vtanh.f32 %v4012_v30  ;;  %v4108_v8 = vrot.slane %v4012_v30, 6 }
0x40ec   :  { %v6550_v34 = vpop.eup %6549 }
0x40ed   :  { %4015 = vrot.lane.b32.xlu0 %v6550_v34, %s6907_s6 }
0x415f   :  { %v4016_v35 = vpop.permute.xlu0 %4015 }
0x4160   :  { %v4018_v36 = vmul.f32 %v6548_v56, %v4016_v35 }
0x4162   :  { %v4020_v37 = vrot.slane %v4018_v36, 2 }
0x4164   :  { %4021 = vrot.lane.b32.xlu1 %v4020_v37, %s6897_s9 }
0x41d6   :  { %v4022_v39 = vpop.permute.xlu1 %4021 }
0x41d7   :  { %5877 = vmatmul.mubr.msk.f32.vlgmr.msra.gmra.mrb[32].mxu1 %vm901_vm7, %v4022_v39 }
0x41d8   :  { %6157 = vmatpush3.bf16.msra.mxu1 %v7654_v20  ;;  %5898 = vmatprep.mubr.msk.f32.mxu1 %vm6904_vm0, %v6903_v0 }
0x41d9   :  { %6158 = vmatprep.subr.bf16.mxu1 %v6905_v9 }
0x41dc   :  { %6160 = vmatpush3.bf16.msra.mxu1 %v7658_v33 }
0x41dd   :  { %6167 = vmatprep.subr.bf16.mxu1 %v6905_v9 }
0x42aa   :  { %v4091_v42 = vpop.f32.mrb[32].mxu1 }
0x42ab   :  { %v4096_v43 = vrot.slane %v4091_v42, 4  ;;  %v5878_v44 = vpop.f32.mrb[33].mxu1 }
0x42ad   :  { %v4098_v50 = vadd.f32 %v7683_v38, %v4096_v43 }
0x42af   :  { %v4099_v60 = vadd.f32 %v7687_v41, %v4098_v50 }
0x42b1   :  { %6551 = vtanh.f32 %v4099_v60  ;;  %v4100_v40 = vsub.f32 0.0, %v4099_v60 }
0x42b3   :  { %v4101_v31 = vmul.f32 1.442695, %v4100_v40 }
0x42b5   :  { %6553 = vpow2.f32 %v4101_v31 }
0x42bb   :  { %v6552_v48 = vpop.eup %6551 }
0x42bc   :  { %4112 = vrot.lane.b32.xlu0 %v6552_v48, %s6907_s6 }
0x42bf   :  { %v6554_v22 = vpop.eup %6553 }
0x42c0   :  { %v4103_v49 = vadd.f32 1.0, %v6554_v22 }
0x42c2   :  { %6555 = vrcp.f32 %v4103_v49 }
0x42cc   :  { %v6556_v63 = vpop.eup %6555 }
0x42cd   :  { %v4110_v52 = vmul.f32 %v6556_v63, %v4108_v8 }
0x432e   :  { %v4113_v1 = vpop.permute.xlu0 %4112 }
0x432f   :  { %v4115_v3 = vmul.f32 %v6556_v63, %v4113_v1 }
0x4331   :  { %4117 = vrot.lane.b32.xlu1 %v4115_v3, %s6907_s6 }
0x43a3   :  { %v4118_v32 = vpop.permute.xlu1 %4117 }
0x43a4   :  { %v4120_v5 = vadd.f32 %v4118_v32, %v4110_v52 }
0x43a6   :  { %6557 = vtanh.f32 %v4120_v5  ;;  %v4216_v24 = vrot.slane %v4120_v5, 6 }
0x43b0   :  { %v6558_v13 = vpop.eup %6557 }
0x43b1   :  { %4123 = vrot.lane.b32.xlu0 %v6558_v13, %s6907_s6 }
0x4423   :  { %v4124_v51 = vpop.permute.xlu0 %4123 }
0x4424   :  { %v4126_v54 = vmul.f32 %v6556_v63, %v4124_v51 }
0x4426   :  { %v4128_v6 = vrot.slane %v4126_v54, 4 }
0x4428   :  { %4129 = vrot.lane.b32.xlu1 %v4128_v6, %s6897_s9 }
0x449a   :  { %v4130_v55 = vpop.permute.xlu1 %4129 }
0x449b   :  { %5888 = vmatmul.mubr.msk.f32.vlgmr.msra.gmra.mrb[32].mxu0 %vm901_vm7, %v4130_v55 }
0x449c   :  { %6163 = vmatpush3.bf16.msra.mxu0 %v7654_v20  ;;  %5909 = vmatprep.mubr.msk.f32.mxu0 %vm6904_vm0, %v6903_v0 }
0x449d   :  { %6164 = vmatprep.subr.bf16.mxu0 %v6905_v9 }
0x44a0   :  { %6166 = vmatpush3.bf16.msra.mxu0 %v7658_v33 }
0x44a1   :  { %6173 = vmatprep.subr.bf16.mxu0 %v6905_v9 }
0x456e   :  { %v4199_v62 = vpop.f32.mrb[32].mxu0 }
0x456f   :  { %v4204_v7 = vrot.slane %v4199_v62, 2  ;;  %v5889_v4 = vpop.f32.mrb[33].mxu0 }
0x4571   :  { %v4206_v14 = vadd.f32 %v7683_v38, %v4204_v7 }
0x4573   :  { %v4207_v15 = vadd.f32 %v7687_v41, %v4206_v14 }
0x4575   :  { %6559 = vtanh.f32 %v4207_v15  ;;  %v4208_v18 = vsub.f32 0.0, %v4207_v15 }
0x4577   :  { %v4209_v19 = vmul.f32 1.442695, %v4208_v18 }
0x4579   :  { %6561 = vpow2.f32 %v4209_v19 }
0x457f   :  { %v6560_v16 = vpop.eup %6559 }
0x4580   :  { %4220 = vrot.lane.b32.xlu0 %v6560_v16, %s6907_s6 }
0x4583   :  { %v6562_v46 = vpop.eup %6561 }
0x4584   :  { %v4211_v53 = vadd.f32 1.0, %v6562_v46 }
0x4586   :  { %6563 = vrcp.f32 %v4211_v53 }
0x4590   :  { %v6564_v21 = vpop.eup %6563 }
0x4591   :  { %v4218_v25 = vmul.f32 %v6564_v21, %v4216_v24 }
0x45f2   :  { %v4221_v23 = vpop.permute.xlu0 %4220 }
0x45f3   :  { %v4223_v57 = vmul.f32 %v6564_v21, %v4221_v23 }
0x45f5   :  { %4225 = vrot.lane.b32.xlu1 %v4223_v57, %s6907_s6 }
0x4667   :  { %v4226_v38 = vpop.permute.xlu1 %4225 }
0x4668   :  { %v4228_v45 = vadd.f32 %v4226_v38, %v4218_v25 }
0x466a   :  { %6565 = vtanh.f32 %v4228_v45  ;;  %v4321_v42 = vrot.slane %v4228_v45, 6 }
0x4674   :  { %v6566_v47 = vpop.eup %6565 }
0x4675   :  { %4231 = vrot.lane.b32.xlu0 %v6566_v47, %s6907_s6 }
0x46e7   :  { %v4232_v17 = vpop.permute.xlu0 %4231 }
0x46e8   :  { %v4234_v26 = vmul.f32 %v6564_v21, %v4232_v17 }
0x46ea   :  { %v4236_v27 = vrot.slane %v4234_v26, 6 }
0x46ec   :  { %4237 = vrot.lane.b32.xlu1 %v4236_v27, %s6897_s9 }
0x475e   :  { %v4238_v2 = vpop.permute.xlu1 %4237 }
0x475f   :  { %5899 = vmatmul.mubr.msk.f32.vlgmr.msra.gmra.mrb[34].mxu1 %vm901_vm7, %v4238_v2 }
0x4760   :  { %6169 = vmatpush3.bf16.msra.mxu1 %v7654_v20  ;;  %5920 = vmatprep.mubr.msk.f32.mxu1 %vm6904_vm0, %v6903_v0 }
0x4761   :  { %6170 = vmatprep.subr.bf16.mxu1 %v6905_v9 }
0x4764   :  { %6172 = vmatpush3.bf16.msra.mxu1 %v7658_v33 }
0x4765   :  { %6179 = vmatprep.subr.bf16.mxu1 %v6905_v9 }
0x4832   :  { %v4307_v56 = vpop.f32.mrb[34].mxu1 }
0x4833   :  { %v4311_v28 = vadd.f32 %v4307_v56, %v7741_v11  ;;  %v5900_v10 = vpop.f32.mrb[35].mxu1 }
0x4835   :  { %v4312_v59 = vadd.f32 %v7687_v41, %v4311_v28 }
0x4837   :  { %6567 = vtanh.f32 %v4312_v59  ;;  %v4313_v29 = vsub.f32 0.0, %v4312_v59 }
0x4839   :  { %v4314_v30 = vmul.f32 1.442695, %v4313_v29 }
0x483b   :  { %6569 = vpow2.f32 %v4314_v30 }
0x4841   :  { %v6568_v61 = vpop.eup %6567 }
0x4842   :  { %4325 = vrot.lane.b32.xlu0 %v6568_v61, %s6907_s6 }
0x4845   :  { %v6570_v34 = vpop.eup %6569 }
0x4846   :  { %v4316_v35 = vadd.f32 1.0, %v6570_v34 }
0x4848   :  { %6571 = vrcp.f32 %v4316_v35 }
0x4852   :  { %v6572_v36 = vpop.eup %6571 }
0x4853   :  { %v4323_v43 = vmul.f32 %v6572_v36, %v4321_v42 }
0x48b4   :  { %v4326_v37 = vpop.permute.xlu0 %4325 }
0x48b5   :  { %v4328_v39 = vmul.f32 %v6572_v36, %v4326_v37 }
0x48b7   :  { %4330 = vrot.lane.b32.xlu1 %v4328_v39, %s6907_s6 }
0x4929   :  { %v4331_v44 = vpop.permute.xlu1 %4330 }
0x492a   :  { %v4333_v50 = vadd.f32 %v4331_v44, %v4323_v43 }
0x492c   :  { %6573 = vtanh.f32 %v4333_v50  ;;  %v4428_v55 = vrot.slane %v4333_v50, 6 }
0x4936   :  { %v6574_v60 = vpop.eup %6573 }
0x4937   :  { %4336 = vrot.lane.b32.xlu0 %v6574_v60, %s6907_s6 }
0x49a9   :  { %v4337_v48 = vpop.permute.xlu0 %4336 }
0x49aa   :  { %v4339_v40 = vmul.f32 %v6572_v36, %v4337_v48 }
0x49ac   :  { %4341 = vrot.lane.b32.xlu1 %v4339_v40, %s6897_s9 }
0x4a1e   :  { %v4342_v31 = vpop.permute.xlu1 %4341 }
0x4a1f   :  { %5910 = vmatmul.mubr.msk.f32.vlgmr.msra.gmra.mrb[34].mxu0 %vm901_vm7, %v4342_v31 }
0x4a20   :  { %6175 = vmatpush3.bf16.msra.mxu0 %v7654_v20  ;;  %5931 = vmatprep.mubr.msk.f32.mxu0 %vm6904_vm0, %v6903_v0 }
0x4a21   :  { %6176 = vmatprep.subr.bf16.mxu0 %v6905_v9 }
0x4a24   :  { %6178 = vmatpush3.bf16.msra.mxu0 %v7658_v33 }
0x4a25   :  { %6185 = vmatprep.subr.bf16.mxu0 %v6905_v9 }
0x4af2   :  { %v4411_v22 = vpop.f32.mrb[34].mxu0 }
0x4af3   :  { %v4416_v49 = vrot.slane %v4411_v22, 6  ;;  %v5911_v63 = vpop.f32.mrb[35].mxu0 }
0x4af5   :  { %v4418_v1 = vadd.f32 %v4416_v49, %v7741_v11 }
0x4af7   :  { %v4419_v3 = vadd.f32 %v7687_v41, %v4418_v1 }
0x4af9   :  { %6575 = vtanh.f32 %v4419_v3  ;;  %v4420_v52 = vsub.f32 0.0, %v4419_v3 }
0x4afb   :  { %v4421_v32 = vmul.f32 1.442695, %v4420_v52 }
0x4afd   :  { %6577 = vpow2.f32 %v4421_v32 }
0x4b03   :  { %v6576_v8 = vpop.eup %6575 }
0x4b04   :  { %4432 = vrot.lane.b32.xlu0 %v6576_v8, %s6907_s6 }
0x4b07   :  { %v6578_v5 = vpop.eup %6577 }
0x4b08   :  { %v4423_v13 = vadd.f32 1.0, %v6578_v5 }
0x4b0a   :  { %6579 = vrcp.f32 %v4423_v13 }
0x4b14   :  { %v6580_v51 = vpop.eup %6579 }
0x4b15   :  { %v4430_v62 = vmul.f32 %v6580_v51, %v4428_v55 }
0x4b76   :  { %v4433_v54 = vpop.permute.xlu0 %4432 }
0x4b77   :  { %v4435_v6 = vmul.f32 %v6580_v51, %v4433_v54 }
0x4b79   :  { %4437 = vrot.lane.b32.xlu1 %v4435_v6, %s6907_s6 }
0x4beb   :  { %v4438_v7 = vpop.permute.xlu1 %4437 }
0x4bec   :  { %v4440_v4 = vadd.f32 %v4438_v7, %v4430_v62 }
0x4bee   :  { %6581 = vtanh.f32 %v4440_v4  ;;  %v4536_v2 = vrot.slane %v4440_v4, 6 }
0x4bf8   :  { %v6582_v14 = vpop.eup %6581 }
0x4bf9   :  { %4443 = vrot.lane.b32.xlu0 %v6582_v14, %s6907_s6 }
0x4c6b   :  { %v4444_v15 = vpop.permute.xlu0 %4443 }
0x4c6c   :  { %v4446_v16 = vmul.f32 %v6580_v51, %v4444_v15 }
0x4c6e   :  { %v4448_v18 = vrot.slane %v4446_v16, 2 }
0x4c70   :  { %4449 = vrot.lane.b32.xlu1 %v4448_v18, %s6897_s9 }
0x4ce2   :  { %v4450_v19 = vpop.permute.xlu1 %4449 }
0x4ce3   :  { %5921 = vmatmul.mubr.msk.f32.vlgmr.msra.gmra.mrb[36].mxu1 %vm901_vm7, %v4450_v19 }
0x4ce4   :  { %6181 = vmatpush3.bf16.msra.mxu1 %v7654_v20  ;;  %5942 = vmatprep.mubr.msk.f32.mxu1 %vm6904_vm0, %v6903_v0 }
0x4ce5   :  { %6182 = vmatprep.subr.bf16.mxu1 %v6905_v9 }
0x4ce8   :  { %6184 = vmatpush3.bf16.msra.mxu1 %v7658_v33 }
0x4ce9   :  { %6191 = vmatprep.subr.bf16.mxu1 %v6905_v9 }
0x4db6   :  { %v4519_v46 = vpop.f32.mrb[36].mxu1 }
0x4db7   :  { %v4524_v53 = vrot.slane %v4519_v46, 4  ;;  %v5922_v21 = vpop.f32.mrb[37].mxu1 }
0x4db9   :  { %v4526_v23 = vadd.f32 %v4524_v53, %v7741_v11 }
0x4dbb   :  { %v4527_v57 = vadd.f32 %v7687_v41, %v4526_v23 }
0x4dbd   :  { %6583 = vtanh.f32 %v4527_v57  ;;  %v4528_v25 = vsub.f32 0.0, %v4527_v57 }
0x4dbf   :  { %v4529_v38 = vmul.f32 1.442695, %v4528_v25 }
0x4dc1   :  { %6585 = vpow2.f32 %v4529_v38 }
0x4dc7   :  { %v6584_v24 = vpop.eup %6583 }
0x4dc8   :  { %4540 = vrot.lane.b32.xlu0 %v6584_v24, %s6907_s6 }
0x4dcb   :  { %v6586_v45 = vpop.eup %6585 }
0x4dcc   :  { %v4531_v47 = vadd.f32 1.0, %v6586_v45 }
0x4dce   :  { %6587 = vrcp.f32 %v4531_v47 }
0x4dd8   :  { %v6588_v17 = vpop.eup %6587 }
0x4dd9   :  { %v4538_v56 = vmul.f32 %v6588_v17, %v4536_v2 }
0x4e3a   :  { %v4541_v26 = vpop.permute.xlu0 %4540 }
0x4e3b   :  { %v4543_v27 = vmul.f32 %v6588_v17, %v4541_v26 }
0x4e3d   :  { %4545 = vrot.lane.b32.xlu1 %v4543_v27, %s6907_s6 }
0x4eaf   :  { %v4546_v28 = vpop.permute.xlu1 %4545 }
0x4eb0   :  { %v4548_v10 = vadd.f32 %v4546_v28, %v4538_v56 }
0x4eb2   :  { %6589 = vtanh.f32 %v4548_v10  ;;  %v4644_v49 = vrot.slane %v4548_v10, 6 }
0x4ebc   :  { %v6590_v59 = vpop.eup %6589 }
0x4ebd   :  { %4551 = vrot.lane.b32.xlu0 %v6590_v59, %s6907_s6 }
0x4f2f   :  { %v4552_v61 = vpop.permute.xlu0 %4551 }
0x4f30   :  { %v4554_v29 = vmul.f32 %v6588_v17, %v4552_v61  ;;  %v7901_v17 = vld [vmem:[#allocation14] ss:$0 sm:$0xff] }
0x4f32   :  { %v4556_v30 = vrot.slane %v4554_v29, 4 }
0x4f34   :  { %4557 = vrot.lane.b32.xlu1 %v4556_v30, %s6897_s9 }
0x4fa6   :  { %v4558_v34 = vpop.permute.xlu1 %4557 }
0x4fa7   :  { %5932 = vmatmul.mubr.msk.f32.vlgmr.msra.gmra.mrb[36].mxu0 %vm901_vm7, %v4558_v34 }
0x4fa8   :  { %6187 = vmatpush3.bf16.msra.mxu0 %v7654_v20  ;;  %5953 = vmatprep.mubr.msk.f32.mxu0 %vm6904_vm0, %v6903_v0 }
0x4fa9   :  { %6188 = vmatprep.subr.bf16.mxu0 %v6905_v9 }
0x4fac   :  { %6190 = vmatpush3.bf16.msra.mxu0 %v7658_v33 }
0x4fad   :  { %6197 = vmatprep.subr.bf16.mxu0 %v6905_v9 }
0x507a   :  { %v4627_v35 = vpop.f32.mrb[36].mxu0 }
0x507b   :  { %v4632_v36 = vrot.slane %v4627_v35, 2  ;;  %v5933_v37 = vpop.f32.mrb[37].mxu0 }
0x507d   :  { %v4634_v39 = vadd.f32 %v4632_v36, %v7741_v11 }
0x507f   :  { %v4635_v42 = vadd.f32 %v7687_v41, %v4634_v39 }
0x5081   :  { %6591 = vtanh.f32 %v4635_v42  ;;  %v4636_v44 = vsub.f32 0.0, %v4635_v42 }
0x5083   :  { %v4637_v50 = vmul.f32 1.442695, %v4636_v44 }
0x5085   :  { %6593 = vpow2.f32 %v4637_v50 }
0x508b   :  { %v6592_v43 = vpop.eup %6591 }
0x508c   :  { %4648 = vrot.lane.b32.xlu0 %v6592_v43, %s6907_s6 }
0x508f   :  { %v6594_v60 = vpop.eup %6593 }
0x5090   :  { %v4639_v48 = vadd.f32 1.0, %v6594_v60 }
0x5092   :  { %6595 = vrcp.f32 %v4639_v48 }
0x509c   :  { %v6596_v40 = vpop.eup %6595 }
0x509d   :  { %v4646_v63 = vmul.f32 %v6596_v40, %v4644_v49 }
0x50fe   :  { %v4649_v31 = vpop.permute.xlu0 %4648 }
0x50ff   :  { %v4651_v22 = vmul.f32 %v6596_v40, %v4649_v31 }
0x5101   :  { %4653 = vrot.lane.b32.xlu1 %v4651_v22, %s6907_s6 }
0x5173   :  { %v4654_v11 = vpop.permute.xlu1 %4653 }
0x5174   :  { %v4656_v1 = vadd.f32 %v4654_v11, %v4646_v63 }
0x5176   :  { %6597 = vtanh.f32 %v4656_v1  ;;  %v4749_v19 = vrot.slane %v4656_v1, 6 }
0x5180   :  { %v6598_v3 = vpop.eup %6597 }
0x5181   :  { %4659 = vrot.lane.b32.xlu0 %v6598_v3, %s6907_s6 }
0x51f3   :  { %v4660_v8 = vpop.permute.xlu0 %4659 }
0x51f4   :  { %v4662_v52 = vmul.f32 %v6596_v40, %v4660_v8 }
0x51f6   :  { %v4664_v32 = vrot.slane %v4662_v52, 6 }
0x51f8   :  { %4665 = vrot.lane.b32.xlu1 %v4664_v32, %s6897_s9 }
0x526a   :  { %v4666_v5 = vpop.permute.xlu1 %4665 }
0x526b   :  { %5943 = vmatmul.mubr.msk.f32.vlgmr.msra.gmra.mrb[38].mxu1 %vm901_vm7, %v4666_v5 }
0x526c   :  { %6193 = vmatpush3.bf16.msra.mxu1 %v7654_v20  ;;  %5964 = vmatprep.mubr.msk.f32.mxu1 %vm6904_vm0, %v6903_v0 }
0x526d   :  { %6194 = vmatprep.subr.bf16.mxu1 %v6905_v9 }
0x5270   :  { %6196 = vmatpush3.bf16.msra.mxu1 %v7658_v33 }
0x5271   :  { %6203 = vmatprep.subr.bf16.mxu1 %v6905_v9 }
0x533e   :  { %v4735_v13 = vpop.f32.mrb[38].mxu1 }
0x533f   :  { %v4739_v51 = vadd.f32 %v7739_v58, %v4735_v13  ;;  %v5944_v54 = vpop.f32.mrb[39].mxu1 }
0x5341   :  { %v4740_v6 = vadd.f32 %v7687_v41, %v4739_v51 }
0x5343   :  { %6599 = vtanh.f32 %v4740_v6  ;;  %v4741_v62 = vsub.f32 0.0, %v4740_v6 }
0x5345   :  { %v4742_v7 = vmul.f32 1.442695, %v4741_v62 }
0x5347   :  { %6601 = vpow2.f32 %v4742_v7 }
0x534d   :  { %v6600_v55 = vpop.eup %6599 }
0x534e   :  { %4753 = vrot.lane.b32.xlu0 %v6600_v55, %s6907_s6 }
0x5351   :  { %v6602_v4 = vpop.eup %6601 }
0x5352   :  { %v4744_v14 = vadd.f32 1.0, %v6602_v4 }
0x5354   :  { %6603 = vrcp.f32 %v4744_v14 }
0x535e   :  { %v6604_v15 = vpop.eup %6603 }
0x535f   :  { %v4751_v46 = vmul.f32 %v6604_v15, %v4749_v19 }
0x53c0   :  { %v4754_v16 = vpop.permute.xlu0 %4753 }
0x53c1   :  { %v4756_v18 = vmul.f32 %v6604_v15, %v4754_v16 }
0x53c3   :  { %4758 = vrot.lane.b32.xlu1 %v4756_v18, %s6907_s6 }
0x5435   :  { %v4759_v53 = vpop.permute.xlu1 %4758 }
0x5436   :  { %v4761_v21 = vadd.f32 %v4759_v53, %v4751_v46 }
0x5438   :  { %6605 = vtanh.f32 %v4761_v21  ;;  %v4856_v61 = vrot.slane %v4761_v21, 6 }
0x5442   :  { %v6606_v41 = vpop.eup %6605 }
0x5443   :  { %4764 = vrot.lane.b32.xlu0 %v6606_v41, %s6907_s6 }
0x54b5   :  { %v4765_v23 = vpop.permute.xlu0 %4764 }
0x54b6   :  { %v4767_v57 = vmul.f32 %v6604_v15, %v4765_v23 }
0x54b8   :  { %4769 = vrot.lane.b32.xlu1 %v4767_v57, %s6897_s9 }
0x552a   :  { %v4770_v24 = vpop.permute.xlu1 %4769 }
0x552b   :  { %5954 = vmatmul.mubr.msk.f32.vlgmr.msra.gmra.mrb[38].mxu0 %vm901_vm7, %v4770_v24 }
0x552c   :  { %6199 = vmatpush3.bf16.msra.mxu0 %v7654_v20  ;;  %5975 = vmatprep.mubr.msk.f32.mxu0 %vm6904_vm0, %v6903_v0 }
0x552d   :  { %6200 = vmatprep.subr.bf16.mxu0 %v6905_v9 }
0x5530   :  { %6202 = vmatpush3.bf16.msra.mxu0 %v7658_v33 }
0x5531   :  { %6209 = vmatprep.subr.bf16.mxu0 %v6905_v9 }
0x55fe   :  { %v4839_v25 = vpop.f32.mrb[38].mxu0 }
0x55ff   :  { %v4844_v38 = vrot.slane %v4839_v25, 6  ;;  %v5955_v45 = vpop.f32.mrb[39].mxu0 }
0x5601   :  { %v4846_v47 = vadd.f32 %v7739_v58, %v4844_v38  ;;  %v235_v38 = vmax.f32 %v7150_v12, 0.0  ;;  %v5180_v12 = vld [vmem:[%s8002_s13 + $0x8] sm:$0xff] }
0x5603   :  { %v4847_v26 = vadd.f32 %v7901_v17, %v4846_v47  ;;  %v237_v45 = vsel %vm236_vm2, %v235_v38, 0.0  ;;  %v5091_v47 = vld [vmem:[#allocation15] sm:$0xff] }
0x5605   :  { %6607 = vtanh.f32 %v4847_v26  ;;  %v4848_v27 = vsub.f32 0.0, %v4847_v26  ;;  %v5093_v26 = vld [vmem:[#allocation15 + $0x10] sm:$0xff] }
0x5607   :  { %v4849_v2 = vmul.f32 1.442695, %v4848_v27  ;;  %v5094_v27 = vld [vmem:[#allocation15 + $0x18] sm:$0xff] }
0x5609   :  { %6609 = vpow2.f32 %v4849_v2  ;;  %v6207_v2 = vpack.c.bf16 %v5094_v27, %v5093_v26 }
0x560f   :  { %v6608_v20 = vpop.eup %6607 }
0x5610   :  { %4860 = vrot.lane.b32.xlu0 %v6608_v20, %s6907_s6 }
0x5613   :  { %v6610_v56 = vpop.eup %6609 }
0x5614   :  { %v4851_v33 = vadd.f32 1.0, %v6610_v56  ;;  %v5179_v56 = vld [vmem:[%s8002_s13] sm:$0xff] }
0x5616   :  { %6611 = vrcp.f32 %v4851_v33  ;;  %v6210_v33 = vpack.c.bf16 %v5180_v12, %v5179_v56 }
0x5620   :  { %v6612_v28 = vpop.eup %6611 }
0x5621   :  { %v4858_v29 = vmul.f32 %v6612_v28, %v4856_v61 }
0x5682   :  { %v4861_v10 = vpop.permute.xlu0 %4860 }
0x5683   :  { %v4863_v59 = vmul.f32 %v6612_v28, %v4861_v10 }
0x5685   :  { %4865 = vrot.lane.b32.xlu1 %v4863_v59, %s6907_s6 }
0x56f7   :  { %v4866_v30 = vpop.permute.xlu1 %4865 }
0x56f8   :  { %v4868_v34 = vadd.f32 %v4866_v30, %v4858_v29 }
0x56fa   :  { %6613 = vtanh.f32 %v4868_v34  ;;  %v4964_v8 = vrot.slane %v4868_v34, 6 }
0x5704   :  { %v6614_v35 = vpop.eup %6613 }
0x5705   :  { %4871 = vrot.lane.b32.xlu0 %v6614_v35, %s6907_s6 }
0x5777   :  { %v4872_v36 = vpop.permute.xlu0 %4871 }
0x5778   :  { %v4874_v37 = vmul.f32 %v6612_v28, %v4872_v36 }
0x577a   :  { %v4876_v39 = vrot.slane %v4874_v37, 2  ;;  %v5182_v37 = vld [vmem:[%s8002_s13 + $0x18] sm:$0xff] }
0x577c   :  { %4877 = vrot.lane.b32.xlu1 %v4876_v39, %s6897_s9 }
0x57ee   :  { %v4878_v42 = vpop.permute.xlu1 %4877 }
0x57ef   :  { %5965 = vmatmul.mubr.msk.f32.vlgmr.msra.gmra.mrb[40].mxu1 %vm901_vm7, %v4878_v42  ;;  %v5369_v42 = vld [vmem:[%s8001_s12] ss:$0 sm:$0xff] }
0x57f0   :  { %5986 = vmatprep.mubr.msk.f32.mxu1 %vm6904_vm0, %v6903_v0 }
0x58c2   :  { %v4947_v43 = vpop.f32.mrb[40].mxu1 }
0x58c3   :  { %v4952_v44 = vrot.slane %v4947_v43, 4  ;;  %v5966_v50 = vpop.f32.mrb[41].mxu1 }
0x58c5   :  { %v4954_v60 = vadd.f32 %v7739_v58, %v4952_v44 }
0x58c7   :  { %v4955_v48 = vadd.f32 %v7901_v17, %v4954_v60 }
0x58c9   :  { %6615 = vtanh.f32 %v4955_v48  ;;  %v4956_v31 = vsub.f32 0.0, %v4955_v48 }
0x58cb   :  { %v4957_v22 = vmul.f32 1.442695, %v4956_v31 }
0x58cd   :  { %6617 = vpow2.f32 %v4957_v22 }
0x58d3   :  { %v6616_v40 = vpop.eup %6615 }
0x58d4   :  { %4968 = vrot.lane.b32.xlu0 %v6616_v40, %s6907_s6 }
0x58d7   :  { %v6618_v49 = vpop.eup %6617 }
0x58d8   :  { %v4959_v63 = vadd.f32 1.0, %v6618_v49 }
0x58da   :  { %6619 = vrcp.f32 %v4959_v63 }
0x58e4   :  { %v6620_v11 = vpop.eup %6619 }
0x58e5   :  { %v4966_v52 = vmul.f32 %v6620_v11, %v4964_v8 }
0x5946   :  { %v4969_v1 = vpop.permute.xlu0 %4968 }
0x5947   :  { %v4971_v3 = vmul.f32 %v6620_v11, %v4969_v1 }
0x5949   :  { %4973 = vrot.lane.b32.xlu1 %v4971_v3, %s6907_s6 }
0x59bb   :  { %v4974_v32 = vpop.permute.xlu1 %4973 }
0x59bc   :  { %v4976_v5 = vadd.f32 %v4974_v32, %v4966_v52 }
0x59be   :  { %6621 = vtanh.f32 %v4976_v5  ;;  %v5072_v23 = vrot.slane %v4976_v5, 6 }
0x59c8   :  { %v6622_v13 = vpop.eup %6621 }
0x59c9   :  { %4979 = vrot.lane.b32.xlu0 %v6622_v13, %s6907_s6 }
0x5a3b   :  { %v4980_v51 = vpop.permute.xlu0 %4979 }
0x5a3c   :  { %v4982_v54 = vmul.f32 %v6620_v11, %v4980_v51 }
0x5a3e   :  { %v4984_v6 = vrot.slane %v4982_v54, 4 }
0x5a40   :  { %4985 = vrot.lane.b32.xlu1 %v4984_v6, %s6897_s9 }
0x5ab2   :  { %v4986_v55 = vpop.permute.xlu1 %4985 }
0x5ab3   :  { %5976 = vmatmul.mubr.msk.f32.vlgmr.msra.gmra.mrb[40].mxu0 %vm901_vm7, %v4986_v55 }
0x5ab4   :  { %5997 = vmatprep.mubr.msk.f32.mxu0 %vm6904_vm0, %v6903_v0  ;;  %6211 = vmatpush3.bf16.msra.mxu0 %v6210_v33 }
0x5ab5   :  { %6212 = vmatprep.subr.bf16.mxu0 %v6905_v9 }
0x5b86   :  { %v5055_v62 = vpop.f32.mrb[40].mxu0 }
0x5b87   :  { %v5060_v7 = vrot.slane %v5055_v62, 2  ;;  %v5977_v4 = vpop.f32.mrb[41].mxu0 }
0x5b89   :  { %v5062_v14 = vadd.f32 %v7739_v58, %v5060_v7 }
0x5b8b   :  { %v5063_v15 = vadd.f32 %v7901_v17, %v5062_v14  ;;  %v5092_v17 = vld [vmem:[#allocation15 + $0x8] sm:$0xff] }
0x5b8c   :  { %v6204_v20 = vpack.c.bf16 %v5092_v17, %v5091_v47 }
0x5b8d   :  { %6623 = vtanh.f32 %v5063_v15  ;;  %v5064_v18 = vsub.f32 0.0, %v5063_v15 }
0x5b8e   :  { %6205 = vmatpush3.bf16.msra.mxu1 %v6204_v20 }
0x5b8f   :  { %v5065_v19 = vmul.f32 1.442695, %v5064_v18  ;;  %6206 = vmatprep.subr.bf16.mxu1 %v6905_v9  ;;  %v5181_v9 = vld [vmem:[%s8002_s13 + $0x10] sm:$0xff] }
0x5b90   :  { %v6213_v39 = vpack.c.bf16 %v5182_v37, %v5181_v9 }
0x5b91   :  { %6625 = vpow2.f32 %v5065_v19 }
0x5b92   :  { %6208 = vmatpush3.bf16.msra.mxu1 %v6207_v2  ;;  %6214 = vmatpush3.bf16.msra.mxu0 %v6213_v39 }
0x5b97   :  { %v6624_v16 = vpop.eup %6623 }
0x5b98   :  { %5076 = vrot.lane.b32.xlu0 %v6624_v16, %s6907_s6 }
0x5b9b   :  { %v6626_v46 = vpop.eup %6625 }
0x5b9c   :  { %v5067_v53 = vadd.f32 1.0, %v6626_v46 }
0x5b9e   :  { %6627 = vrcp.f32 %v5067_v53 }
0x5ba8   :  { %v6628_v21 = vpop.eup %6627 }
0x5ba9   :  { %v5074_v57 = vmul.f32 %v6628_v21, %v5072_v23 }
0x5c0a   :  { %v5077_v41 = vpop.permute.xlu0 %5076 }
0x5c0b   :  { %v5079_v0 = vmul.f32 %v6628_v21, %v5077_v41 }
0x5c0d   :  { %5081 = vrot.lane.b32.xlu1 %v5079_v0, %s6907_s6 }
0x5c7f   :  { %v5082_v58 = vpop.permute.xlu1 %5081 }
0x5c80   :  { %v5084_v24 = vadd.f32 %v5082_v58, %v5074_v57 }
0x5c82   :  { %6629 = vtanh.f32 %v5084_v24 }
0x5c8c   :  { %v6630_v25 = vpop.eup %6629 }
0x5c8d   :  { %5087 = vrot.lane.b32.xlu0 %v6630_v25, %s6907_s6 }
0x5cac   :  { %238 = vadd.xlane.f32.xlu0 %v237_v45 }
0x5cff   :  { %v5088_v28 = vpop.permute.xlu0 %5087 }
0x5d00   :  { %v5090_v10 = vmul.f32 %v6628_v21, %v5088_v28 }
0x5d02   :  { %v5103_v59 = vrot.slane %v5090_v10, 6 }
0x5d04   :  { %5104 = vrot.lane.b32.xlu1 %v5103_v59, %s6897_s9 }
0x5d08   :  { %5265 = vrot.lane.b32.xlu1 %v5090_v10, %s6897_s9 }
0x5d39   :  { %v239_v61 = vpop.xlane.xlu0 %238 }
0x5d3a   :  { %v240_v29 = vmax.f32 %v239_v61, 1e-12 }
0x5d3c   :  { %6631 = vrcp.f32 %v240_v29 }
0x5d46   :  { %v6632_v30 = vpop.eup %6631 }
0x5d47   :  { %v242_v34 = vmul.f32 %v6632_v30, %v235_v38 }
0x5d49   :  { %243 = vst.msk [vmem:[#allocation20] sm:$0xf] %vm236_vm2, %v242_v34 }
0x5d76   :  { %v5105_v35 = vpop.permute.xlu1 %5104 }
0x5d77   :  { %5987 = vmatmul.mubr.msk.f32.vlgmr.msra.gmra.mrb[42].mxu1 %vm901_vm7, %v5105_v35 }
0x5d7a   :  { %v5266_v36 = vpop.permute.xlu1 %5265 }
0x5d7b   :  { %5268 = vst.msk [vmem:[#allocation18 - $0x6] sm:$0xc0] %vm1938_vm6, %v5266_v36 }
0x5e4a   :  { %v5174_v43 = vpop.f32.mrb[42].mxu1 }
0x5e4b   :  { %v5175_v44 = vadd.f32 %v5369_v42, %v5174_v43  ;;  %v5988_v50 = vpop.f32.mrb[43].mxu1 }
0x5e4d   :  { %v5178_v60 = vmax.f32 %v5175_v44, 0.0 }
0x5e4f   :  { %5998 = vmatmul.mubr.msk.f32.vlgmr.msra.gmra.mrb[42].mxu0 %vm901_vm7, %v5178_v60 }
0x5e50   :  { %6822 = shalt.err (!%p6819_p12)
}
0x5e51   :  { %s6823_s12 = scalar_lea.hbm %s8005_s16, 32 }
0x5e52   :  { %p6824_p13 = scmp.ne.s32.totalorder %s8005_s16, %s6823_s12  ;;  %p6827_p0 = scmp.lt.u32.totalorder %s6823_s12, %s8005_s16 }
0x5e54   :  { %p6829_p1 = pnand %p6827_p0, %p6824_p13 }
0x5e56   :  { %6832 = shalt.err (!%p6829_p1)
}
0x5e57   :  { %5288 = dma.vmem_to_hbm [thread:$0]  %s5286_s5, 32, %s8005_s16, [#allocation19]  }
0x5e58   :  { %s6909_s30 = smov [#allocation20]  }
0x5e59   :  { %s5295_s26 = sshll.u32 %s6909_s30, 4  ;;  %s5296_s26 = int_to_ptr.vmem [resolvable:$true] %s5295_s26 }
0x5e5a   :  { %s6833_s23 = scalar_lea.vmem %s5296_s26, 64  ;;  %p6838_p3 = scmp.lt.s32.totalorder %s5296_s26, %s5296_s26 }
0x5e5b   :  { %p6834_p2 = scmp.ne.s32.totalorder %s5296_s26, %s6833_s23  ;;  %p6839_p4 = scmp.lt.s32.totalorder %s6833_s23, %s6833_s23 }
0x5e5d   :  { %p6840_p5 = por %p6839_p4, %p6838_p3 }
0x5e5f   :  { %p6841_p6 = pnand %p6840_p5, %p6834_p2 }
0x5e61   :  { %6844 = shalt.err (!%p6841_p6)
}
0x5e62   :  { %s6845_s10 = scalar_lea.hbm %s8006_s17, 64 }
0x5e63   :  { %p6846_p7 = scmp.ne.s32.totalorder %s8006_s17, %s6845_s10  ;;  %p6849_p8 = scmp.lt.u32.totalorder %s6845_s10, %s8006_s17 }
0x5e65   :  { %p6851_p9 = pnand %p6849_p8, %p6846_p7 }
0x5e67   :  { %6854 = shalt.err (!%p6851_p9)
}
0x5e68   :  { %5298 = dma.vmem_to_hbm [thread:$0]  %s5296_s26, 64, %s8006_s17, [#allocation19]   ;;  %v5371_v48 = vld [vmem:[%s8003_s14] ss:$0 sm:$0xff]  ;;  %vm5263_vm0 = vcmask 58368  }
0x5e69   :  { %s6910_s21 = smov [#allocation17]  }
0x5e6a   :  { %s5275_s9 = sshll.u32 %s6910_s21, 4  ;;  %s5276_s9 = int_to_ptr.vmem [resolvable:$true] %s5275_s9 }
0x5e6b   :  { %s6855_s25 = scalar_lea.vmem %s5276_s9, 32  ;;  %p6860_p11 = scmp.lt.s32.totalorder %s5276_s9, %s5276_s9 }
0x5e6c   :  { %p6856_p10 = scmp.ne.s32.totalorder %s5276_s9, %s6855_s25  ;;  %p6861_p12 = scmp.lt.s32.totalorder %s6855_s25, %s6855_s25 }
0x5e6e   :  { %p6862_p13 = por %p6861_p12, %p6860_p11 }
0x5e70   :  { %p6863_p0 = pnand %p6862_p13, %p6856_p10 }
0x5f22   :  { %v5259_v40 = vpop.f32.mrb[42].mxu0 }
0x5f23   :  { %v5260_v31 = vadd.f32 %v5371_v48, %v5259_v40  ;;  %v5999_v22 = vpop.f32.mrb[43].mxu0 }
0x5f25   :  { %5264 = vst.msk [vmem:[#allocation17] sm:$0x3] %vm5263_vm0, %v5260_v31 }
0x5f26   :  { %6866 = shalt.err (!%p6863_p0)
}
0x5f27   :  { %s8017_s5 = sld [smem:[#allocation30_spill]] }
0x5f2d   :  { %s6867_s7 = scalar_lea.hbm %s8017_s5, 32 }
0x5f2e   :  { %p6868_p1 = scmp.ne.s32.totalorder %s8017_s5, %s6867_s7  ;;  %p6871_p2 = scmp.lt.u32.totalorder %s6867_s7, %s8017_s5 }
0x5f30   :  { %p6873_p3 = pnand %p6871_p2, %p6868_p1 }
0x5f32   :  { %6876 = shalt.err (!%p6873_p3)
}
0x5f33   :  { %5278 = dma.vmem_to_hbm [thread:$0]  %s5276_s9, 32, %s8017_s5, [#allocation5]  }
0x5f34   :  { %6887 = dma.done.wait [#allocation5], 32  }
0x5f35   :  { %6888 = vsyncadd [#allocation5], 4294967264 }
0x5f36   :  { %6889 = dma.done.wait [#allocation19], 96  }
0x5f37   :  { %6890 = vsyncadd [#allocation19], 4294967200 }
0x5f38   :  { %5308 = vsyncpa [#allocation4], 1 }
0x5f39   :  { %5309 = vsyncpa [#allocation7], 1 }
0x5f3a   :  { %5310 = vsyncpa [#allocation10], 1 }
0x5f3b   :  { %5311 = vsyncpa [#allocation13], 1 }
0x5f3c   :  { %5312 = vsyncpa [#allocation16], 1 }
0x5f3d   :  { %5313 = vsyncpa [#allocation5], 1 }
0x5f3e   :  { %5314 = vsyncpa [#allocation19], 1 }

</bundles_post_ra>
